<compile_context>
chip_gen: v7x
topology: tpu7x:2x2x1
jax: 0.10.0
libtpu: 0.0.40
codegen_flags: <defaults>
</compile_context>

<pallas_src>
import functools

import jax
import jax.numpy as jnp
from jax import lax
from jax.experimental import pallas as pl
from jax.experimental.pallas import tpu as pltpu


def _conv_kernel(x_ref, w_ref, b_ref, o_ref, *, ksize, stride, out_h, out_w):
    # x_ref: (1, Cin, Hp, Wp)   padded+upsampled input, channel-major
    # w_ref: (Cout, K*K*Cin)    contraction ordered (kh, kw, cin)
    # b_ref: (Cout, 1)
    # o_ref: (1, Cout, Ho*Wo)   lane-dense output (spatial on the lane axis)
    x = x_ref[0]                           # (Cin, Hp, Wp)
    cin = x.shape[0]
    n_pix = out_h * out_w

    # im2col: stack the K*K shifted views along the contraction (sublane) axis.
    taps = []
    for kh in range(ksize):
        for kw in range(ksize):
            patch = x[:, kh: kh + out_h * stride: stride,
                         kw: kw + out_w * stride: stride]      # (Cin, Ho, Wo)
            taps.append(patch.reshape(cin, n_pix))             # (Cin, Ho*Wo)
    patches = jnp.concatenate(taps, axis=0)                    # (K*K*Cin, Ho*Wo)

    # One MXU matmul: (Cout, K*K*Cin) x (K*K*Cin, Ho*Wo) -> (Cout, Ho*Wo).
    acc = jnp.dot(w_ref[...], patches, preferred_element_type=jnp.float32)
    acc = acc + b_ref[...]                 # (Cout, 1) broadcast over lanes
    o_ref[0] = acc.astype(o_ref.dtype)


def _reflect_upsample_indices(size, pad, scale):
    """Padded/upsampled coordinate -> original coordinate.

    nearest upsample by `scale` then ReflectionPad2d(pad) (edge not repeated):
      padded i -> upsampled j = reflect(i - pad) -> original j // scale
    """
    size_up = size * scale
    j = jnp.arange(size_up + 2 * pad) - pad
    j = jnp.where(j < 0, -j, j)
    j = jnp.where(j >= size_up, 2 * (size_up - 1) - j, j)
    return j // scale


def upsample_conv_layer(x_nchw, weight_oihw, bias, *, kernel_size, stride, upsample=None):
    """Matches UpsampleConvLayer.forward semantics (NCHW in, NCHW out)."""
    n, cin, h, w = x_nchw.shape
    cout = weight_oihw.shape[0]
    scale = upsample if upsample else 1
    pad = kernel_size // 2

    # Fused nearest-upsample + reflection pad: a single gather, keeping the
    # channel-major (NCHW) layout so no HBM transposes are needed anywhere.
    row = _reflect_upsample_indices(h, pad, scale)            # (Hp,)
    col = _reflect_upsample_indices(w, pad, scale)            # (Wp,)
    x_pad = x_nchw[:, :, row[:, None], col[None, :]]          # (N, Cin, Hp, Wp)
    hp, wp = x_pad.shape[2], x_pad.shape[3]

    out_h = (hp - kernel_size) // stride + 1
    out_w = (wp - kernel_size) // stride + 1
    n_pix = out_h * out_w
    kkc = kernel_size * kernel_size * cin

    # (Cout, Cin, K, K) -> (Cout, K*K*Cin), contraction ordered (kh, kw, cin)
    # to match the in-kernel patch stack.
    w2d = jnp.transpose(weight_oihw, (0, 2, 3, 1)).reshape(cout, kkc)
    b2 = bias.reshape(cout, 1)

    kernel = functools.partial(
        _conv_kernel, ksize=kernel_size, stride=stride, out_h=out_h, out_w=out_w)

    # NOTE: at these sizes one batch element per grid step is ~40 KB of VMEM; for real
    # resolutions tile over output rows (block (1, Cin, TH+K-1, Wp)) and set
    # vmem_limit_bytes explicitly (v7x has half the VMEM of v5e/v6e).
    out_flat = pl.pallas_call(
        kernel,
        out_shape=jax.ShapeDtypeStruct((n, cout, n_pix), x_nchw.dtype),
        grid=(n,),
        in_specs=[
            pl.BlockSpec((1, cin, hp, wp), lambda i: (i, 0, 0, 0)),
            pl.BlockSpec((cout, kkc), lambda i: (0, 0)),
            pl.BlockSpec((cout, 1), lambda i: (0, 0)),
        ],
        out_specs=pl.BlockSpec((1, cout, n_pix), lambda i: (i, 0, 0)),
        compiler_params=pltpu.CompilerParams(dimension_semantics=("parallel",)),
    )(x_pad, w2d, b2)

    # Free metadata reshape (no transpose): (N, Cout, Ho*Wo) -> (N, Cout, Ho, Wo).
    return out_flat.reshape(n, cout, out_h, out_w)


if __name__ == "__main__":
    # Module config: UpsampleConvLayer(in_channels=4, out_channels=8, kernel_size=3,
    #                                  stride=1, upsample=2)
    in_channels, out_channels, kernel_size, stride, upsample = 4, 8, 3, 1, 2
    N, H, W = 2, 16, 16

    key = jax.random.PRNGKey(0)
    kx, kw, kb = jax.random.split(key, 3)

    x = jax.random.normal(kx, (N, in_channels, H, W), dtype=jnp.float32)

    # Deterministic Conv2d-style init (uniform with fan_in bound), no checkpoint load.
    fan_in = in_channels * kernel_size * kernel_size
    bound = 1.0 / jnp.sqrt(jnp.float32(fan_in))
    weight = jax.random.uniform(
        kw, (out_channels, in_channels, kernel_size, kernel_size),
        dtype=jnp.float32, minval=-bound, maxval=bound)
    bias = jax.random.uniform(
        kb, (out_channels,), dtype=jnp.float32, minval=-bound, maxval=bound)

    out = upsample_conv_layer(
        x, weight, bias, kernel_size=kernel_size, stride=stride, upsample=upsample)
    out = jax.block_until_ready(out)

    # Reference check with lax conv (explicit upsample + reflection pad glue).
    x_ref = jnp.repeat(jnp.repeat(x, upsample, axis=2), upsample, axis=3)
    x_ref = jnp.pad(x_ref, ((0, 0), (0, 0), (1, 1), (1, 1)), mode="reflect")
    ref = lax.conv_general_dilated(
        x_ref, weight, (stride, stride), "VALID",
        dimension_numbers=("NCHW", "OIHW", "NCHW")) + bias[None, :, None, None]
    assert out.shape == (N, out_channels, H * upsample, W * upsample)
    assert jnp.allclose(out, ref, atol=1e-4, rtol=1e-4)

    print("KERNEL_OK")
</pallas_src>

<mosaic_0001>
module attributes {stable_mosaic.version = 11 : i64} {
  func.func @_conv_kernel(%arg0: i32, %arg1: memref<1x4x34x34xf32, #tpu.memory_space<vmem>>, %arg2: memref<8x36xf32, #tpu.memory_space<vmem>>, %arg3: memref<8x1xf32, #tpu.memory_space<vmem>>, %arg4: memref<1x8x1024xf32, #tpu.memory_space<vmem>>) attributes {dimension_semantics = [#tpu.dimension_semantics<parallel>], iteration_bounds = array<i64: 2>, scalar_prefetch = 0 : i64, scratch_operands = 0 : i64, tpu.core_type = #tpu.core_type<tc>, window_params = [{transform_indices = @transform_0, window_bounds = array<i64: 1, 4, 34, 34>}, {pipeline_mode = #tpu.pipeline_mode<synchronous>, transform_indices = @transform_1, window_bounds = array<i64: 8, 36>}, {pipeline_mode = #tpu.pipeline_mode<synchronous>, transform_indices = @transform_2, window_bounds = array<i64: 8, 1>}, {transform_indices = @transform_3, window_bounds = array<i64: 1, 8, 1024>}]} {
    %c0 = arith.constant 0 : index
    %c0_0 = arith.constant 0 : index
    %c0_1 = arith.constant 0 : index
    %c0_2 = arith.constant 0 : index
    %0 = vector.load %arg1[%c0, %c0_0, %c0_1, %c0_2] : memref<1x4x34x34xf32, #tpu.memory_space<vmem>>, vector<1x4x34x34xf32>
    %1 = vector.shape_cast %0 : vector<1x4x34x34xf32> to vector<4x34x34xf32>
    %2 = vector.extract_strided_slice %1 {offsets = [0, 0, 0], sizes = [4, 32, 32], strides = [1, 1, 1]} : vector<4x34x34xf32> to vector<4x32x32xf32>
    %3 = vector.shape_cast %2 : vector<4x32x32xf32> to vector<4x1024xf32>
    %4 = vector.extract_strided_slice %1 {offsets = [0, 0, 1], sizes = [4, 32, 32], strides = [1, 1, 1]} : vector<4x34x34xf32> to vector<4x32x32xf32>
    %5 = vector.shape_cast %4 : vector<4x32x32xf32> to vector<4x1024xf32>
    %6 = vector.extract_strided_slice %1 {offsets = [0, 0, 2], sizes = [4, 32, 32], strides = [1, 1, 1]} : vector<4x34x34xf32> to vector<4x32x32xf32>
    %7 = vector.shape_cast %6 : vector<4x32x32xf32> to vector<4x1024xf32>
    %8 = vector.extract_strided_slice %1 {offsets = [0, 1, 0], sizes = [4, 32, 32], strides = [1, 1, 1]} : vector<4x34x34xf32> to vector<4x32x32xf32>
    %9 = vector.shape_cast %8 : vector<4x32x32xf32> to vector<4x1024xf32>
    %10 = vector.extract_strided_slice %1 {offsets = [0, 1, 1], sizes = [4, 32, 32], strides = [1, 1, 1]} : vector<4x34x34xf32> to vector<4x32x32xf32>
    %11 = vector.shape_cast %10 : vector<4x32x32xf32> to vector<4x1024xf32>
    %12 = vector.extract_strided_slice %1 {offsets = [0, 1, 2], sizes = [4, 32, 32], strides = [1, 1, 1]} : vector<4x34x34xf32> to vector<4x32x32xf32>
    %13 = vector.shape_cast %12 : vector<4x32x32xf32> to vector<4x1024xf32>
    %14 = vector.extract_strided_slice %1 {offsets = [0, 2, 0], sizes = [4, 32, 32], strides = [1, 1, 1]} : vector<4x34x34xf32> to vector<4x32x32xf32>
    %15 = vector.shape_cast %14 : vector<4x32x32xf32> to vector<4x1024xf32>
    %16 = vector.extract_strided_slice %1 {offsets = [0, 2, 1], sizes = [4, 32, 32], strides = [1, 1, 1]} : vector<4x34x34xf32> to vector<4x32x32xf32>
    %17 = vector.shape_cast %16 : vector<4x32x32xf32> to vector<4x1024xf32>
    %18 = vector.extract_strided_slice %1 {offsets = [0, 2, 2], sizes = [4, 32, 32], strides = [1, 1, 1]} : vector<4x34x34xf32> to vector<4x32x32xf32>
    %19 = vector.shape_cast %18 : vector<4x32x32xf32> to vector<4x1024xf32>
    %20 = tpu.concatenate %3, %5, %7, %9, %11, %13, %15, %17, %19 in 0 : vector<4x1024xf32>, vector<4x1024xf32>, vector<4x1024xf32>, vector<4x1024xf32>, vector<4x1024xf32>, vector<4x1024xf32>, vector<4x1024xf32>, vector<4x1024xf32>, vector<4x1024xf32> -> vector<36x1024xf32>
    %c0_3 = arith.constant 0 : index
    %c0_4 = arith.constant 0 : index
    %21 = vector.load %arg2[%c0_3, %c0_4] : memref<8x36xf32, #tpu.memory_space<vmem>>, vector<8x36xf32>
    %cst = arith.constant dense<0.000000e+00> : vector<8x1024xf32>
    %22 = tpu.matmul %21, %20, %cst {dimension_numbers = #tpu.dot_dimension_numbers<[1], [0], [0], [1], [0, 0, 1, 1], [], []>} : vector<8x36xf32>, vector<36x1024xf32>, vector<8x1024xf32> -> vector<8x1024xf32>
    %c0_5 = arith.constant 0 : index
    %c0_6 = arith.constant 0 : index
    %23 = vector.load %arg3[%c0_5, %c0_6] : memref<8x1xf32, #tpu.memory_space<vmem>>, vector<8x1xf32>
    %24 = vector.broadcast %23 : vector<8x1xf32> to vector<8x1024xf32>
    %25 = arith.addf %22, %24 : vector<8x1024xf32>
    %c0_7 = arith.constant 0 : index
    %c0_8 = arith.constant 0 : index
    %c0_9 = arith.constant 0 : index
    %26 = vector.load %arg4[%c0_7, %c0_8, %c0_9] : memref<1x8x1024xf32, #tpu.memory_space<vmem>>, vector<1x8x1024xf32>
    %27 = vector.shape_cast %26 : vector<1x8x1024xf32> to vector<8x1024xf32>
    %28 = vector.shape_cast %25 : vector<8x1024xf32> to vector<1x8x1024xf32>
    tpu.vector_store %arg4[%c0_7, %c0_8, %c0_9], %28 {strides = array<i32>} : memref<1x8x1024xf32, #tpu.memory_space<vmem>>, vector<1x8x1024xf32>,
    return
  }
  func.func @transform_0(%arg0: i32) -> (i32, i32, i32, i32) {
    %c0_i32 = arith.constant 0 : i32
    %c0_i32_0 = arith.constant 0 : i32
    %c0_i32_1 = arith.constant 0 : i32
    %c0_i32_2 = arith.constant 0 : i32
    return %arg0, %c0_i32, %c0_i32_0, %c0_i32_1 : i32, i32, i32, i32
  }
  func.func @transform_1(%arg0: i32) -> (i32, i32) {
    %c0_i32 = arith.constant 0 : i32
    %c0_i32_0 = arith.constant 0 : i32
    %c0_i32_1 = arith.constant 0 : i32
    return %c0_i32, %c0_i32_0 : i32, i32
  }
  func.func @transform_2(%arg0: i32) -> (i32, i32) {
    %c0_i32 = arith.constant 0 : i32
    %c0_i32_0 = arith.constant 0 : i32
    %c0_i32_1 = arith.constant 0 : i32
    return %c0_i32, %c0_i32_0 : i32, i32
  }
  func.func @transform_3(%arg0: i32) -> (i32, i32, i32) {
    %c0_i32 = arith.constant 0 : i32
    %c0_i32_0 = arith.constant 0 : i32
    %c0_i32_1 = arith.constant 0 : i32
    return %arg0, %c0_i32, %c0_i32_0 : i32, i32, i32
  }
}

</mosaic_0001>

<bundles_post_ra>
// kernel: tpu_custom_call.1
= control target key start
LH: loop header
LB: loop body
LE: loop exit
PB: predicated region body
PF: predicated region fallthrough
CT: control target
= control target key end

     0   :  { %8 = vsyncpa [#allocation3], 0  ;;  %s8244_s0 = inlined_call_operand.vmem [shape: f32[2,4,34,34], index: 0, kind: input, shape index: {}]   ;;  %s8245_s1 = inlined_call_operand.vmem [shape: f32[8,36], index: 1, kind: input, shape index: {}]   ;;  %s8246_s2 = inlined_call_operand.vmem [shape: f32[8,1], index: 2, kind: input, shape index: {}]   ;;  %s8247_s3 = inlined_call_operand.hbm [shape: f32[2,8,1024], index: 3, kind: output, shape index: {}]  }
   0x1   :  { %10 = vsyncpa [#allocation3 + $0x1], 0  ;;  %s5376_s12 = smov 0   ;;  %s5378_s13 = smov 0  }
   0x2   :  { %s5380_s14 = smov 0   ;;  %s5382_s15 = smov 0  }
   0x3 LB: > { %s5397_s16 = sadd.s32 4294967295, %s5344_s15   ;;  %s4664_s17 = sadd.s32 4294967294, %s5344_s15   ;;  %s5344_s15 = sphi %s5382_s15, %s8566_s15   ;;  %s5340_s14 = sphi %s5380_s14, %s8565_s14   ;;  %s5336_s13 = sphi %s5378_s13, %s8564_s13   ;;  %s5332_s12 = sphi %s5376_s12, %s8563_s12  }
   0x4   : > { %s5401_s18 = sadd.s32 1, %s5344_s15   ;;  %s91_s19 = sadd.s32 1, %s5340_s14 }
   0x5   : > { %s88_s20 = ssub.s32 %s5344_s15, %s5401_s18  ;;  %p101_p0 = scmp.ne.s32.totalorder %s5340_s14, %s5336_s13 }
   0x6   : > { %p89_p1 = scmp.eq.s32.totalorder %s88_s20, 0  ;;  %p102_p2 = scmp.eq.s32.totalorder %s5397_s16, 1 }
   0x7   : > { %p107_p3 = scmp.ne.s32.totalorder %s5336_s13, %s5332_s12  ;;  %p108_p4 = scmp.eq.s32.totalorder %s4664_s17, 1 }
   0x8   : > { %s5412_s21 = scalar_select %p89_p1, %s5340_s14, %s91_s19  }
   0x9   : > { %p5414_p5 = por %p102_p2, %p101_p0  ;;  %p5418_p6 = por %p108_p4, %p107_p3 }
   0xa   : > { %p4667_p7 = scmp.ge.s32.totalorder %s5344_s15, 1  ;;  %p140_p8 = scmp.lt.s32.totalorder %s5344_s15, 3 }
   0xc   : > { %p141_p9 = pnand %p4667_p7, %p140_p8 }
   0xe   : > { %144 = sbr.rel (%p141_p9) target bundleno = 972 (0x3cc), region = 32 }
  0x15   : > { %p164_p10 = scmp.lt.s32.totalorder %s5397_s16, 1  ;;  %v194_v0 = vlaneseq  ;;  %v5346_v1 = vmov 1983009808   ;;  %v5347_v3 = vmov 1934713408   ;;  %v8248_v5 = vmov 0.0  }
  0x16   : > { %v192_v2 = vunpack.c.l.s4 %v5346_v1  ;;  %v224_v4 = vunpack.c.l.s4 %v5347_v3  ;;  %4362 = vmatprep.mubr.f32.mxu0 %v8248_v5  ;;  %4433 = vmatprep.mubr.f32.mxu1 %v8248_v5  ;;  %s5349_s29 = smov 64   ;;  %s5350_s30 = smov 96   ;;  %vm1484_vm0 = vcmask 1046528   ;;  %vm2809_vm1 = vcmask 1045504  }
  0x17   : > { %s165_s24 = scalar_select %p164_p10, %s5397_s16, 1  ;;  %v195_v6 = vshrl.u32 %v194_v0, 7  ;;  %vm557_vm2 = vcmask 261120   ;;  %vm559_vm3 = vcmask 523264   ;;  %vm561_vm4 = vcmask 785408  }
  0x18   : > { %v193_v7 = vunpack.c.0.s8 %v192_v2  ;;  %v225_v8 = vunpack.c.0.s8 %v224_v4  ;;  %s5351_s4 = smov 32   ;;  %s5352_s5 = smov 127   ;;  %vm4230_vm5 = vcmask 1043456   ;;  %vm4270_vm6 = vcmask 293888  }
  0x19   : > { %s4720_s25 = smul.u32 160, %s165_s24  ;;  %s5353_s6 = smov 126  }
  0x1a   : > { %v5433_v9 = vsub.s32 %v193_v7, %v195_v6  ;;  %v5457_v18 = vsub.s32 %v225_v8, %v195_v6  ;;  %s161_s11 = sand.u32 1, %s5336_s13   ;;  %s4687_s20 = sshll.u32 %s5397_s16, 10 }
  0x1b   : > { %s5431_s28 = scalar_lea.vmem %s8244_s0, %s4720_s25  ;;  %s4668_s17 = sshll.u32 %s161_s11, 6 }
  0x1c   : > { %v5436_v10 = vld [vmem:[%s5431_s28 + $0x10] sm:$0xff]  ;;  %v5439_v11 = vld [vmem:[%s5431_s28 + $0x38] sm:$0xff]  ;;  %v5442_v12 = vld [vmem:[%s5431_s28 + $0x60] sm:$0xff]  ;;  %s163_s19 = scalar_lea.vmem [#allocation2], %s4668_s17  ;;  %s8200_s27 = scalar_lea.hbm %s8247_s3, %s4687_s20 }
  0x1d   : > { %v5445_v13 = vld [vmem:[%s5431_s28 + $0x88] sm:$0xff]  ;;  %v325_v14 = vcombine.low %v5436_v10, %v5442_v12  ;;  %v326_v15 = vcombine.high %v5436_v10, %v5442_v12  ;;  %v5452_v16 = vld [vmem:[%s5431_s28] sm:$0xff]  ;;  %v5464_v21 = vld [vmem:[%s5431_s28 + $0x50] sm:$0xff]  ;;  %s4605_s24 = sshll.u32 %s163_s19, 4  ;;  %s8202_s24 = int_to_ptr.vmem [resolvable:$true] %s4605_s24 }
  0x1e   : > { %v5455_v17 = vld [vmem:[%s5431_s28 + $0x28] sm:$0xff]  ;;  %v341_v19 = vcombine.low %v5439_v11, %v5445_v13  ;;  %v342_v20 = vcombine.high %v5439_v11, %v5445_v13  ;;  %v5467_v22 = vld [vmem:[%s5431_s28 + $0x78] sm:$0xff]  ;;  %v189_v26 = vcombine.low %v5452_v16, %v5464_v21  ;;  %v190_v27 = vcombine.high %v5452_v16, %v5464_v21  ;;  %v5490_v35 = vld [vmem:[%s5431_s28 + $0x30] sm:$0xff]  ;;  %s5282_s16 = scalar_lea.vmem %s8202_s24, 1024 }
  0x1f   : > { %v5470_v23 = vld [vmem:[%s5431_s28 + $0x8] sm:$0xff]  ;;  %v333_v24 = vrot.slane %v325_v14, %v5433_v9  ;;  %v340_v25 = vrot.slane %v326_v15, %v5433_v9  ;;  %v5479_v28 = vld [vmem:[%s5431_s28 + $0x58] sm:$0xff]  ;;  %v205_v31 = vcombine.low %v5455_v17, %v5467_v22  ;;  %v206_v32 = vcombine.high %v5455_v17, %v5467_v22  ;;  %v5493_v36 = vld [vmem:[%s5431_s28 + $0x80] sm:$0xff]  ;;  %p5283_p11 = scmp.ne.s32.totalorder %s8202_s24, %s5282_s16 }
  0x20   : > { %v349_v29 = vrot.slane %v341_v19, %v5433_v9  ;;  %v356_v30 = vrot.slane %v342_v20, %v5433_v9  ;;  %v197_v33 = vrot.slane %v189_v26, %v5433_v9  ;;  %v204_v34 = vrot.slane %v190_v27, %v5433_v9  ;;  %v5535_v15 = vld [vmem:[%s5431_s28 + $0x18] sm:$0xff]  ;;  %v5545_v26 = vld [vmem:[%s5431_s28 + $0x40] sm:$0xff]  ;;  %v5548_v27 = vld [vmem:[%s5431_s28 + $0x68] sm:$0xff] }
  0x21   : > { %v257_v37 = vcombine.low %v5470_v23, %v5479_v28  ;;  %v258_v38 = vcombine.high %v5470_v23, %v5479_v28  ;;  %v213_v42 = vrot.slane %v205_v31, %v5433_v9  ;;  %v220_v43 = vrot.slane %v206_v32, %v5433_v9  ;;  %8363 = vst [vmem:[#allocation9_spill] sm:$0xff] %v5535_v15  ;;  %p5284_p12 = pnand %p5283_p11, %p5414_p5 }
  0x22   : > { %v358_v39 = vcombine.high %v333_v24, %v349_v29  ;;  %v374_v40 = vcombine.high %v340_v25, %v356_v30  ;;  %v357_v41 = vcombine.low %v333_v24, %v349_v29  ;;  %v273_v48 = vcombine.low %v5490_v35, %v5493_v36  ;;  %8365 = vst [vmem:[#allocation11_spill] sm:$0xff] %v5545_v26  ;;  %v5551_v29 = vld [vmem:[%s5431_s28 + $0x90] sm:$0xff] }
  0x23   : > { %v265_v44 = vrot.slane %v257_v37, %v5433_v9  ;;  %v272_v45 = vrot.slane %v258_v38, %v5433_v9  ;;  %v274_v49 = vcombine.high %v5490_v35, %v5493_v36  ;;  %v222_v50 = vcombine.high %v197_v33, %v213_v42  ;;  %8366 = vst [vmem:[#allocation12_spill] sm:$0xff] %v5548_v27  ;;  %p5285_p13 = pneg %p5284_p12 }
  0x24   : > { %v5504_v46 = vrot.slane %v358_v39, %v5457_v18  ;;  %v388_v47 = vrot.slane %v374_v40, %v5457_v18  ;;  %v237_v51 = vcombine.low %v204_v34, %v220_v43  ;;  %v238_v52 = vcombine.high %v204_v34, %v220_v43  ;;  %8367 = vst [vmem:[#allocation13_spill] sm:$0xff] %v5551_v29 }
  0x25   : > { %v221_v53 = vcombine.low %v197_v33, %v213_v42  ;;  %v373_v54 = vcombine.low %v340_v25, %v356_v30  ;;  %v281_v56 = vrot.slane %v273_v48, %v5433_v9  ;;  %v236_v57 = vrot.slane %v222_v50, %v5457_v18 }
  0x26   : > { %v4779_v55 = vpack.i.bf16 %v388_v47, %v5504_v46  ;;  %v252_v58 = vrot.slane %v238_v52, %v5457_v18  ;;  %v288_v59 = vrot.slane %v274_v49, %v5433_v9  ;;  %v5521_v63 = vrot.slane %v237_v51, %v5457_v18 }
  0x27   : > { %v5517_v60 = vrot.slane %v221_v53, %v5457_v18  ;;  %v290_v61 = vcombine.high %v265_v44, %v281_v56  ;;  %v289_v62 = vcombine.low %v265_v44, %v281_v56  ;;  %v5524_v0 = vrot.slane %v357_v41, %v5457_v18 }
  0x28   : > { %4780 = vrot.lane.b32.xlu1 %v4779_v55, %s5349_s29  ;;  %8360 = vst [vmem:[#allocation6_spill] sm:$0xff] %v5521_v63  ;;  %v256_v1 = vcombine.high %v252_v58, %v8248_v5  ;;  %v4769_v2 = vpack.i.bf16 %v252_v58, %v236_v57  ;;  %v254_v3 = vcombine.high %v236_v57, %v8248_v5 }
  0x29   : > { %8359 = vst [vmem:[#allocation5_spill] sm:$0xff] %v5517_v60  ;;  %8361 = vst [vmem:[#allocation7_spill] sm:$0xff] %v5524_v0  ;;  %v306_v4 = vcombine.high %v272_v45, %v288_v59  ;;  %v304_v6 = vrot.slane %v290_v61, %v5457_v18  ;;  %v5530_v7 = vrot.slane %v289_v62, %v5457_v18 }
  0x2a   : > { %v305_v8 = vcombine.low %v272_v45, %v288_v59  ;;  %v253_v14 = vcombine.high %v5517_v60, %v8248_v5  ;;  %4770 = vrot.lane.b32.xlu0 %v4769_v2, %s5349_s29  ;;  %v4789_v20 = vpack.i.bf16 %v256_v1, %v254_v3  ;;  %v255_v24 = vcombine.high %v5521_v63, %v8248_v5 }
  0x2b   : > { %8362 = vst [vmem:[#allocation8_spill] sm:$0xff] %v5530_v7  ;;  %v320_v19 = vrot.slane %v306_v4, %v5457_v18  ;;  %v5542_v25 = vrot.slane %v373_v54, %v5457_v18  ;;  %v321_v31 = vcombine.high %v5530_v7, %v8248_v5  ;;  %v322_v33 = vcombine.high %v304_v6, %v8248_v5 }
  0x2c   : > { %v5554_v30 = vrot.slane %v305_v8, %v5457_v18  ;;  %4790 = vrot.lane.b32.xlu1 %v4789_v20, %s5350_s30  ;;  %v393_v38 = vcombine.low %v5535_v15, %v5548_v27  ;;  %v394_v39 = vcombine.high %v5535_v15, %v5548_v27  ;;  %v409_v40 = vcombine.low %v5545_v26, %v5551_v29 }
  0x2d   : > { %8364 = vst [vmem:[#allocation10_spill] sm:$0xff] %v5542_v25  ;;  %v4774_v32 = vpack.i.bf16 %v320_v19, %v304_v6  ;;  %v324_v34 = vcombine.high %v320_v19, %v8248_v5  ;;  %v4784_v41 = vpack.i.bf16 %v255_v24, %v253_v14  ;;  %v389_v42 = vcombine.high %v5524_v0, %v8248_v5 }
  0x2e   : > { %8368 = vst [vmem:[#allocation14_spill] sm:$0xff] %v5554_v30  ;;  %v323_v37 = vcombine.high %v5554_v30, %v8248_v5  ;;  %v391_v43 = vcombine.high %v5542_v25, %v8248_v5  ;;  %v410_v44 = vcombine.high %v5545_v26, %v5551_v29  ;;  %v401_v48 = vrot.slane %v393_v38, %v5433_v9 }
  0x2f   : > { %4775 = vrot.lane.b32.xlu0 %v4774_v32, %s5349_s29  ;;  %v408_v49 = vrot.slane %v394_v39, %v5433_v9  ;;  %v417_v50 = vrot.slane %v409_v40, %v5433_v9  ;;  %v392_v52 = vcombine.high %v388_v47, %v8248_v5  ;;  %v4799_v53 = vpack.i.bf16 %v324_v34, %v322_v33 }
  0x30   : > { %v4794_v45 = vpack.i.bf16 %v323_v37, %v321_v31  ;;  %v424_v51 = vrot.slane %v410_v44, %v5433_v9  ;;  %v390_v56 = vcombine.high %v5504_v46, %v8248_v5  ;;  %v4804_v57 = vpack.i.bf16 %v391_v43, %v389_v42 }
  0x31   : > { %v425_v54 = vcombine.low %v401_v48, %v417_v50  ;;  %v426_v55 = vcombine.high %v401_v48, %v417_v50  ;;  %v8269_v30 = vrot.slane %v5479_v28, 1 }
  0x32   : > { %4795 = vrot.lane.b32.xlu1 %v4794_v45, %s5351_s4  ;;  %v441_v58 = vcombine.low %v408_v49, %v424_v51  ;;  %v442_v59 = vcombine.high %v408_v49, %v424_v51  ;;  %v4809_v3 = vpack.i.bf16 %v392_v52, %v390_v56 }
  0x33   : > { %4785 = vrot.lane.b32.xlu0 %v4784_v41, %s5351_s4  ;;  %v5586_v61 = vrot.slane %v425_v54, %v5457_v18  ;;  %v440_v62 = vrot.slane %v426_v55, %v5457_v18 }
  0x34   : > { %v5590_v47 = vrot.slane %v441_v58, %v5457_v18  ;;  %v456_v1 = vrot.slane %v442_v59, %v5457_v18 }
  0x35   : > { %8369 = vst [vmem:[#allocation15_spill] sm:$0xff] %v5586_v61  ;;  %v457_v46 = vcombine.high %v5586_v61, %v8248_v5  ;;  %v458_v4 = vcombine.high %v440_v62, %v8248_v5 }
  0x36   : > { %8370 = vst [vmem:[#allocation16_spill] sm:$0xff] %v5590_v47  ;;  %4800 = vrot.lane.b32.xlu1 %v4799_v53, %s5350_s30  ;;  %v459_v2 = vcombine.high %v5590_v47, %v8248_v5  ;;  %v460_v6 = vcombine.high %v456_v1, %v8248_v5  ;;  %v4814_v19 = vpack.i.bf16 %v456_v1, %v440_v62 }
  0x37   : > { %4805 = vrot.lane.b32.xlu0 %v4804_v57, %s5351_s4 }
  0x38   : > { %v4819_v8 = vpack.i.bf16 %v459_v2, %v457_v46  ;;  %v4824_v14 = vpack.i.bf16 %v460_v6, %v458_v4 }
  0x3a   : > { %4820 = vrot.lane.b32.xlu1 %v4819_v8, %s5351_s4 }
  0x3b   : > { %4810 = vrot.lane.b32.xlu0 %v4809_v3, %s5350_s30 }
  0x3e   : > { %4825 = vrot.lane.b32.xlu1 %v4824_v14, %s5350_s30 }
  0x3f   : > { %4815 = vrot.lane.b32.xlu0 %v4814_v19, %s5349_s29 }
  0x42   : > { %602 = vrot.lane.b32.xlu1 %v5470_v23, %s5352_s5 }
  0x43   : > { %600 = vrot.lane.b32.xlu0 %v5452_v16, %s5352_s5 }
  0x46   : > { %606 = vrot.lane.b32.xlu1 %v5535_v15, %s5352_s5 }
  0x47   : > { %604 = vrot.lane.b32.xlu0 %v5436_v10, %s5352_s5 }
  0x4a   : > { %610 = vrot.lane.b32.xlu1 %v5490_v35, %s5352_s5 }
  0x4b   : > { %608 = vrot.lane.b32.xlu0 %v5455_v17, %s5352_s5 }
  0x4e   : > { %614 = vrot.lane.b32.xlu1 %v5545_v26, %s5352_s5 }
  0x4f   : > { %612 = vrot.lane.b32.xlu0 %v5439_v11, %s5352_s5 }
  0x52   : > { %618 = vrot.lane.b32.xlu1 %v5479_v28, %s5352_s5 }
  0x53   : > { %616 = vrot.lane.b32.xlu0 %v5464_v21, %s5352_s5 }
  0x56   : > { %622 = vrot.lane.b32.xlu1 %v5548_v27, %s5352_s5 }
  0x57   : > { %620 = vrot.lane.b32.xlu0 %v5442_v12, %s5352_s5 }
  0x5a   : > { %626 = vrot.lane.b32.xlu1 %v5493_v36, %s5352_s5 }
  0x5b   : > { %624 = vrot.lane.b32.xlu0 %v5467_v22, %s5352_s5 }
  0x5e   : > { %630 = vrot.lane.b32.xlu1 %v5551_v29, %s5352_s5 }
  0x5f   : > { %628 = vrot.lane.b32.xlu0 %v5445_v13, %s5352_s5 }
  0x62   : > { %1042 = vrot.lane.b32.xlu1 %v5470_v23, %s5353_s6 }
  0x63   : > { %1040 = vrot.lane.b32.xlu0 %v5452_v16, %s5353_s6 }
  0x66   : > { %1046 = vrot.lane.b32.xlu1 %v5535_v15, %s5353_s6 }
  0x67   : > { %1044 = vrot.lane.b32.xlu0 %v5436_v10, %s5353_s6 }
  0x6a   : > { %1050 = vrot.lane.b32.xlu1 %v5490_v35, %s5353_s6 }
  0x6b   : > { %1048 = vrot.lane.b32.xlu0 %v5455_v17, %s5353_s6 }
  0x6e   : > { %1054 = vrot.lane.b32.xlu1 %v5545_v26, %s5353_s6 }
  0x6f   : > { %1052 = vrot.lane.b32.xlu0 %v5439_v11, %s5353_s6 }
  0x72   : > { %1058 = vrot.lane.b32.xlu1 %v5479_v28, %s5353_s6 }
  0x73   : > { %1056 = vrot.lane.b32.xlu0 %v5464_v21, %s5353_s6 }
  0x76   : > { %1062 = vrot.lane.b32.xlu1 %v5548_v27, %s5353_s6 }
  0x77   : > { %1060 = vrot.lane.b32.xlu0 %v5442_v12, %s5353_s6 }
  0x7a   : > { %1066 = vrot.lane.b32.xlu1 %v5493_v36, %s5353_s6 }
  0x7b   : > { %1064 = vrot.lane.b32.xlu0 %v5467_v22, %s5353_s6 }
  0x7e   : > { %1070 = vrot.lane.b32.xlu1 %v5551_v29, %s5353_s6 }
  0x7f   : > { %1068 = vrot.lane.b32.xlu0 %v5445_v13, %s5353_s6 }
  0x9a   : > { %v5669_v20 = vpop.permute.xlu1 %4780 }
  0x9b   : > { %8371 = vst [vmem:[#allocation17_spill] sm:$0xff] %v5669_v20 }
  0x9c   : > { %v5671_v24 = vpop.permute.xlu0 %4770 }
  0x9d   : > { %8372 = vst [vmem:[#allocation18_spill] sm:$0xff] %v5671_v24  ;;  %v8275_v24 = vrot.slane %v5493_v36, 1 }
  0x9e   : > { %v5673_v31 = vpop.permute.xlu1 %4790 }
  0x9f   : > { %8373 = vst [vmem:[#allocation19_spill] sm:$0xff] %v5673_v31  ;;  %v8272_v31 = vrot.slane %v5490_v35, 1 }
  0xa1   : > { %v5675_v32 = vpop.permute.xlu0 %4775 }
  0xa2   : > { %8374 = vst [vmem:[#allocation20_spill] sm:$0xff] %v5675_v32 }
  0xa4   : > { %v5677_v33 = vpop.permute.xlu1 %4795 }
  0xa5   : > { %8375 = vst [vmem:[#allocation21_spill] sm:$0xff] %v5677_v33  ;;  %v5679_v34 = vpop.permute.xlu0 %4785 }
  0xa6   : > { %8376 = vst [vmem:[#allocation22_spill] sm:$0xff] %v5679_v34 }
  0xa8   : > { %v5681_v37 = vpop.permute.xlu1 %4800 }
  0xa9   : > { %8377 = vst [vmem:[#allocation23_spill] sm:$0xff] %v5681_v37  ;;  %v5683_v38 = vpop.permute.xlu0 %4805  ;;  %v1503_v37 = vrot.slane %v5464_v21, 1  ;;  %v1512_v21 = vrot.slane %v5467_v22, 1 }
  0xaa   : > { %8378 = vst [vmem:[#allocation24_spill] sm:$0xff] %v5683_v38 }
  0xac   : > { %v5685_v39 = vpop.permute.xlu1 %4820 }
  0xad   : > { %8379 = vst [vmem:[#allocation25_spill] sm:$0xff] %v5685_v39  ;;  %v5687_v40 = vpop.permute.xlu0 %4810 }
  0xae   : > { %8380 = vst [vmem:[#allocation26_spill] sm:$0xff] %v5687_v40 }
  0xb0   : > { %v5689_v41 = vpop.permute.xlu1 %4825 }
  0xb1   : > { %8381 = vst [vmem:[#allocation27_spill] sm:$0xff] %v5689_v41  ;;  %v5691_v42 = vpop.permute.xlu0 %4815 }
  0xb2   : > { %8382 = vst [vmem:[#allocation28_spill] sm:$0xff] %v5691_v42 }
  0xb4   : > { %v603_v43 = vpop.permute.xlu1 %602 }
  0xb5   : > { %v601_v44 = vpop.permute.xlu0 %600 }
  0xb8   : > { %v607_v45 = vpop.permute.xlu1 %606 }
  0xb9   : > { %v605_v48 = vpop.permute.xlu0 %604 }
  0xbc   : > { %v611_v49 = vpop.permute.xlu1 %610 }
  0xbd   : > { %v609_v50 = vpop.permute.xlu0 %608 }
  0xc0   : > { %v615_v51 = vpop.permute.xlu1 %614 }
  0xc1   : > { %v613_v52 = vpop.permute.xlu0 %612 }
  0xc4   : > { %v619_v53 = vpop.permute.xlu1 %618 }
  0xc5   : > { %v617_v54 = vpop.permute.xlu0 %616  ;;  %v716_v57 = vcombine.low %v603_v43, %v619_v53  ;;  %v717_v58 = vcombine.high %v603_v43, %v619_v53 }
  0xc6   : > { %v648_v59 = vcombine.low %v601_v44, %v617_v54  ;;  %v649_v62 = vcombine.high %v601_v44, %v617_v54 }
  0xc7   : > { %v5694_v8 = vrot.slane %v716_v57, %v5433_v9  ;;  %v5697_v14 = vrot.slane %v717_v58, %v5433_v9 }
  0xc8   : > { %v623_v55 = vpop.permute.xlu1 %622  ;;  %v5715_v53 = vrot.slane %v649_v62, %v5433_v9 }
  0xc9   : > { %v621_v56 = vpop.permute.xlu0 %620  ;;  %v852_v19 = vcombine.low %v607_v45, %v623_v55  ;;  %v853_v5 = vcombine.high %v607_v45, %v623_v55 }
  0xca   : > { %v784_v55 = vcombine.low %v605_v48, %v621_v56  ;;  %v785_v57 = vcombine.high %v605_v48, %v621_v56 }
  0xcc   : > { %v627_v1 = vpop.permute.xlu1 %626 }
  0xcd   : > { %v625_v46 = vpop.permute.xlu0 %624  ;;  %v732_v2 = vcombine.low %v611_v49, %v627_v1  ;;  %v733_v3 = vcombine.high %v611_v49, %v627_v1 }
  0xce   : > { %v664_v4 = vcombine.low %v609_v50, %v625_v46  ;;  %v665_v6 = vcombine.high %v609_v50, %v625_v46  ;;  %v5712_v50 = vrot.slane %v648_v59, %v5433_v9  ;;  %v5722_v46 = vrot.slane %v852_v19, %v5433_v9 }
  0xcf   : > { %v5700_v41 = vrot.slane %v732_v2, %v5433_v9  ;;  %v5703_v43 = vrot.slane %v733_v3, %v5433_v9  ;;  %v5725_v2 = vrot.slane %v853_v5, %v5433_v9 }
  0xd0   : > { %v5706_v44 = vrot.slane %v664_v4, %v5433_v9  ;;  %v5709_v49 = vrot.slane %v665_v6, %v5433_v9  ;;  %v631_v54 = vpop.permute.xlu1 %630 }
  0xd1   : > { %v629_v45 = vpop.permute.xlu0 %628  ;;  %v749_v58 = vcombine.high %v5694_v8, %v5700_v41  ;;  %v765_v1 = vcombine.high %v5697_v14, %v5703_v43  ;;  %v868_v3 = vcombine.low %v615_v51, %v631_v54  ;;  %v869_v48 = vcombine.high %v615_v51, %v631_v54 }
  0xd2   : > { %v681_v59 = vcombine.high %v5712_v50, %v5706_v44  ;;  %v697_v62 = vcombine.high %v5715_v53, %v5709_v49  ;;  %v800_v56 = vcombine.low %v613_v52, %v629_v45  ;;  %v801_v4 = vcombine.high %v613_v52, %v629_v45 }
  0xd3   : > { %v5736_v19 = vrot.slane %v749_v58, %v5457_v18  ;;  %v5739_v5 = vrot.slane %v765_v1, %v5457_v18  ;;  %v5748_v51 = vrot.slane %v868_v3, %v5433_v9  ;;  %v5751_v52 = vrot.slane %v869_v48, %v5433_v9 }
  0xd4   : > { %v5731_v6 = vpop.permute.xlu1 %1042  ;;  %v5742_v47 = vrot.slane %v681_v59, %v5457_v18  ;;  %v5745_v42 = vrot.slane %v697_v62, %v5457_v18  ;;  %v5754_v54 = vrot.slane %v800_v56, %v5433_v9  ;;  %v5757_v45 = vrot.slane %v801_v4, %v5433_v9 }
  0xd5   : > { %v5733_v61 = vpop.permute.xlu0 %1040  ;;  %v5760_v58 = vrot.slane %v784_v55, %v5433_v9  ;;  %v5763_v1 = vrot.slane %v785_v57, %v5433_v9  ;;  %v4834_v59 = vpack.i.bf16 %v5739_v5, %v5736_v19  ;;  %v885_v3 = vcombine.high %v5722_v46, %v5748_v51 }
  0xd6   : > { %v4829_v62 = vpack.i.bf16 %v5745_v42, %v5742_v47  ;;  %v901_v48 = vcombine.high %v5725_v2, %v5751_v52 }
  0xd7   : > { %v817_v56 = vcombine.high %v5760_v58, %v5754_v54  ;;  %v833_v55 = vcombine.high %v5763_v1, %v5757_v45  ;;  %4835 = vrot.lane.b32.xlu0 %v4834_v59, %s5349_s29  ;;  %v5784_v25 = vrot.slane %v885_v3, %v5457_v18 }
  0xd8   : > { %v5778_v57 = vpop.permute.xlu1 %1046  ;;  %4830 = vrot.lane.b32.xlu1 %v4829_v62, %s5349_s29  ;;  %v5787_v40 = vrot.slane %v901_v48, %v5457_v18 }
  0xd9   : > { %v5780_v4 = vpop.permute.xlu0 %1044  ;;  %v5790_v0 = vrot.slane %v817_v56, %v5457_v18  ;;  %v5793_v20 = vrot.slane %v833_v55, %v5457_v18  ;;  %v1485_v56 = vrot.slane %v5452_v16, 1  ;;  %v8270_v55 = vrot.slane %v5470_v23, 1 }
  0xda   : > { %v4844_v59 = vpack.i.bf16 %v5787_v40, %v5784_v25  ;;  %v1494_v16 = vrot.slane %v5455_v17, 1 }
  0xdb   : > { %v4839_v39 = vpack.i.bf16 %v5793_v20, %v5790_v0 }
  0xdc   : > { %v1051_v38 = vpop.permute.xlu1 %1050  ;;  %4845 = vrot.lane.b32.xlu0 %v4844_v59, %s5349_s29  ;;  %v5812_v59 = vsel %vm1484_vm0, %v1485_v56, %v8270_v55  ;;  %v5828_v56 = vsel %vm1484_vm0, %v1494_v16, %v8272_v31  ;;  %v5838_v55 = vsel %vm1484_vm0, %v1512_v21, %v8275_v24  ;;  %v748_v16 = vcombine.low %v5694_v8, %v5700_v41 }
  0xdd   : > { %v1049_v62 = vpop.permute.xlu0 %1048  ;;  %4840 = vrot.lane.b32.xlu1 %v4839_v39, %s5349_s29  ;;  %8383 = vst [vmem:[#allocation29_spill] sm:$0xff] %v5812_v59  ;;  %v5817_v39 = vsel %vm1484_vm0, %v1503_v37, %v8269_v30  ;;  %8385 = vst [vmem:[#allocation31_spill] sm:$0xff] %v5838_v55  ;;  %v764_v31 = vcombine.low %v5697_v14, %v5703_v43 }
  0xde   : > { %8384 = vst [vmem:[#allocation30_spill] sm:$0xff] %v5817_v39  ;;  %v1537_v63 = vcombine.low %v5812_v59, %v5817_v39  ;;  %v1538_v37 = vcombine.high %v5812_v59, %v5817_v39 }
  0xe0   : > { %v5801_v3 = vpop.permute.xlu1 %1054  ;;  %v5846_v39 = vrot.slane %v1537_v63, %v5433_v9 }
  0xe1   : > { %v5803_v48 = vpop.permute.xlu0 %1052 }
  0xe4   : > { %v1059_v7 = vpop.permute.xlu1 %1058 }
  0xe5   : > { %v1057_v32 = vpop.permute.xlu0 %1056  ;;  %v1156_v30 = vcombine.low %v5731_v6, %v1059_v7  ;;  %v1157_v22 = vcombine.high %v5731_v6, %v1059_v7  ;;  %v680_v7 = vcombine.low %v5712_v50, %v5706_v44  ;;  %v696_v6 = vcombine.low %v5715_v53, %v5709_v49 }
  0xe6   : > { %v1088_v21 = vcombine.low %v5733_v61, %v1057_v32  ;;  %v1089_v24 = vcombine.high %v5733_v61, %v1057_v32 }
  0xe7   : > { %v5856_v63 = vrot.slane %v1156_v30, %v5433_v9  ;;  %v5859_v17 = vrot.slane %v1157_v22, %v5433_v9 }
  0xe8   : > { %v1063_v60 = vpop.permute.xlu1 %1062  ;;  %v5876_v30 = vrot.slane %v1088_v21, %v5433_v9 }
  0xe9   : > { %v1061_v33 = vpop.permute.xlu0 %1060  ;;  %v1292_v44 = vcombine.low %v5778_v57, %v1063_v60  ;;  %v1293_v49 = vcombine.high %v5778_v57, %v1063_v60  ;;  %v5882_v57 = vrot.slane %v680_v7, %v5457_v18 }
  0xea   : > { %v1225_v22 = vcombine.high %v5780_v4, %v1061_v33 }
  0xeb   : > { %8386 = vst [vmem:[#allocation32_spill] sm:$0xff] %v5882_v57 }
  0xec   : > { %v1067_v34 = vpop.permute.xlu1 %1066 }
  0xed   : > { %v1065_v41 = vpop.permute.xlu0 %1064  ;;  %v1172_v8 = vcombine.low %v1051_v38, %v1067_v34  ;;  %v1173_v59 = vcombine.high %v1051_v38, %v1067_v34  ;;  %v5879_v38 = vrot.slane %v1089_v24, %v5433_v9  ;;  %v5894_v24 = vrot.slane %v1292_v44, %v5433_v9 }
  0xee   : > { %v1104_v14 = vcombine.low %v1049_v62, %v1065_v41  ;;  %v1105_v43 = vcombine.high %v1049_v62, %v1065_v41  ;;  %v5885_v62 = vrot.slane %v696_v6, %v5457_v18 }
  0xef   : > { %v5864_v50 = vrot.slane %v1172_v8, %v5433_v9  ;;  %v5867_v61 = vrot.slane %v1173_v59, %v5433_v9  ;;  %v1224_v59 = vcombine.low %v5780_v4, %v1061_v33  ;;  %v5897_v8 = vrot.slane %v1293_v49, %v5433_v9 }
  0xf0   : > { %v5870_v32 = vrot.slane %v1104_v14, %v5433_v9  ;;  %v5873_v34 = vrot.slane %v1105_v43, %v5433_v9  ;;  %v1071_v53 = vpop.permute.xlu1 %1070 }
  0xf1   : > { %v1069_v60 = vpop.permute.xlu0 %1068  ;;  %v1189_v41 = vcombine.high %v5856_v63, %v5864_v50  ;;  %v1205_v21 = vcombine.high %v5859_v17, %v5867_v61  ;;  %v1308_v33 = vcombine.low %v5801_v3, %v1071_v53  ;;  %v1309_v4 = vcombine.high %v5801_v3, %v1071_v53 }
  0xf2   : > { %v1121_v7 = vcombine.high %v5876_v30, %v5870_v32  ;;  %v1137_v6 = vcombine.high %v5879_v38, %v5873_v34  ;;  %v1240_v14 = vcombine.low %v5803_v48, %v1069_v60  ;;  %v1241_v43 = vcombine.high %v5803_v48, %v1069_v60 }
  0xf3   : > { %v5908_v44 = vrot.slane %v1189_v41, %v5457_v18  ;;  %v5911_v49 = vrot.slane %v1205_v21, %v5457_v18  ;;  %v5920_v26 = vrot.slane %v1308_v33, %v5433_v9  ;;  %v5923_v3 = vrot.slane %v1309_v4, %v5433_v9 }
  0xf4   : > { %v5914_v29 = vrot.slane %v1121_v7, %v5457_v18  ;;  %v5917_v27 = vrot.slane %v1137_v6, %v5457_v18  ;;  %v5926_v48 = vrot.slane %v1240_v14, %v5433_v9  ;;  %v5929_v53 = vrot.slane %v1241_v43, %v5433_v9 }
  0xf5   : > { %8387 = vst [vmem:[#allocation33_spill] sm:$0xff] %v5908_v44  ;;  %8388 = vst [vmem:[#allocation34_spill] sm:$0xff] %v5911_v49  ;;  %v5932_v60 = vrot.slane %v1224_v59, %v5433_v9  ;;  %v5935_v41 = vrot.slane %v1225_v22, %v5433_v9  ;;  %v4854_v21 = vpack.i.bf16 %v5911_v49, %v5908_v44 }
  0xf6   : > { %8389 = vst [vmem:[#allocation35_spill] sm:$0xff] %v5914_v29  ;;  %8390 = vst [vmem:[#allocation36_spill] sm:$0xff] %v5917_v27  ;;  %v4849_v7 = vpack.i.bf16 %v5917_v27, %v5914_v29  ;;  %v1325_v6 = vcombine.high %v5894_v24, %v5920_v26  ;;  %v1341_v33 = vcombine.high %v5897_v8, %v5923_v3  ;;  %v8392_v29 = vrot.slane %v5436_v10, 1 }
  0xf7   : > { %v5946_v4 = vrot.slane %v1538_v37, %v5433_v9  ;;  %v1553_v59 = vcombine.low %v5828_v56, %v5838_v55  ;;  %v1257_v22 = vcombine.high %v5932_v60, %v5926_v48  ;;  %v1273_v14 = vcombine.high %v5935_v41, %v5929_v53  ;;  %4855 = vrot.lane.b32.xlu0 %v4854_v21, %s5349_s29 }
  0xf8   : > { %v5956_v43 = vrot.slane %v748_v16, %v5457_v18  ;;  %v5959_v49 = vrot.slane %v764_v31, %v5457_v18  ;;  %4850 = vrot.lane.b32.xlu1 %v4849_v7, %s5349_s29  ;;  %v5963_v37 = vrot.slane %v1325_v6, %v5457_v18  ;;  %v5966_v44 = vrot.slane %v1341_v33, %v5457_v18 }
  0xf9   : > { %v1554_v27 = vcombine.high %v5828_v56, %v5838_v55  ;;  %v8393_v21 = vrot.slane %v5470_v23, 1  ;;  %v5978_v31 = vrot.slane %v1257_v22, %v5457_v18  ;;  %v5981_v7 = vrot.slane %v1273_v14, %v5457_v18 }
  0xfa   : > { %8391 = vst [vmem:[#allocation37_spill] sm:$0xff] %v5956_v43  ;;  %v8394_v6 = vmov 0.0   ;;  %v884_v55 = vcombine.low %v5722_v46, %v5748_v51  ;;  %v816_v23 = vcombine.low %v5760_v58, %v5754_v54  ;;  %v4864_v22 = vpack.i.bf16 %v5966_v44, %v5963_v37 }
  0xfb   : > { %v5975_v16 = vsel %vm1484_vm0, %v8393_v21, %v8392_v29  ;;  %v712_v33 = vcombine.high %v5882_v57, %v8394_v6  ;;  %v714_v15 = vcombine.high %v5885_v62, %v8394_v6  ;;  %v832_v29 = vcombine.low %v5763_v1, %v5757_v45 }
  0xfc   : > { %v900_v14 = vcombine.low %v5725_v2, %v5751_v52  ;;  %v4859_v21 = vpack.i.bf16 %v5981_v7, %v5978_v31  ;;  %v780_v57 = vcombine.high %v5956_v43, %v8394_v6  ;;  %v782_v46 = vcombine.high %v5959_v49, %v8394_v6  ;;  %4865 = vrot.lane.b32.xlu0 %v4864_v22, %s5349_s29 }
  0xfd   : > { %v1561_v51 = vrot.slane %v1553_v59, %v5433_v9  ;;  %v1568_v54 = vrot.slane %v1554_v27, %v5433_v9  ;;  %v8395_v45 = vrot.slane %v5439_v11, 1  ;;  %v8396_v58 = vrot.slane %v5490_v35, 1 }
  0xfe   : > { %v8397_v52 = vrot.slane %v5442_v12, 1  ;;  %v8398_v1 = vrot.slane %v5479_v28, 1  ;;  %4860 = vrot.lane.b32.xlu1 %v4859_v21, %s5349_s29  ;;  %v4869_v22 = vpack.i.bf16 %v714_v15, %v712_v33  ;;  %v713_v27 = vcombine.high %v5742_v47, %v8394_v6 }
  0xff   : > { %v6011_v2 = vsel %vm1484_vm0, %v8396_v58, %v8395_v45  ;;  %v715_v59 = vcombine.high %v5745_v42, %v8394_v6  ;;  %v1515_v35 = vrot.slane %v5445_v13, 1  ;;  %v781_v45 = vcombine.high %v5736_v19, %v8394_v6 }
 0x100   : > { %v6018_v43 = vsel %vm1484_vm0, %v8398_v1, %v8397_v52  ;;  %v783_v28 = vcombine.high %v5739_v5, %v8394_v6  ;;  %v6031_v58 = vrot.slane %v816_v23, %v5457_v18  ;;  %v6034_v21 = vrot.slane %v832_v29, %v5457_v18  ;;  %4870 = vrot.lane.b32.xlu0 %v4869_v22, %s5351_s4 }
 0x101   : > { %v4879_v15 = vpack.i.bf16 %v782_v46, %v780_v57  ;;  %v6037_v47 = vrot.slane %v884_v55, %v5457_v18  ;;  %v6040_v42 = vrot.slane %v900_v14, %v5457_v18  ;;  %v1605_v33 = vcombine.low %v5975_v16, %v6018_v43 }
 0x102   : > { %8399 = vst [vmem:[#allocation38_spill] sm:$0xff] %v6031_v58  ;;  %8400 = vst [vmem:[#allocation39_spill] sm:$0xff] %v6034_v21  ;;  %v1570_v19 = vcombine.high %v5846_v39, %v1561_v51  ;;  %v1586_v5 = vcombine.high %v5946_v4, %v1568_v54  ;;  %v1569_v23 = vcombine.low %v5846_v39, %v1561_v51  ;;  %v8403_v46 = vrot.slane %v5493_v36, 1 }
 0x103   : > { %8401 = vst [vmem:[#allocation40_spill] sm:$0xff] %v6037_v47  ;;  %8402 = vst [vmem:[#allocation41_spill] sm:$0xff] %v6040_v42  ;;  %v1606_v57 = vcombine.high %v5975_v16, %v6018_v43  ;;  %v1120_v55 = vcombine.low %v5876_v30, %v5870_v32  ;;  %v1136_v29 = vcombine.low %v5879_v38, %v5873_v34  ;;  %4880 = vrot.lane.b32.xlu1 %v4879_v15, %s5351_s4 }
 0x104   : > { %v1585_v14 = vcombine.low %v5946_v4, %v1568_v54  ;;  %v6061_v52 = vsel %vm1484_vm0, %v8403_v46, %v1515_v35  ;;  %v4874_v39 = vpack.i.bf16 %v715_v59, %v713_v27  ;;  %v4884_v51 = vpack.i.bf16 %v783_v28, %v781_v45 }
 0x105   : > { %v848_v1 = vcombine.high %v6031_v58, %v8394_v6  ;;  %v850_v32 = vcombine.high %v6034_v21, %v8394_v6  ;;  %v1188_v34 = vcombine.low %v5856_v63, %v5864_v50  ;;  %v1204_v30 = vcombine.low %v5859_v17, %v5867_v61  ;;  %v5278_v58 = vld [vmem:[%s5431_s28 + $0x18] sm:$0xff] }
 0x106   : > { %v916_v36 = vcombine.high %v6037_v47, %v8394_v6  ;;  %v918_v38 = vcombine.high %v6040_v42, %v8394_v6  ;;  %4875 = vrot.lane.b32.xlu0 %v4874_v39, %s5350_s30  ;;  %v6077_v4 = vrot.slane %v1569_v23, %v5457_v18  ;;  %v6080_v54 = vrot.slane %v1605_v33, %v5433_v9 }
 0x107   : > { %v1621_v63 = vcombine.low %v6011_v2, %v6061_v52  ;;  %v1622_v17 = vcombine.high %v6011_v2, %v6061_v52  ;;  %4885 = vrot.lane.b32.xlu1 %v4884_v51, %s5350_s30  ;;  %v849_v50 = vcombine.high %v5790_v0, %v8394_v6  ;;  %v6090_v61 = vrot.slane %v1120_v55, %v5457_v18 }
 0x108   : > { %v6093_v22 = vrot.slane %v1136_v29, %v5457_v18  ;;  %v6096_v27 = vrot.slane %v1585_v14, %v5457_v18  ;;  %v4889_v59 = vpack.i.bf16 %v850_v32, %v848_v1  ;;  %v851_v45 = vcombine.high %v5793_v20, %v8394_v6 }
 0x109   : > { %v917_v28 = vcombine.high %v5784_v25, %v8394_v6  ;;  %v919_v15 = vcombine.high %v5787_v40, %v8394_v6  ;;  %v4899_v0 = vpack.i.bf16 %v918_v38, %v916_v36  ;;  %v6105_v33 = vrot.slane %v1188_v34, %v5457_v18 }
 0x10a   : > { %v6108_v23 = vrot.slane %v1204_v30, %v5457_v18  ;;  %v6111_v55 = vrot.slane %v1606_v57, %v5433_v9  ;;  %4890 = vrot.lane.b32.xlu0 %v4889_v59, %s5351_s4  ;;  %v6115_v20 = vrot.slane %v1570_v19, %v5457_v18  ;;  %v6118_v25 = vrot.slane %v1586_v5, %v5457_v18 }
 0x10b   : > { %v6121_v40 = vrot.slane %v1621_v63, %v5433_v9  ;;  %v6124_v29 = vrot.slane %v1622_v17, %v5433_v9  ;;  %4900 = vrot.lane.b32.xlu1 %v4899_v0, %s5351_s4  ;;  %v1152_v57 = vcombine.high %v6090_v61, %v8394_v6  ;;  %v1154_v14 = vcombine.high %v6093_v22, %v8394_v6  ;;  %v8407_v63 = vld [vmem:[#allocation12_spill] sm:$0xff]  ;;  %v8410_v0 = vld [vmem:[#allocation33_spill] sm:$0xff] }
 0x10c   : > { %v6133_v19 = vcombine.high %v6077_v4, %v8394_v6  ;;  %v6137_v5 = vcombine.high %v6096_v27, %v8394_v6  ;;  %v1256_v46 = vcombine.low %v5932_v60, %v5926_v48  ;;  %v1272_v39 = vcombine.low %v5935_v41, %v5929_v53  ;;  %v8405_v60 = vld [vmem:[#allocation11_spill] sm:$0xff] }
 0x10d   : > { %v4894_v51 = vpack.i.bf16 %v851_v45, %v849_v50  ;;  %v4904_v1 = vpack.i.bf16 %v919_v15, %v917_v28  ;;  %v1324_v32 = vcombine.low %v5894_v24, %v5920_v26  ;;  %v1340_v34 = vcombine.low %v5897_v8, %v5923_v3  ;;  %v8404_v26 = vld [vmem:[#allocation9_spill] sm:$0xff]  ;;  %v8406_v41 = vld [vmem:[#allocation35_spill] sm:$0xff]  ;;  %v8409_v28 = vld [vmem:[#allocation36_spill] sm:$0xff] }
 0x10e   : > { %v1220_v30 = vcombine.high %v6105_v33, %v8394_v6  ;;  %v1222_v36 = vcombine.high %v6108_v23, %v8394_v6  ;;  %v1637_v48 = vcombine.low %v6080_v54, %v6121_v40  ;;  %v1653_v53 = vcombine.low %v6111_v55, %v6124_v29  ;;  %v8408_v50 = vld [vmem:[#allocation13_spill] sm:$0xff] }
 0x10f   : > { %4895 = vrot.lane.b32.xlu0 %v4894_v51, %s5350_s30  ;;  %v1490_v24 = vrot.slane %v8404_v26, 1  ;;  %v1499_v8 = vrot.slane %v8405_v60, 1  ;;  %4905 = vrot.lane.b32.xlu1 %v4904_v1, %s5350_s30  ;;  %v4909_v3 = vpack.i.bf16 %v1154_v14, %v1152_v57  ;;  %v1153_v38 = vcombine.high %v8406_v41, %v8394_v6  ;;  %v6164_v45 = vld [vmem:[%s5431_s28 + $0x20] sm:$0x3]  ;;  %v6177_v14 = vld [vmem:[%s5431_s28 + $0x48] sm:$0x3] }
 0x110   : > { %v1508_v17 = vrot.slane %v8407_v63, 1  ;;  %v1517_v59 = vrot.slane %v8408_v50, 1  ;;  %v1155_v15 = vcombine.high %v8409_v28, %v8394_v6  ;;  %v1221_v51 = vcombine.high %v8410_v0, %v8394_v6  ;;  %v6180_v1 = vld [vmem:[%s5431_s28 + $0x70] sm:$0x3]  ;;  %v8413_v41 = vld [vmem:[#allocation34_spill] sm:$0xff] }
 0x111   : > { %v6171_v26 = vrot.slane %v1256_v46, %v5457_v18  ;;  %v6174_v57 = vrot.slane %v1272_v39, %v5457_v18  ;;  %v4919_v60 = vpack.i.bf16 %v1222_v36, %v1220_v30  ;;  %v1223_v63 = vcombine.high %v8413_v41, %v8394_v6  ;;  %v6191_v0 = vld [vmem:[%s5431_s28 + $0x98] sm:$0x3] }
 0x112   : > { %v6185_v50 = vrot.slane %v1324_v32, %v5457_v18  ;;  %v6188_v28 = vrot.slane %v1340_v34, %v5457_v18  ;;  %v1638_v46 = vcombine.high %v6080_v54, %v6121_v40  ;;  %v8416_v39 = vrot.slane %v5436_v10, 1 }
 0x113   : > { %8411 = vst [vmem:[#allocation9_spill] sm:$0xff] %v6171_v26  ;;  %8412 = vst [vmem:[#allocation11_spill] sm:$0xff] %v6174_v57  ;;  %4910 = vrot.lane.b32.xlu0 %v4909_v3, %s5351_s4  ;;  %v8417_v36 = vrot.slane %v5439_v11, 1  ;;  %v1492_v34 = vrot.slane %v6164_v45, 1  ;;  %4920 = vrot.lane.b32.xlu1 %v4919_v60, %s5351_s4  ;;  %v8418_v41 = vrot.slane %v5442_v12, 1  ;;  %v6216_v10 = vsel %vm1484_vm0, %v1515_v35, %v1517_v59 }
 0x114   : > { %8414 = vst [vmem:[#allocation35_spill] sm:$0xff] %v6185_v50  ;;  %8415 = vst [vmem:[#allocation12_spill] sm:$0xff] %v6188_v28  ;;  %v6199_v30 = vsel %vm1484_vm0, %v8416_v39, %v1490_v24  ;;  %v1501_v54 = vrot.slane %v6177_v14, 1  ;;  %v1510_v11 = vrot.slane %v6180_v1, 1  ;;  %v4914_v40 = vpack.i.bf16 %v1155_v15, %v1153_v38 }
 0x115   : > { %v6204_v32 = vsel %vm1484_vm0, %v8417_v36, %v1499_v8  ;;  %v6211_v3 = vsel %vm1484_vm0, %v8418_v41, %v1508_v17  ;;  %v1288_v39 = vcombine.high %v6171_v26, %v8394_v6  ;;  %v1290_v60 = vcombine.high %v6174_v57, %v8394_v6 }
 0x116   : > { %v1519_v12 = vrot.slane %v6191_v0, 1  ;;  %v4924_v36 = vpack.i.bf16 %v1223_v63, %v1221_v51  ;;  %v1356_v13 = vcombine.high %v6185_v50, %v8394_v6  ;;  %v1358_v35 = vcombine.high %v6188_v28, %v8394_v6 }
 0x117   : > { %v1654_v41 = vcombine.high %v6111_v55, %v6124_v29  ;;  %4915 = vrot.lane.b32.xlu0 %v4914_v40, %s5350_s30  ;;  %v1673_v38 = vcombine.low %v6199_v30, %v6211_v3  ;;  %v1674_v15 = vcombine.high %v6199_v30, %v6211_v3  ;;  %v1689_v51 = vcombine.low %v6204_v32, %v6216_v10 }
 0x118   : > { %v1690_v63 = vcombine.high %v6204_v32, %v6216_v10  ;;  %4925 = vrot.lane.b32.xlu1 %v4924_v36, %s5350_s30  ;;  %v6242_v50 = vrot.slane %v1637_v48, %v5457_v18  ;;  %v6245_v55 = vsel %vm1484_vm0, %v1490_v24, %v1492_v34  ;;  %v6248_v29 = vsel %vm1484_vm0, %v1499_v8, %v1501_v54 }
 0x119   : > { %v6251_v40 = vsel %vm1484_vm0, %v1508_v17, %v1510_v11  ;;  %v4929_v28 = vpack.i.bf16 %v1290_v60, %v1288_v39  ;;  %v1289_v26 = vcombine.high %v5978_v31, %v8394_v6  ;;  %v1291_v57 = vcombine.high %v5981_v7, %v8394_v6 }
 0x11a   : > { %v6258_v36 = vsel %vm1484_vm0, %v1517_v59, %v1519_v12  ;;  %v4944_v48 = vpack.i.bf16 %v1358_v35, %v1356_v13  ;;  %v1357_v24 = vcombine.high %v5963_v37, %v8394_v6  ;;  %v1359_v8 = vcombine.high %v5966_v44, %v8394_v6 }
 0x11b   : > { %v6265_v17 = vrot.slane %v1653_v53, %v5457_v18  ;;  %4930 = vrot.lane.b32.xlu0 %v4929_v28, %s5351_s4  ;;  %v1681_v31 = vrot.slane %v1673_v38, %v5433_v9  ;;  %v1688_v34 = vrot.slane %v1674_v15, %v5433_v9  ;;  %v1697_v7 = vrot.slane %v1689_v51, %v5433_v9 }
 0x11c   : > { %v1704_v59 = vrot.slane %v1690_v63, %v5433_v9  ;;  %4945 = vrot.lane.b32.xlu1 %v4944_v48, %s5351_s4  ;;  %v1741_v37 = vcombine.low %v6245_v55, %v6251_v40  ;;  %v1742_v44 = vcombine.high %v6245_v55, %v6251_v40  ;;  %v1757_v53 = vcombine.low %v6248_v29, %v6258_v36 }
 0x11d   : > { %v1758_v28 = vcombine.high %v6248_v29, %v6258_v36  ;;  %v4934_v54 = vpack.i.bf16 %v1291_v57, %v1289_v26  ;;  %v4954_v11 = vpack.i.bf16 %v6118_v25, %v6115_v20  ;;  %v4939_v39 = vpack.i.bf16 %v6137_v5, %v6133_v19 }
 0x11e   : > { %v1602_v60 = vcombine.high %v6115_v20, %v8394_v6  ;;  %v4949_v12 = vpack.i.bf16 %v1359_v8, %v1357_v24  ;;  %v1604_v13 = vcombine.high %v6118_v25, %v8394_v6  ;;  %v1652_v35 = vrot.slane %v1638_v46, %v5457_v18 }
 0x11f   : > { %v1668_v38 = vrot.slane %v1654_v41, %v5457_v18  ;;  %4935 = vrot.lane.b32.xlu0 %v4934_v54, %s5350_s30  ;;  %v1669_v26 = vcombine.high %v6242_v50, %v8394_v6  ;;  %v1671_v57 = vcombine.high %v6265_v17, %v8394_v6  ;;  %v1705_v19 = vcombine.low %v1681_v31, %v1697_v7 }
 0x120   : > { %v1721_v5 = vcombine.low %v1688_v34, %v1704_v59  ;;  %4950 = vrot.lane.b32.xlu1 %v4949_v12, %s5350_s30  ;;  %v1749_v20 = vrot.slane %v1741_v37, %v5433_v9  ;;  %v1756_v25 = vrot.slane %v1742_v44, %v5433_v9  ;;  %v1765_v46 = vrot.slane %v1757_v53, %v5433_v9 }
 0x121   : > { %v1772_v41 = vrot.slane %v1758_v28, %v5433_v9  ;;  %v4959_v15 = vpack.i.bf16 %v1604_v13, %v1602_v60  ;;  %v1670_v51 = vcombine.high %v1652_v35, %v8394_v6  ;;  %v1672_v63 = vcombine.high %v1668_v38, %v8394_v6 }
 0x122   : > { %v1706_v48 = vcombine.high %v1681_v31, %v1697_v7  ;;  %v1722_v24 = vcombine.high %v1688_v34, %v1704_v59  ;;  %v6305_v8 = vrot.slane %v1705_v19, %v5457_v18  ;;  %v6308_v37 = vrot.slane %v1721_v5, %v5457_v18 }
 0x123   : > { %4940 = vrot.lane.b32.xlu0 %v4939_v39, %s5351_s4  ;;  %v4964_v44 = vpack.i.bf16 %v1671_v57, %v1669_v26  ;;  %v1773_v53 = vcombine.low %v1749_v20, %v1765_v46  ;;  %v1789_v28 = vcombine.low %v1756_v25, %v1772_v41  ;;  %v4974_v54 = vpack.i.bf16 %v1672_v63, %v1670_v51 }
 0x124   : > { %8419 = vst [vmem:[#allocation13_spill] sm:$0xff] %v6305_v8  ;;  %8420 = vst [vmem:[#allocation36_spill] sm:$0xff] %v6308_v37  ;;  %4955 = vrot.lane.b32.xlu1 %v4954_v11, %s5349_s29  ;;  %v4969_v60 = vpack.i.bf16 %v1668_v38, %v1652_v35  ;;  %v1720_v12 = vrot.slane %v1706_v48, %v5457_v18  ;;  %v1736_v31 = vrot.slane %v1722_v24, %v5457_v18  ;;  %v8423_v24 = vld [vmem:[#allocation29_spill] sm:$0xff] }
 0x125   : > { %v1737_v34 = vcombine.high %v6305_v8, %v8394_v6  ;;  %v1739_v7 = vcombine.high %v6308_v37, %v8394_v6  ;;  %v6320_v59 = vrot.slane %v1773_v53, %v5457_v18  ;;  %v6323_v11 = vrot.slane %v1789_v28, %v5457_v18  ;;  %v5266_v53 = vld [vmem:[%s5431_s28] sm:$0xff] }
 0x126   : > { %v1774_v39 = vcombine.high %v1749_v20, %v1765_v46  ;;  %v1790_v13 = vcombine.high %v1756_v25, %v1772_v41  ;;  %v4984_v35 = vpack.i.bf16 %v1736_v31, %v1720_v12  ;;  %v1738_v26 = vcombine.high %v1720_v12, %v8394_v6  ;;  %v6366_v12 = vld [vmem:[%s5431_s28 + $0x10] sm:$0xff] }
 0x127   : > { %4960 = vrot.lane.b32.xlu0 %v4959_v15, %s5350_s30  ;;  %8421 = vst [vmem:[#allocation33_spill] sm:$0xff] %v6320_v59  ;;  %8422 = vst [vmem:[#allocation34_spill] sm:$0xff] %v6323_v11  ;;  %v4979_v38 = vpack.i.bf16 %v1739_v7, %v1737_v34  ;;  %v1740_v57 = vcombine.high %v1736_v31, %v8394_v6  ;;  %v1805_v19 = vcombine.high %v6320_v59, %v8394_v6  ;;  %v5269_v7 = vld [vmem:[%s5431_s28 + $0x28] sm:$0xff] }
 0x128   : > { %4965 = vrot.lane.b32.xlu1 %v4964_v44, %s5351_s4  ;;  %v1807_v5 = vcombine.high %v6323_v11, %v8394_v6  ;;  %v1788_v15 = vrot.slane %v1774_v39, %v5457_v18  ;;  %v1804_v20 = vrot.slane %v1790_v13, %v5457_v18  ;;  %v8424_v44 = vld [vmem:[#allocation30_spill] sm:$0xff]  ;;  %v2810_v28 = vrot.slane %v5266_v53, 2  ;;  %v5270_v13 = vld [vmem:[%s5431_s28 + $0x30] sm:$0xff]  ;;  %v5276_v53 = vld [vmem:[%s5431_s28 + $0x80] sm:$0xff] }
 0x129   : > { %v4989_v25 = vpack.i.bf16 %v1740_v57, %v1738_v26  ;;  %v8297_v31 = vrot.slane %v6366_v12, 2  ;;  %v2819_v39 = vrot.slane %v5269_v7, 2  ;;  %v6384_v26 = vld [vmem:[%s5431_s28 + $0x38] sm:$0xff]  ;;  %v8442_v11 = vld [vmem:[#allocation5_spill] sm:$0xff]  ;;  %v2815_v21 = vrot.slane %v5278_v58, 2 }
 0x12a   : > { %v4994_v46 = vpack.i.bf16 %v1807_v5, %v1805_v19  ;;  %v1806_v41 = vcombine.high %v1788_v15, %v8394_v6  ;;  %v1808_v51 = vcombine.high %v1804_v20, %v8394_v6  ;;  %v4999_v63 = vpack.i.bf16 %v1804_v20, %v1788_v15  ;;  %v5272_v5 = vld [vmem:[%s5431_s28 + $0x50] sm:$0xff]  ;;  %v5273_v20 = vld [vmem:[%s5431_s28 + $0x58] sm:$0xff] }
 0x12b   : > { %4970 = vrot.lane.b32.xlu0 %v4969_v60, %s5349_s29  ;;  %v8296_v57 = vrot.slane %v6384_v26, 2  ;;  %v2828_v15 = vrot.slane %v5272_v5, 2 }
 0x12c   : > { %4975 = vrot.lane.b32.xlu1 %v4974_v54, %s5350_s30  ;;  %v5004_v48 = vpack.i.bf16 %v1808_v51, %v1806_v41  ;;  %v5267_v54 = vld [vmem:[%s5431_s28 + $0x8] sm:$0xff]  ;;  %v6402_v41 = vld [vmem:[%s5431_s28 + $0x60] sm:$0xff] }
 0x12d   : > { %v2811_v60 = vrot.slane %v5267_v54, 2  ;;  %v8295_v51 = vrot.slane %v6402_v41, 2 }
 0x12f   : > { %4980 = vrot.lane.b32.xlu0 %v4979_v38, %s5351_s4  ;;  %v6370_v34 = vsel %vm2809_vm1, %v2810_v28, %v2811_v60  ;;  %v6381_v38 = vsel %vm2809_vm1, %v2811_v60, %v8297_v31  ;;  %v2838_v28 = vrot.slane %v5276_v53, 2  ;;  %v6420_v60 = vld [vmem:[%s5431_s28 + $0x88] sm:$0xff] }
 0x130   : > { %4985 = vrot.lane.b32.xlu1 %v4984_v35, %s5349_s29  ;;  %v2820_v35 = vrot.slane %v5270_v13, 2  ;;  %8426 = vst [vmem:[#allocation29_spill] sm:$0xff] %v6381_v38  ;;  %v8294_v7 = vrot.slane %v6420_v60, 2 }
 0x132   : > { %v6388_v19 = vsel %vm2809_vm1, %v2819_v39, %v2820_v35  ;;  %v6433_v13 = vsel %vm2809_vm1, %v2838_v28, %v8294_v7 }
 0x133   : > { %4990 = vrot.lane.b32.xlu0 %v4989_v25, %s5350_s30  ;;  %8427 = vst [vmem:[#allocation30_spill] sm:$0xff] %v6388_v19  ;;  %v2829_v25 = vrot.slane %v5273_v20, 2  ;;  %8431 = vst [vmem:[#allocation44_spill] sm:$0xff] %v6433_v13 }
 0x134   : > { %4995 = vrot.lane.b32.xlu1 %v4994_v46, %s5351_s4  ;;  %v6399_v46 = vsel %vm2809_vm1, %v2820_v35, %v8296_v57 }
 0x135   : > { %v6417_v54 = vsel %vm2809_vm1, %v2829_v25, %v8295_v51 }
 0x136   : > { %8429 = vst [vmem:[#allocation42_spill] sm:$0xff] %v6417_v54 }
 0x137   : > { %5000 = vrot.lane.b32.xlu0 %v4999_v63, %s5349_s29  ;;  %v6406_v63 = vsel %vm2809_vm1, %v2828_v15, %v2829_v25 }
 0x138   : > { %5005 = vrot.lane.b32.xlu1 %v5004_v48, %s5350_s30  ;;  %v5275_v48 = vld [vmem:[%s5431_s28 + $0x78] sm:$0xff] }
 0x13b   : > { %1929 = vrot.lane.b32.xlu0 %v8423_v24, %s5352_s5 }
 0x13c   : > { %1931 = vrot.lane.b32.xlu1 %v5975_v16, %s5352_s5 }
 0x13f   : > { %1933 = vrot.lane.b32.xlu0 %v6199_v30, %s5352_s5 }
 0x140   : > { %2369 = vrot.lane.b32.xlu1 %v8423_v24, %s5353_s6  ;;  %v2837_v24 = vrot.slane %v5275_v48, 2 }
 0x142   : > { %v6424_v39 = vsel %vm2809_vm1, %v2837_v24, %v2838_v28  ;;  %v8438_v28 = vld [vmem:[#allocation22_spill] sm:$0xff] }
 0x143   : > { %2371 = vrot.lane.b32.xlu0 %v5975_v16, %s5353_s6  ;;  %v8425_v16 = vld [vmem:[#allocation31_spill] sm:$0xff]  ;;  %8430 = vst [vmem:[#allocation43_spill] sm:$0xff] %v6424_v39  ;;  %v4788_v7 = vunpack.i.h.bf16 %v8438_v28  ;;  %v4787_v51 = vunpack.i.l.bf16 %v8438_v28  ;;  %v8443_v28 = vld [vmem:[#allocation6_spill] sm:$0xff] }
 0x144   : > { %2377 = vrot.lane.b32.xlu1 %v5828_v56, %s5353_s6  ;;  %8428 = vst [vmem:[#allocation31_spill] sm:$0xff] %v6399_v46 }
 0x145   : > { %v558_v8 = vsel %vm557_vm2, %v8442_v11, %v4787_v51  ;;  %v563_v37 = vsel %vm557_vm2, %v8443_v28, %v4788_v7  ;;  %v8445_v11 = vld [vmem:[#allocation19_spill] sm:$0xff]  ;;  %v8446_v7 = vld [vmem:[#allocation20_spill] sm:$0xff] }
 0x146   : > { %v4793_v51 = vunpack.i.h.bf16 %v8445_v11  ;;  %v4792_v47 = vunpack.i.l.bf16 %v8445_v11  ;;  %v4778_v28 = vunpack.i.h.bf16 %v8446_v7  ;;  %v5279_v11 = vld [vmem:[%s5431_s28 + $0x40] sm:$0xff] }
 0x147   : > { %2379 = vrot.lane.b32.xlu0 %v6011_v2, %s5353_s6 }
 0x148   : > { %2385 = vrot.lane.b32.xlu1 %v8424_v44, %s5353_s6 }
 0x149   : > { %v6439_v35 = vpop.permute.xlu0 %4835 }
 0x14a   : > { %v6441_v5 = vpop.permute.xlu1 %4830 }
 0x14b   : > { %2387 = vrot.lane.b32.xlu0 %v6018_v43, %s5353_s6 }
 0x14c   : > { %2393 = vrot.lane.b32.xlu1 %v8425_v16, %s5353_s6 }
 0x14e   : > { %v6449_v15 = vpop.permute.xlu0 %4845 }
 0x14f   : > { %2395 = vrot.lane.b32.xlu0 %v6061_v52, %s5353_s6  ;;  %8432 = vst [vmem:[#allocation45_spill] sm:$0xff] %v6449_v15  ;;  %v6453_v20 = vpop.permute.xlu1 %4840 }
 0x150   : > { %3254 = vrot.lane.b32.xlu1 %v6370_v34, %s5352_s5  ;;  %8433 = vst [vmem:[#allocation46_spill] sm:$0xff] %v6453_v20 }
 0x153   : > { %3256 = vrot.lane.b32.xlu0 %v6381_v38, %s5352_s5 }
 0x154   : > { %3262 = vrot.lane.b32.xlu1 %v6388_v19, %s5352_s5 }
 0x157   : > { %3264 = vrot.lane.b32.xlu0 %v6399_v46, %s5352_s5 }
 0x158   : > { %3270 = vrot.lane.b32.xlu1 %v6406_v63, %s5352_s5 }
 0x15b   : > { %3272 = vrot.lane.b32.xlu0 %v6417_v54, %s5352_s5 }
 0x15c   : > { %3278 = vrot.lane.b32.xlu1 %v6424_v39, %s5352_s5 }
 0x15f   : > { %3280 = vrot.lane.b32.xlu0 %v6433_v13, %s5352_s5 }
 0x160   : > { %1937 = vrot.lane.b32.xlu1 %v5828_v56, %s5352_s5 }
 0x163   : > { %1939 = vrot.lane.b32.xlu0 %v6011_v2, %s5352_s5 }
 0x164   : > { %1945 = vrot.lane.b32.xlu1 %v8424_v44, %s5352_s5 }
 0x167   : > { %1947 = vrot.lane.b32.xlu0 %v6018_v43, %s5352_s5 }
 0x168   : > { %1953 = vrot.lane.b32.xlu1 %v8425_v16, %s5352_s5 }
 0x169   : > { %v6459_v56 = vpop.permute.xlu0 %4855 }
 0x16a   : > { %v6461_v2 = vpop.permute.xlu1 %4850 }
 0x16b   : > { %1955 = vrot.lane.b32.xlu0 %v6061_v52, %s5352_s5 }
 0x16c   : > { %3694 = vrot.lane.b32.xlu1 %v6370_v34, %s5353_s6 }
 0x16e   : > { %v6467_v43 = vpop.permute.xlu0 %4865 }
 0x16f   : > { %3696 = vrot.lane.b32.xlu0 %v6381_v38, %s5353_s6  ;;  %8434 = vst [vmem:[#allocation47_spill] sm:$0xff] %v6467_v43 }
 0x170   : > { %3702 = vrot.lane.b32.xlu1 %v6388_v19, %s5353_s6  ;;  %v6469_v44 = vpop.permute.xlu1 %4860 }
 0x171   : > { %8435 = vst [vmem:[#allocation48_spill] sm:$0xff] %v6469_v44  ;;  %v8444_v44 = vld [vmem:[#allocation18_spill] sm:$0xff] }
 0x172   : > { %v6475_v52 = vpop.permute.xlu0 %4870  ;;  %v4773_v43 = vunpack.i.h.bf16 %v8444_v44  ;;  %v4772_v15 = vunpack.i.l.bf16 %v8444_v44 }
 0x173   : > { %3704 = vrot.lane.b32.xlu0 %v6399_v46, %s5353_s6  ;;  %v2817_v46 = vrot.slane %v6164_v45, 2  ;;  %v4873_v38 = vunpack.i.h.bf16 %v6475_v52  ;;  %v8453_v45 = vld [vmem:[#allocation32_spill] sm:$0xff] }
 0x174   : > { %3710 = vrot.lane.b32.xlu1 %v6406_v63, %s5353_s6  ;;  %v564_v44 = vsel %vm559_vm3, %v563_v37, %v4773_v43  ;;  %v4872_v37 = vunpack.i.l.bf16 %v6475_v52 }
 0x175   : > { %v6477_v16 = vpop.permute.xlu1 %4880 }
 0x177   : > { %3712 = vrot.lane.b32.xlu0 %v6417_v54, %s5353_s6 }
 0x178   : > { %3718 = vrot.lane.b32.xlu1 %v6424_v39, %s5353_s6  ;;  %v6483_v25 = vpop.permute.xlu0 %4875 }
 0x179   : > { %v6485_v48 = vpop.permute.xlu1 %4885  ;;  %v4877_v39 = vunpack.i.l.bf16 %v6483_v25 }
 0x17b   : > { %3720 = vrot.lane.b32.xlu0 %v6433_v13, %s5353_s6  ;;  %v5280_v13 = vld [vmem:[%s5431_s28 + $0x68] sm:$0xff] }
 0x17c   : > { %2373 = vrot.lane.b32.xlu1 %v6199_v30, %s5353_s6  ;;  %v6491_v24 = vpop.permute.xlu0 %4890  ;;  %v8441_v30 = vld [vmem:[#allocation21_spill] sm:$0xff]  ;;  %v2833_v20 = vrot.slane %v5280_v13, 2  ;;  %v6555_v13 = vsel %vm561_vm4, %v564_v44, %v4793_v51  ;;  %v8451_v51 = vrot.slane %v6384_v26, 2  ;;  %v1016_v26 = vsel %vm557_vm2, %v8453_v45, %v4872_v37 }
 0x17d   : > { %8436 = vst [vmem:[#allocation49_spill] sm:$0xff] %v6491_v24  ;;  %v6493_v53 = vpop.permute.xlu1 %4900  ;;  %v4797_v59 = vunpack.i.l.bf16 %v8441_v30  ;;  %v8447_v24 = vld [vmem:[#allocation8_spill] sm:$0xff]  ;;  %v8456_v37 = vld [vmem:[#allocation37_spill] sm:$0xff] }
 0x17e   : > { %8437 = vst [vmem:[#allocation50_spill] sm:$0xff] %v6493_v53  ;;  %v2824_v53 = vrot.slane %v5279_v11, 2  ;;  %v8450_v11 = vld [vmem:[#allocation23_spill] sm:$0xff] }
 0x17f   : > { %2375 = vrot.lane.b32.xlu0 %v6245_v55, %s5353_s6  ;;  %v6532_v58 = vsel %vm557_vm2, %v8447_v24, %v4797_v59 }
 0x180   : > { %2381 = vrot.lane.b32.xlu1 %v6204_v32, %s5353_s6  ;;  %v6571_v44 = vsel %vm2809_vm1, %v8451_v51, %v2824_v53  ;;  %v4878_v51 = vunpack.i.h.bf16 %v6483_v25 }
 0x181   : > { %v6501_v57 = vpop.permute.xlu0 %4895  ;;  %v6503_v31 = vpop.permute.xlu1 %4905 }
 0x182   : > { %8439 = vst [vmem:[#allocation22_spill] sm:$0xff] %v6501_v57  ;;  %8440 = vst [vmem:[#allocation51_spill] sm:$0xff] %v6503_v31  ;;  %v4798_v57 = vunpack.i.h.bf16 %v8441_v30  ;;  %v560_v30 = vsel %vm559_vm3, %v558_v8, %v4772_v15  ;;  %v8448_v8 = vrot.slane %v6366_v12, 2  ;;  %v8449_v15 = vld [vmem:[#allocation14_spill] sm:$0xff]  ;;  %v4883_v12 = vunpack.i.h.bf16 %v6477_v16 }
 0x183   : > { %2383 = vrot.lane.b32.xlu0 %v6248_v29, %s5353_s6  ;;  %v6558_v52 = vsel %vm561_vm4, %v560_v30, %v4792_v47  ;;  %v6574_v47 = vsel %vm2809_vm1, %v2815_v21, %v2817_v46  ;;  %v4833_v46 = vunpack.i.h.bf16 %v6441_v5 }
 0x184   : > { %2389 = vrot.lane.b32.xlu1 %v6211_v3, %s5353_s6  ;;  %v6546_v59 = vsel %vm2809_vm1, %v8448_v8, %v2815_v21  ;;  %v569_v24 = vsel %vm557_vm2, %v8449_v15, %v4798_v57  ;;  %v4882_v8 = vunpack.i.l.bf16 %v6477_v16  ;;  %v2826_v57 = vrot.slane %v6177_v14, 2  ;;  %v5281_v15 = vld [vmem:[%s5431_s28 + $0x90] sm:$0xff]  ;;  %s4591_s28 = scalar_lea.sflag [#allocation3], %s161_s11 }
 0x185   : > { %v6517_v31 = vpop.permute.xlu0 %4910  ;;  %v6522_v42 = vpop.permute.xlu1 %4920  ;;  %v2842_v54 = vrot.slane %v5281_v15, 2  ;;  %v8452_v16 = vrot.slane %v6402_v41, 2  ;;  %v6582_v14 = vsel %vm559_vm3, %v569_v24, %v4778_v28  ;;  %v1019_v15 = vsel %vm557_vm2, %v5885_v62, %v4873_v38 }
 0x186   : > { %v4832_v41 = vunpack.i.l.bf16 %v6441_v5  ;;  %v2835_v28 = vrot.slane %v6180_v1, 2  ;;  %v2844_v62 = vrot.slane %v6191_v0, 2  ;;  %v1025_v38 = vsel %vm557_vm2, %v5959_v49, %v4883_v12 }
 0x187   : > { %2391 = vrot.lane.b32.xlu0 %v6251_v40, %s5353_s6  ;;  %v6579_v30 = vsel %vm2809_vm1, %v8452_v16, %v2833_v20  ;;  %v1022_v24 = vsel %vm557_vm2, %v8456_v37, %v4882_v8  ;;  %v6605_v25 = vsel %vm2809_vm1, %v2824_v53, %v2826_v57  ;;  %v8457_v5 = vrot.slane %v6420_v60, 2 }
 0x188   : > { %2397 = vrot.lane.b32.xlu1 %v6216_v10, %s5353_s6  ;;  %v4888_v1 = vunpack.i.h.bf16 %v6485_v48  ;;  %v4887_v0 = vunpack.i.l.bf16 %v6485_v48  ;;  %v1020_v49 = vsel %vm559_vm3, %v1019_v15, %v4833_v46  ;;  %v1017_v12 = vsel %vm559_vm3, %v1016_v26, %v4832_v41 }
 0x189   : > { %v6541_v43 = vpop.permute.xlu0 %4915  ;;  %v6610_v45 = vsel %vm2809_vm1, %v8457_v5, %v2842_v54  ;;  %v4838_v8 = vunpack.i.h.bf16 %v6439_v35  ;;  %v4837_v53 = vunpack.i.l.bf16 %v6439_v35  ;;  %v1021_v60 = vsel %vm561_vm4, %v1020_v49, %v4878_v51 }
 0x18a   : > { %v6552_v19 = vpop.permute.xlu1 %4925  ;;  %v1018_v37 = vsel %vm561_vm4, %v1017_v12, %v4877_v39  ;;  %v4913_v5 = vunpack.i.h.bf16 %v6517_v31  ;;  %v4912_v48 = vunpack.i.l.bf16 %v6517_v31  ;;  %v6629_v15 = vsel %vm2809_vm1, %v2833_v20, %v2835_v28 }
 0x18b   : > { %2399 = vrot.lane.b32.xlu0 %v6258_v36, %s5353_s6  ;;  %v6632_v26 = vsel %vm2809_vm1, %v2842_v54, %v2844_v62  ;;  %v4858_v35 = vunpack.i.h.bf16 %v6459_v56  ;;  %v4857_v46 = vunpack.i.l.bf16 %v6459_v56  ;;  %v1026_v39 = vsel %vm559_vm3, %v1025_v38, %v4838_v8 }
 0x18c   : > { %3258 = vrot.lane.b32.xlu1 %v6546_v59, %s5352_s5  ;;  %v1023_v51 = vsel %vm559_vm3, %v1022_v24, %v4837_v53  ;;  %v4143_v31 = vrot.slane %v1021_v60, 4  ;;  %v4142_v20 = vrot.slane %v1018_v37, 4  ;;  %v6643_v41 = vsel %vm561_vm4, %v1026_v39, %v4888_v1 }
 0x18d   : > { %v6590_v21 = vpop.permute.xlu0 %4930  ;;  %v6646_v54 = vsel %vm561_vm4, %v1023_v51, %v4887_v0  ;;  %v4853_v28 = vunpack.i.h.bf16 %v6461_v2  ;;  %v4852_v62 = vunpack.i.l.bf16 %v6461_v2  ;;  %v4923_v49 = vunpack.i.h.bf16 %v6522_v42 }
 0x18e   : > { %8454 = vst [vmem:[#allocation21_spill] sm:$0xff] %v6590_v21  ;;  %v6594_v16 = vpop.permute.xlu1 %4945  ;;  %v4922_v38 = vunpack.i.l.bf16 %v6522_v42  ;;  %v1456_v12 = vsel %vm557_vm2, %v6090_v61, %v4912_v48  ;;  %v1459_v1 = vsel %vm557_vm2, %v6093_v22, %v4913_v5  ;;  %v4145_v2 = vrot.slane %v6643_v41, 4 }
 0x18f   : > { %8455 = vst [vmem:[#allocation5_spill] sm:$0xff] %v6594_v16  ;;  %3260 = vrot.lane.b32.xlu0 %v6574_v47, %s5352_s5  ;;  %v4232_v22 = vsel %vm4230_vm5, %v6555_v13, %v4143_v31  ;;  %v4231_v5 = vsel %vm4230_vm5, %v6558_v52, %v4142_v20 }
 0x190   : > { %3266 = vrot.lane.b32.xlu1 %v6571_v44, %s5352_s5  ;;  %v1462_v48 = vsel %vm557_vm2, %v6105_v33, %v4922_v38 }
 0x191   : > { %v6620_v57 = vpop.permute.xlu0 %4935 }
 0x192   : > { %8458 = vst [vmem:[#allocation6_spill] sm:$0xff] %v6620_v57  ;;  %v6626_v16 = vpop.permute.xlu1 %4950 }
 0x193   : > { %8459 = vst [vmem:[#allocation18_spill] sm:$0xff] %v6626_v16  ;;  %3268 = vrot.lane.b32.xlu0 %v6605_v25, %s5352_s5 }
 0x194   : > { %3274 = vrot.lane.b32.xlu1 %v6579_v30, %s5352_s5 }
 0x195   : > { %v4941_v24 = vpop.permute.xlu0 %4940 }
 0x196   : > { %v4956_v8 = vpop.permute.xlu1 %4955  ;;  %v4943_v53 = vunpack.i.h.bf16 %v4941_v24  ;;  %v4942_v60 = vunpack.i.l.bf16 %v4941_v24  ;;  %v1460_v24 = vsel %vm559_vm3, %v1459_v1, %v4853_v28  ;;  %v4928_v28 = vunpack.i.h.bf16 %v6552_v19 }
 0x197   : > { %v4958_v0 = vunpack.i.h.bf16 %v4956_v8  ;;  %v4957_v37 = vunpack.i.l.bf16 %v4956_v8  ;;  %3276 = vrot.lane.b32.xlu0 %v6629_v15, %s5352_s5  ;;  %v4918_v8 = vunpack.i.h.bf16 %v6541_v43 }
 0x198   : > { %v1908_v42 = vsel %vm557_vm2, %v6096_v27, %v4943_v53  ;;  %v1905_v61 = vsel %vm557_vm2, %v6077_v4, %v4942_v60  ;;  %3282 = vrot.lane.b32.xlu1 %v6610_v45, %s5352_s5  ;;  %v1457_v27 = vsel %vm559_vm3, %v1456_v12, %v4852_v62  ;;  %v1465_v4 = vsel %vm557_vm2, %v6108_v23, %v4923_v49 }
 0x199   : > { %v4961_v51 = vpop.permute.xlu0 %4960  ;;  %v4917_v53 = vunpack.i.l.bf16 %v6541_v43  ;;  %v1909_v33 = vsel %vm559_vm3, %v1908_v42, %v4958_v0  ;;  %v1906_v20 = vsel %vm559_vm3, %v1905_v61, %v4957_v37  ;;  %v4927_v23 = vunpack.i.l.bf16 %v6552_v19 }
 0x19a   : > { %v4966_v60 = vpop.permute.xlu1 %4965  ;;  %v4963_v13 = vunpack.i.h.bf16 %v4961_v51  ;;  %v4962_v31 = vunpack.i.l.bf16 %v4961_v51  ;;  %v1461_v19 = vsel %vm561_vm4, %v1460_v24, %v4918_v8 }
 0x19b   : > { %v4968_v39 = vunpack.i.h.bf16 %v4966_v60  ;;  %v4967_v52 = vunpack.i.l.bf16 %v4966_v60  ;;  %3284 = vrot.lane.b32.xlu0 %v6632_v26, %s5352_s5 }
 0x19c   : > { %1935 = vrot.lane.b32.xlu1 %v6245_v55, %s5352_s5  ;;  %v1910_v43 = vsel %vm561_vm4, %v1909_v33, %v4963_v13  ;;  %v1907_v62 = vsel %vm561_vm4, %v1906_v20, %v4962_v31  ;;  %v1458_v55 = vsel %vm561_vm4, %v1457_v27, %v4917_v53  ;;  %v8461_v27 = vunpack.i.h.bf16 %v8450_v11 }
 0x19d   : > { %v1914_v49 = vsel %vm557_vm2, %v6265_v17, %v4968_v39  ;;  %v1911_v38 = vsel %vm557_vm2, %v6242_v50, %v4967_v52  ;;  %v4971_v12 = vpop.permute.xlu0 %4970  ;;  %v4167_v1 = vrot.slane %v1910_v43, 4  ;;  %v4166_v0 = vrot.slane %v1907_v62, 4 }
 0x19e   : > { %v4976_v37 = vpop.permute.xlu1 %4975  ;;  %v4973_v42 = vunpack.i.h.bf16 %v4971_v12  ;;  %v4972_v61 = vunpack.i.l.bf16 %v4971_v12  ;;  %v8462_v52 = vunpack.i.l.bf16 %v8446_v7 }
 0x19f   : > { %v4978_v51 = vunpack.i.h.bf16 %v4976_v37  ;;  %v4977_v60 = vunpack.i.l.bf16 %v4976_v37  ;;  %1941 = vrot.lane.b32.xlu0 %v6204_v32, %s5352_s5  ;;  %v4240_v17 = vsel %vm4230_vm5, %v1461_v19, %v4167_v1  ;;  %v4239_v39 = vsel %vm4230_vm5, %v1458_v55, %v4166_v0 }
 0x1a0   : > { %v1912_v50 = vsel %vm559_vm3, %v1911_v38, %v4972_v61  ;;  %1943 = vrot.lane.b32.xlu1 %v6248_v29, %s5352_s5  ;;  %v4688_v13 = vpack.c.bf16 %v4240_v17, %v4232_v22  ;;  %v4690_v31 = vpack.c.bf16 %v4239_v39, %v4231_v5  ;;  %v1915_v24 = vsel %vm559_vm3, %v1914_v49, %v4973_v42 }
 0x1a1   : > { %v6702_v8 = vpop.permute.xlu0 %4980  ;;  %v571_v32 = vsel %vm561_vm4, %v6582_v14, %v8461_v27  ;;  %v1916_v53 = vsel %vm561_vm4, %v1915_v24, %v4978_v51  ;;  %v567_v33 = vsel %vm559_vm3, %v6532_v58, %v8462_v52  ;;  %v1913_v29 = vsel %vm561_vm4, %v1912_v50, %v4977_v60 }
 0x1a2   : > { %8460 = vst [vmem:[#allocation19_spill] sm:$0xff] %v6702_v8  ;;  %v6714_v22 = vpop.permute.xlu1 %4985  ;;  %4689 = vmatprep.subr.bf16.mxu0 %v4688_v13  ;;  %v1466_v5 = vsel %vm559_vm3, %v1465_v4, %v4858_v35  ;;  %v4169_v20 = vrot.slane %v1916_v53, 4  ;;  %v1463_v14 = vsel %vm559_vm3, %v1462_v48, %v4857_v46  ;;  %v4168_v43 = vrot.slane %v1913_v29, 4 }
 0x1a3   : > { %8463 = vst [vmem:[#allocation20_spill] sm:$0xff] %v6714_v22  ;;  %1949 = vrot.lane.b32.xlu0 %v6211_v3, %s5352_s5  ;;  %4691 = vmatpush1.bf16.msra.mxu0 %v4690_v31  ;;  %v1467_v7 = vsel %vm561_vm4, %v1466_v5, %v4928_v28  ;;  %v8464_v58 = vunpack.i.l.bf16 %v8450_v11  ;;  %v1464_v49 = vsel %vm561_vm4, %v1463_v14, %v4927_v23  ;;  %v8465_v3 = vrot.slane %v6646_v54, 4 }
 0x1a4   : > { %1951 = vrot.lane.b32.xlu1 %v6251_v40, %s5352_s5  ;;  %v4234_v56 = vsel %vm4230_vm5, %v571_v32, %v4145_v2  ;;  %v4242_v35 = vsel %vm4230_vm5, %v1467_v7, %v4169_v20  ;;  %v4241_v48 = vsel %vm4230_vm5, %v1464_v49, %v4168_v43 }
 0x1a5   : > { %v568_v62 = vsel %vm561_vm4, %v567_v33, %v8464_v58  ;;  %v6739_v11 = vpop.permute.xlu0 %4990  ;;  %v4696_v4 = vpack.c.bf16 %v4242_v35, %v4234_v56 }
 0x1a6   : > { %v4233_v46 = vsel %vm4230_vm5, %v568_v62, %v8465_v3  ;;  %8466 = vst [vmem:[#allocation8_spill] sm:$0xff] %v6739_v11  ;;  %v6741_v23 = vpop.permute.xlu1 %4995 }
 0x1a7   : > { %v4698_v28 = vpack.c.bf16 %v4241_v48, %v4233_v46  ;;  %8467 = vst [vmem:[#allocation14_spill] sm:$0xff] %v6741_v23  ;;  %1957 = vrot.lane.b32.xlu0 %v6216_v10, %s5352_s5  ;;  %4697 = vmatprep.subr.bf16.mxu1 %v4696_v4 }
 0x1a8   : > { %1959 = vrot.lane.b32.xlu1 %v6258_v36, %s5352_s5 }
 0x1a9   : > { %4699 = vmatpush1.bf16.msra.mxu1 %v4698_v28  ;;  %v6747_v40 = vpop.permute.xlu0 %5000 }
 0x1aa   : > { %8468 = vst [vmem:[#allocation23_spill] sm:$0xff] %v6747_v40  ;;  %v6749_v41 = vpop.permute.xlu1 %5005 }
 0x1ab   : > { %8469 = vst [vmem:[#allocation32_spill] sm:$0xff] %v6749_v41  ;;  %3698 = vrot.lane.b32.xlu0 %v6546_v59, %s5353_s6 }
 0x1ac   : > { %3700 = vrot.lane.b32.xlu1 %v6574_v47, %s5353_s6 }
 0x1ad   : > { %v6755_v54 = vpop.permute.xlu0 %1929 }
 0x1ae   : > { %v6757_v2 = vpop.permute.xlu1 %1931 }
 0x1af   : > { %3706 = vrot.lane.b32.xlu0 %v6571_v44, %s5353_s6 }
 0x1b0   : > { %3708 = vrot.lane.b32.xlu1 %v6605_v25, %s5353_s6 }
 0x1b1   : > { %v6763_v10 = vpop.permute.xlu0 %1933 }
 0x1b2   : > { %v2370_v36 = vpop.permute.xlu1 %2369 }
 0x1b3   : > { %3714 = vrot.lane.b32.xlu0 %v6579_v30, %s5353_s6 }
 0x1b4   : > { %3716 = vrot.lane.b32.xlu1 %v6629_v15, %s5353_s6 }
 0x1b5   : > { %v2372_v38 = vpop.permute.xlu0 %2371 }
 0x1b6   : > { %v2378_v12 = vpop.permute.xlu1 %2377 }
 0x1b7   : > { %3722 = vrot.lane.b32.xlu0 %v6610_v45, %s5353_s6 }
 0x1b8   : > { %3724 = vrot.lane.b32.xlu1 %v6632_v26, %s5353_s6 }
 0x1b9   : > { %v2380_v1 = vpop.permute.xlu0 %2379 }
 0x1ba   : > { %v2386_v0 = vpop.permute.xlu1 %2385 }
 0x1bb   : > { %v2418_v37 = vcombine.high %v2370_v36, %v2386_v0  ;;  %v2417_v19 = vcombine.low %v2370_v36, %v2386_v0 }
 0x1bd   : > { %v2388_v42 = vpop.permute.xlu0 %2387  ;;  %v6774_v39 = vrot.slane %v2418_v37, %v5433_v9  ;;  %v6783_v53 = vrot.slane %v2417_v19, %v5433_v9 }
 0x1be   : > { %v2394_v61 = vpop.permute.xlu1 %2393  ;;  %v2485_v60 = vcombine.low %v2372_v38, %v2388_v42  ;;  %v2486_v17 = vcombine.high %v2372_v38, %v2388_v42 }
 0x1bf   : > { %v2433_v55 = vcombine.low %v2378_v12, %v2394_v61  ;;  %v2434_v51 = vcombine.high %v2378_v12, %v2394_v61 }
 0x1c0   : > { %v6788_v33 = vrot.slane %v2485_v60, %v5433_v9  ;;  %v6791_v29 = vrot.slane %v2486_v17, %v5433_v9 }
 0x1c1   : > { %v6777_v50 = vrot.slane %v2434_v51, %v5433_v9  ;;  %v2396_v13 = vpop.permute.xlu0 %2395  ;;  %v6780_v31 = vrot.slane %v2433_v55, %v5433_v9 }
 0x1c2   : > { %v3255_v24 = vpop.permute.xlu1 %3254  ;;  %v2501_v27 = vcombine.low %v2380_v1, %v2396_v13  ;;  %v2502_v32 = vcombine.high %v2380_v1, %v2396_v13 }
 0x1c3   : > { %v2465_v52 = vcombine.low %v6774_v39, %v6777_v50  ;;  %v2449_v43 = vcombine.low %v6783_v53, %v6780_v31 }
 0x1c4   : > { %v6794_v5 = vrot.slane %v2501_v27, %v5433_v9  ;;  %v6797_v20 = vrot.slane %v2502_v32, %v5433_v9 }
 0x1c5   : > { %v3257_v14 = vpop.permute.xlu0 %3256  ;;  %v6802_v7 = vrot.slane %v2465_v52, %v5457_v18  ;;  %v6815_v46 = vrot.slane %v2449_v43, %v5457_v18 }
 0x1c6   : > { %v2517_v58 = vcombine.low %v6788_v33, %v6794_v5  ;;  %v2533_v62 = vcombine.low %v6791_v29, %v6797_v20  ;;  %v3263_v49 = vpop.permute.xlu1 %3262 }
 0x1c7   : > { %v2483_v4 = vcombine.high %v6802_v7, %v8394_v6  ;;  %v2481_v42 = vcombine.high %v6815_v46, %v8394_v6 }
 0x1c8   : > { %v6809_v56 = vrot.slane %v2517_v58, %v5457_v18  ;;  %v6812_v35 = vrot.slane %v2533_v62, %v5457_v18  ;;  %v8470_v62 = vld [vmem:[#allocation43_spill] sm:$0xff] }
 0x1c9   : > { %v3265_v3 = vpop.permute.xlu0 %3264 }
 0x1ca   : > { %v3271_v48 = vpop.permute.xlu1 %3270  ;;  %v2551_v28 = vcombine.high %v6812_v35, %v8394_v6  ;;  %v2549_v38 = vcombine.high %v6809_v56, %v8394_v6 }
 0x1cb   : > { %v3302_v12 = vcombine.low %v3255_v24, %v3271_v48  ;;  %v3303_v1 = vcombine.high %v3255_v24, %v3271_v48 }
 0x1cc   : > { %v5009_v36 = vpack.i.bf16 %v2551_v28, %v2483_v4  ;;  %v5019_v60 = vpack.i.bf16 %v2549_v38, %v2481_v42  ;;  %v8474_v42 = vld [vmem:[#allocation44_spill] sm:$0xff] }
 0x1cd   : > { %v3273_v0 = vpop.permute.xlu0 %3272  ;;  %v6827_v17 = vrot.slane %v3302_v12, %v5433_v9  ;;  %v6830_v13 = vrot.slane %v3303_v1, %v5433_v9  ;;  %v8472_v1 = vld [vmem:[#allocation42_spill] sm:$0xff] }
 0x1ce   : > { %v3279_v37 = vpop.permute.xlu1 %3278  ;;  %5010 = vrot.lane.b32.xlu0 %v5009_v36, %s5351_s4  ;;  %v3370_v55 = vcombine.low %v3257_v14, %v3273_v0  ;;  %v3371_v51 = vcombine.high %v3257_v14, %v3273_v0  ;;  %v2863_v14 = vcombine.high %v6370_v34, %v6406_v63  ;;  %v8473_v0 = vld [vmem:[#allocation29_spill] sm:$0xff] }
 0x1cf   : > { %v3318_v61 = vcombine.low %v3263_v49, %v3279_v37  ;;  %v3319_v19 = vcombine.high %v3263_v49, %v3279_v37  ;;  %v8471_v49 = vld [vmem:[#allocation30_spill] sm:$0xff]  ;;  %v2931_v37 = vcombine.high %v8473_v0, %v8472_v1 }
 0x1d0   : > { %v2879_v48 = vcombine.high %v8471_v49, %v8470_v62  ;;  %v6850_v36 = vrot.slane %v3370_v55, %v5433_v9  ;;  %v3385_v38 = vrot.slane %v3371_v51, %v5433_v9  ;;  %v6876_v57 = vrot.slane %v2863_v14, %v5433_v9 }
 0x1d1   : > { %v6833_v24 = vrot.slane %v3318_v61, %v5433_v9  ;;  %v6836_v27 = vrot.slane %v3319_v19, %v5433_v9  ;;  %v3281_v32 = vpop.permute.xlu0 %3280  ;;  %v8475_v61 = vld [vmem:[#allocation31_spill] sm:$0xff]  ;;  %v6888_v40 = vrot.slane %v2931_v37, %v5433_v9 }
 0x1d2   : > { %v6838_v52 = vpop.permute.xlu1 %1937  ;;  %v3386_v43 = vcombine.low %v3265_v3, %v3281_v32  ;;  %v3387_v58 = vcombine.high %v3265_v3, %v3281_v32  ;;  %5020 = vrot.lane.b32.xlu0 %v5019_v60, %s5351_s4  ;;  %v2947_v19 = vcombine.high %v8475_v61, %v8474_v42  ;;  %v6879_v41 = vrot.slane %v2879_v48, %v5433_v9 }
 0x1d3   : > { %v3334_v4 = vcombine.low %v6827_v17, %v6833_v24  ;;  %v3350_v28 = vcombine.low %v6830_v13, %v6836_v27 }
 0x1d4   : > { %v6854_v3 = vrot.slane %v3386_v43, %v5433_v9  ;;  %v3401_v12 = vrot.slane %v3387_v58, %v5433_v9  ;;  %v2534_v58 = vcombine.high %v6791_v29, %v6797_v20  ;;  %v6891_v21 = vrot.slane %v2947_v19, %v5433_v9 }
 0x1d5   : > { %v6861_v60 = vpop.permute.xlu0 %1939  ;;  %v6864_v32 = vrot.slane %v3334_v4, %v5457_v18  ;;  %v6867_v55 = vrot.slane %v3350_v28, %v5457_v18  ;;  %v2466_v29 = vcombine.high %v6774_v39, %v6777_v50  ;;  %v2862_v39 = vcombine.low %v6370_v34, %v6406_v63 }
 0x1d6   : > { %v3402_v51 = vcombine.low %v6850_v36, %v6854_v3  ;;  %v3418_v43 = vcombine.low %v3385_v38, %v3401_v12  ;;  %v6871_v16 = vpop.permute.xlu1 %1945  ;;  %v2548_v11 = vrot.slane %v2534_v58, %v5457_v18  ;;  %v3419_v23 = vcombine.high %v3385_v38, %v3401_v12 }
 0x1d7   : > { %8476 = vst [vmem:[#allocation37_spill] sm:$0xff] %v6864_v32  ;;  %8477 = vst [vmem:[#allocation43_spill] sm:$0xff] %v6867_v55  ;;  %v1978_v20 = vcombine.high %v6755_v54, %v6871_v16  ;;  %v3366_v37 = vcombine.high %v6864_v32, %v8394_v6  ;;  %v2978_v32 = vcombine.low %v6888_v40, %v6891_v21 }
 0x1d8   : > { %v6882_v4 = vrot.slane %v3402_v51, %v5457_v18  ;;  %v6885_v28 = vrot.slane %v3418_v43, %v5457_v18  ;;  %v3368_v51 = vcombine.high %v6867_v55, %v8394_v6  ;;  %v3351_v38 = vcombine.high %v6830_v13, %v6836_v27 }
 0x1d9   : > { %v6897_v14 = vpop.permute.xlu0 %1947 }
 0x1da   : > { %8478 = vst [vmem:[#allocation30_spill] sm:$0xff] %v6882_v4  ;;  %8479 = vst [vmem:[#allocation42_spill] sm:$0xff] %v6885_v28  ;;  %v1954_v48 = vpop.permute.xlu1 %1953  ;;  %v3436_v43 = vcombine.high %v6885_v28, %v8394_v6  ;;  %v3434_v19 = vcombine.high %v6882_v4, %v8394_v6  ;;  %v2046_v22 = vcombine.high %v6757_v2, %v6897_v14 }
 0x1db   : > { %v1994_v50 = vcombine.high %v6838_v52, %v1954_v48  ;;  %v2910_v28 = vcombine.low %v6876_v57, %v6879_v41  ;;  %v6918_v4 = vrot.slane %v1978_v20, %v5433_v9  ;;  %v2878_v20 = vcombine.low %v8471_v49, %v8470_v62 }
 0x1dc   : > { %v5014_v8 = vpack.i.bf16 %v3436_v43, %v3368_v51  ;;  %v5029_v55 = vpack.i.bf16 %v3434_v19, %v3366_v37  ;;  %v2480_v51 = vrot.slane %v2466_v29, %v5457_v18  ;;  %v2930_v43 = vcombine.low %v8473_v0, %v8472_v1 }
 0x1dd   : > { %v6921_v34 = vrot.slane %v1994_v50, %v5433_v9  ;;  %v1956_v63 = vpop.permute.xlu0 %1955  ;;  %v2518_v37 = vcombine.high %v6788_v33, %v6794_v5  ;;  %v6940_v27 = vrot.slane %v2046_v22, %v5433_v9  ;;  %v3433_v29 = vrot.slane %v3419_v23, %v5457_v18 }
 0x1de   : > { %v6925_v12 = vpop.permute.xlu1 %3694  ;;  %v2062_v58 = vcombine.high %v6861_v60, %v1956_v63  ;;  %5015 = vrot.lane.b32.xlu1 %v5014_v8, %s5351_s4  ;;  %5030 = vrot.lane.b32.xlu0 %v5029_v55, %s5351_s4  ;;  %v5024_v55 = vpack.i.bf16 %v2548_v11, %v2480_v51  ;;  %v2946_v62 = vcombine.low %v8475_v61, %v8474_v42 }
 0x1df   : > { %v2025_v13 = vcombine.low %v6918_v4, %v6921_v34  ;;  %v2061_v49 = vcombine.low %v6861_v60, %v1956_v63  ;;  %v6952_v33 = vrot.slane %v2910_v28, %v5457_v18  ;;  %v6955_v5 = vrot.slane %v2978_v32, %v5457_v18 }
 0x1e0   : > { %v6943_v8 = vrot.slane %v2062_v58, %v5433_v9  ;;  %v2450_v22 = vcombine.high %v6783_v53, %v6780_v31  ;;  %v3365_v61 = vrot.slane %v3351_v38, %v5457_v18  ;;  %v6969_v60 = vrot.slane %v2862_v39, %v5433_v9 }
 0x1e1   : > { %v6949_v1 = vpop.permute.xlu0 %3696  ;;  %8480 = vst [vmem:[#allocation29_spill] sm:$0xff] %v6952_v33  ;;  %8481 = vst [vmem:[#allocation44_spill] sm:$0xff] %v6955_v5  ;;  %v6960_v0 = vrot.slane %v2025_v13, %v5457_v18  ;;  %v6972_v32 = vrot.slane %v2878_v20, %v5433_v9  ;;  %v1993_v31 = vcombine.low %v6838_v52, %v1954_v48 }
 0x1e2   : > { %v2093_v23 = vcombine.low %v6940_v27, %v6943_v8  ;;  %v6964_v42 = vpop.permute.xlu1 %3702  ;;  %5025 = vrot.lane.b32.xlu1 %v5024_v55, %s5349_s29  ;;  %v2045_v53 = vcombine.low %v6757_v2, %v6897_v14  ;;  %v6978_v28 = vrot.slane %v2930_v43, %v5433_v9  ;;  %v5034_v50 = vpack.i.bf16 %v3433_v29, %v3365_v61 }
 0x1e3   : > { %8482 = vst [vmem:[#allocation31_spill] sm:$0xff] %v6960_v0  ;;  %v2532_v63 = vrot.slane %v2518_v37, %v5457_v18  ;;  %v6985_v39 = vrot.slane %v2946_v62, %v5433_v9  ;;  %v1977_v38 = vcombine.low %v6755_v54, %v6871_v16  ;;  %v6990_v52 = vrot.slane %v2061_v49, %v5433_v9 }
 0x1e4   : > { %v6981_v19 = vrot.slane %v2093_v23, %v5457_v18  ;;  %v2928_v2 = vcombine.high %v6952_v33, %v8394_v6  ;;  %v2464_v58 = vrot.slane %v2450_v22, %v5457_v18  ;;  %v2043_v20 = vcombine.high %v6960_v0, %v8394_v6 }
 0x1e5   : > { %v6992_v48 = vpop.permute.xlu0 %3704  ;;  %v2996_v54 = vcombine.high %v6955_v5, %v8394_v6  ;;  %v7007_v43 = vrot.slane %v1993_v31, %v5433_v9  ;;  %v7010_v37 = vrot.slane %v2045_v53, %v5433_v9  ;;  %v2552_v62 = vcombine.high %v2548_v11, %v8394_v6 }
 0x1e6   : > { %v6996_v14 = vpop.permute.xlu1 %3710  ;;  %5035 = vrot.lane.b32.xlu1 %v5034_v50, %s5349_s29  ;;  %v2111_v16 = vcombine.high %v6981_v19, %v8394_v6  ;;  %v5044_v13 = vpack.i.bf16 %v2532_v63, %v2464_v58  ;;  %v2894_v49 = vcombine.low %v6969_v60, %v6972_v32  ;;  %v3403_v22 = vcombine.high %v6850_v36, %v6854_v3 }
 0x1e7   : > { %v7018_v23 = vrot.slane %v1977_v38, %v5433_v9  ;;  %v2077_v31 = vcombine.low %v7010_v37, %v6990_v52  ;;  %v2962_v53 = vcombine.low %v6978_v28, %v6985_v39  ;;  %v5054_v11 = vpack.i.bf16 %v2996_v54, %v2928_v2 }
 0x1e8   : > { %v5039_v55 = vpack.i.bf16 %v2111_v16, %v2043_v20  ;;  %v2484_v36 = vcombine.high %v2480_v51, %v8394_v6  ;;  %v3335_v3 = vcombine.high %v6827_v17, %v6833_v24  ;;  %v2094_v16 = vcombine.high %v6940_v27, %v6943_v8 }
 0x1e9   : > { %v7022_v50 = vpop.permute.xlu0 %3712  ;;  %v2009_v38 = vcombine.low %v7018_v23, %v7007_v43  ;;  %v3437_v5 = vcombine.high %v3433_v29, %v8394_v6  ;;  %v7039_v0 = vrot.slane %v2077_v31, %v5457_v18  ;;  %v3417_v2 = vrot.slane %v3403_v22, %v5457_v18 }
 0x1ea   : > { %v7026_v20 = vpop.permute.xlu1 %3718  ;;  %5045 = vrot.lane.b32.xlu1 %v5044_v13, %s5349_s29  ;;  %5040 = vrot.lane.b32.xlu0 %v5039_v55, %s5351_s4  ;;  %v5049_v33 = vpack.i.bf16 %v2552_v62, %v2484_v36  ;;  %v7045_v51 = vrot.slane %v2894_v49, %v5457_v18  ;;  %v2026_v17 = vcombine.high %v6918_v4, %v6921_v34 }
 0x1eb   : > { %v3369_v27 = vcombine.high %v3365_v61, %v8394_v6  ;;  %v7055_v8 = vrot.slane %v2962_v53, %v5457_v18  ;;  %v7058_v29 = vrot.slane %v2009_v38, %v5457_v18  ;;  %v3349_v54 = vrot.slane %v3335_v3, %v5457_v18 }
 0x1ec   : > { %8483 = vst [vmem:[#allocation52_spill] sm:$0xff] %v7045_v51  ;;  %v2108_v62 = vrot.slane %v2094_v16, %v5457_v18  ;;  %v2109_v49 = vcombine.high %v7039_v0, %v8394_v6  ;;  %v2040_v61 = vrot.slane %v2026_v17, %v5457_v18  ;;  %v2926_v22 = vcombine.high %v7045_v51, %v8394_v6 }
 0x1ed   : > { %v7041_v13 = vpop.permute.xlu0 %3720  ;;  %8484 = vst [vmem:[#allocation53_spill] sm:$0xff] %v7055_v8  ;;  %8485 = vst [vmem:[#allocation54_spill] sm:$0xff] %v7058_v29  ;;  %v5064_v55 = vpack.i.bf16 %v3437_v5, %v3369_v27  ;;  %v5059_v34 = vpack.i.bf16 %v3417_v2, %v3349_v54  ;;  %v2994_v5 = vcombine.high %v7055_v8, %v8394_v6 }
 0x1ee   : > { %v7049_v24 = vpop.permute.xlu1 %2373  ;;  %5055 = vrot.lane.b32.xlu1 %v5054_v11, %s5351_s4  ;;  %5050 = vrot.lane.b32.xlu0 %v5049_v33, %s5350_s30  ;;  %v2041_v31 = vcombine.high %v7058_v29, %v8394_v6  ;;  %v2911_v53 = vcombine.high %v6876_v57, %v6879_v41  ;;  %v2979_v11 = vcombine.high %v6888_v40, %v6891_v21 }
 0x1ef   : > { %v5074_v36 = vpack.i.bf16 %v2108_v62, %v2040_v61  ;;  %v2550_v16 = vcombine.high %v2532_v63, %v8394_v6  ;;  %v5084_v27 = vpack.i.bf16 %v2994_v5, %v2926_v22  ;;  %v3435_v21 = vcombine.high %v3417_v2, %v8394_v6 }
 0x1f0   : > { %v5069_v38 = vpack.i.bf16 %v2109_v49, %v2041_v31  ;;  %v2925_v57 = vrot.slane %v2911_v53, %v5457_v18  ;;  %v2993_v41 = vrot.slane %v2979_v11, %v5457_v18  ;;  %v2078_v40 = vcombine.high %v7010_v37, %v6990_v52 }
 0x1f1   : > { %v7062_v4 = vpop.permute.xlu0 %2375  ;;  %v2895_v49 = vcombine.high %v6969_v60, %v6972_v32  ;;  %v2963_v22 = vcombine.high %v6978_v28, %v6985_v39  ;;  %v3367_v2 = vcombine.high %v3349_v54, %v8394_v6  ;;  %v3827_v60 = vcombine.high %v6992_v48, %v7041_v13 }
 0x1f2   : > { %v7066_v33 = vpop.permute.xlu1 %2381  ;;  %5065 = vrot.lane.b32.xlu1 %v5064_v55, %s5350_s30  ;;  %5060 = vrot.lane.b32.xlu0 %v5059_v34, %s5349_s29  ;;  %v2482_v55 = vcombine.high %v2464_v58, %v8394_v6  ;;  %v2010_v58 = vcombine.high %v7018_v23, %v7007_v43  ;;  %v5089_v52 = vpack.i.bf16 %v2993_v41, %v2925_v57 }
 0x1f3   : > { %v2929_v37 = vcombine.high %v2925_v57, %v8394_v6  ;;  %v5094_v32 = vpack.i.bf16 %v3435_v21, %v3367_v2  ;;  %v2112_v28 = vcombine.high %v2108_v62, %v8394_v6  ;;  %v2997_v39 = vcombine.high %v2993_v41, %v8394_v6 }
 0x1f4   : > { %v5079_v63 = vpack.i.bf16 %v2550_v16, %v2482_v55  ;;  %v3759_v43 = vcombine.high %v6964_v42, %v7026_v20  ;;  %v2092_v54 = vrot.slane %v2078_v40, %v5457_v18  ;;  %v2909_v31 = vrot.slane %v2895_v49, %v5457_v18 }
 0x1f5   : > { %v7081_v3 = vpop.permute.xlu0 %2383  ;;  %v2977_v53 = vrot.slane %v2963_v22, %v5457_v18  ;;  %v3811_v11 = vcombine.high %v6949_v1, %v7022_v50  ;;  %v2024_v16 = vrot.slane %v2010_v58, %v5457_v18  ;;  %v3758_v55 = vcombine.low %v6964_v42, %v7026_v20 }
 0x1f6   : > { %v7084_v17 = vpop.permute.xlu1 %2389  ;;  %5075 = vrot.lane.b32.xlu1 %v5074_v36, %s5349_s29  ;;  %5070 = vrot.lane.b32.xlu0 %v5069_v38, %s5351_s4  ;;  %v2044_v38 = vcombine.high %v2040_v61, %v8394_v6  ;;  %v3742_v21 = vcombine.low %v6925_v12, %v6996_v14  ;;  %v7140_v61 = vrot.slane %v3827_v60, %v5433_v9 }
 0x1f7   : > { %v7143_v49 = vrot.slane %v3759_v43, %v5433_v9  ;;  %v2554_v42 = vcombine.high %v7049_v24, %v7084_v17  ;;  %v5099_v58 = vpack.i.bf16 %v2092_v54, %v2024_v16  ;;  %v7153_v2 = vrot.slane %v3811_v11, %v5433_v9 }
 0x1f8   : > { %v5104_v40 = vpack.i.bf16 %v2112_v28, %v2044_v38 }
 0x1f9   : > { %v7094_v34 = vpop.permute.xlu0 %2391  ;;  %v3858_v43 = vcombine.low %v7153_v2, %v7140_v61 }
 0x1fa   : > { %v7102_v5 = vpop.permute.xlu1 %2397  ;;  %5085 = vrot.lane.b32.xlu1 %v5084_v27, %s5351_s4  ;;  %5080 = vrot.lane.b32.xlu0 %v5079_v63, %s5350_s30  ;;  %v3743_v27 = vcombine.high %v6925_v12, %v6996_v14  ;;  %v2622_v41 = vcombine.high %v7062_v4, %v7094_v34  ;;  %v5114_v63 = vpack.i.bf16 %v2997_v39, %v2929_v37 }
 0x1fb   : > { %v2570_v57 = vcombine.high %v7066_v33, %v7102_v5  ;;  %v5109_v14 = vpack.i.bf16 %v2977_v53, %v2909_v31  ;;  %v2995_v37 = vcombine.high %v2977_v53, %v8394_v6  ;;  %v7177_v53 = vrot.slane %v3742_v21, %v5433_v9 }
 0x1fc   : > { %v7161_v60 = vrot.slane %v3743_v27, %v5433_v9  ;;  %v7170_v39 = vrot.slane %v2622_v41, %v5433_v9  ;;  %v3826_v21 = vcombine.low %v6992_v48, %v7041_v13 }
 0x1fd   : > { %v7114_v23 = vpop.permute.xlu0 %2399  ;;  %v7167_v28 = vrot.slane %v2570_v57, %v5433_v9 }
 0x1fe   : > { %v7121_v36 = vpop.permute.xlu1 %3258  ;;  %v2638_v62 = vcombine.high %v7081_v3, %v7114_v23  ;;  %5095 = vrot.lane.b32.xlu1 %v5094_v32, %s5350_s30  ;;  %5090 = vrot.lane.b32.xlu0 %v5089_v52, %s5349_s29  ;;  %v2927_v52 = vcombine.high %v2909_v31, %v8394_v6  ;;  %v7164_v32 = vrot.slane %v3758_v55, %v5433_v9 }
 0x1ff   : > { %v2110_v31 = vcombine.high %v2092_v54, %v8394_v6  ;;  %v3790_v11 = vcombine.low %v7161_v60, %v7143_v49  ;;  %v3810_v55 = vcombine.low %v6949_v1, %v7022_v50  ;;  %v2637_v1 = vcombine.low %v7081_v3, %v7114_v23 }
 0x200   : > { %v7148_v20 = vrot.slane %v2638_v62, %v5433_v9  ;;  %v7182_v62 = vrot.slane %v2554_v42, %v5433_v9  ;;  %v5124_v54 = vpack.i.bf16 %v2995_v37, %v2927_v52  ;;  %v3774_v41 = vcombine.low %v7177_v53, %v7164_v32 }
 0x201   : > { %v7150_v22 = vpop.permute.xlu0 %3260  ;;  %v2042_v42 = vcombine.high %v2024_v16, %v8394_v6  ;;  %v7202_v50 = vrot.slane %v3858_v43, %v5457_v18  ;;  %v7210_v52 = vrot.slane %v3790_v11, %v5457_v18  ;;  %v2569_v3 = vcombine.low %v7066_v33, %v7102_v5 }
 0x202   : > { %v7155_v12 = vpop.permute.xlu1 %3266  ;;  %5105 = vrot.lane.b32.xlu1 %v5104_v40, %s5350_s30  ;;  %5100 = vrot.lane.b32.xlu0 %v5099_v58, %s5349_s29  ;;  %v2669_v38 = vcombine.low %v7170_v39, %v7148_v20  ;;  %v2601_v40 = vcombine.low %v7182_v62, %v7167_v28  ;;  %v2621_v23 = vcombine.low %v7062_v4, %v7094_v34 }
 0x203   : > { %8486 = vst [vmem:[#allocation55_spill] sm:$0xff] %v7202_v50  ;;  %v5119_v13 = vpack.i.bf16 %v2110_v31, %v2042_v42  ;;  %8488 = vst [vmem:[#allocation57_spill] sm:$0xff] %v7210_v52  ;;  %v7221_v37 = vrot.slane %v3826_v21, %v5433_v9  ;;  %v7229_v11 = vrot.slane %v3774_v41, %v5457_v18 }
 0x204   : > { %v7224_v43 = vrot.slane %v2601_v40, %v5457_v18  ;;  %v2553_v33 = vcombine.low %v7049_v24, %v7084_v17  ;;  %v7234_v4 = vrot.slane %v2637_v1, %v5433_v9  ;;  %v3876_v5 = vcombine.high %v7202_v50, %v8394_v6 }
 0x205   : > { %v3269_v27 = vpop.permute.xlu0 %3268  ;;  %8490 = vst [vmem:[#allocation59_spill] sm:$0xff] %v7229_v11  ;;  %v3808_v41 = vcombine.high %v7210_v52, %v8394_v6  ;;  %v7250_v17 = vrot.slane %v2569_v3, %v5433_v9  ;;  %v7253_v21 = vrot.slane %v2621_v23, %v5433_v9 }
 0x206   : > { %v7188_v57 = vpop.permute.xlu1 %3274  ;;  %5115 = vrot.lane.b32.xlu1 %v5114_v63, %s5350_s30  ;;  %5110 = vrot.lane.b32.xlu0 %v5109_v14, %s5349_s29  ;;  %v7205_v63 = vrot.slane %v2669_v38, %v5457_v18  ;;  %v7213_v14 = vrot.slane %v3810_v55, %v5433_v9  ;;  %8489 = vst [vmem:[#allocation58_spill] sm:$0xff] %v7224_v43 }
 0x207   : > { %v3439_v58 = vcombine.high %v7121_v36, %v7188_v57  ;;  %v2619_v3 = vcombine.high %v7224_v43, %v8394_v6  ;;  %v7266_v23 = vrot.slane %v2553_v33, %v5433_v9 }
 0x208   : > { %8487 = vst [vmem:[#allocation56_spill] sm:$0xff] %v7205_v63  ;;  %v2687_v24 = vcombine.high %v7205_v63, %v8394_v6 }
 0x209   : > { %v3277_v48 = vpop.permute.xlu0 %3276  ;;  %v7240_v38 = vrot.slane %v3439_v58, %v5433_v9 }
 0x20a   : > { %v3283_v16 = vpop.permute.xlu1 %3282  ;;  %5125 = vrot.lane.b32.xlu1 %v5124_v54, %s5350_s30  ;;  %5120 = vrot.lane.b32.xlu0 %v5119_v13, %s5350_s30  ;;  %v3507_v34 = vcombine.high %v7150_v22, %v3277_v48 }
 0x20b   : > { %v3455_v31 = vcombine.high %v7155_v12, %v3283_v16  ;;  %v3454_v58 = vcombine.low %v7155_v12, %v3283_v16 }
 0x20d   : > { %v7243_v55 = vrot.slane %v3455_v31, %v5433_v9  ;;  %v3285_v54 = vpop.permute.xlu0 %3284  ;;  %v3506_v31 = vcombine.low %v7150_v22, %v3277_v48  ;;  %v3842_v22 = vcombine.low %v7213_v14, %v7221_v37  ;;  %v3438_v48 = vcombine.low %v7121_v36, %v7188_v57 }
 0x20e   : > { %v7255_v40 = vpop.permute.xlu1 %1935  ;;  %v3522_v42 = vcombine.low %v3269_v27, %v3285_v54  ;;  %v3523_v1 = vcombine.high %v3269_v27, %v3285_v54  ;;  %4051 = vrot.lane.b32.xlu1 %v3876_v5, %s5351_s4  ;;  %4027 = vrot.lane.b32.xlu0 %v3808_v41, %s5351_s4  ;;  %v2653_v27 = vcombine.low %v7253_v21, %v7234_v4 }
 0x20f   : > { %v3486_v13 = vcombine.low %v7240_v38, %v7243_v55  ;;  %v7271_v5 = vrot.slane %v3507_v34, %v5433_v9  ;;  %v5129_v54 = vpack.i.bf16 %v2687_v24, %v2619_v3  ;;  %v2585_v41 = vcombine.low %v7266_v23, %v7250_v17 }
 0x210   : > { %v7274_v12 = vrot.slane %v3523_v1, %v5433_v9  ;;  %v7281_v16 = vrot.slane %v3522_v42, %v5433_v9  ;;  %v7295_v63 = vrot.slane %v3454_v58, %v5433_v9  ;;  %v7298_v36 = vrot.slane %v3506_v31, %v5433_v9 }
 0x211   : > { %v7283_v33 = vpop.permute.xlu0 %1941  ;;  %v7288_v34 = vrot.slane %v3486_v13, %v5457_v18  ;;  %v7302_v57 = vrot.slane %v2653_v27, %v5457_v18  ;;  %v7308_v42 = vrot.slane %v3438_v48, %v5433_v9  ;;  %v3806_v58 = vcombine.high %v7229_v11, %v8394_v6 }
 0x212   : > { %v3554_v1 = vcombine.low %v7271_v5, %v7274_v12  ;;  %v7292_v43 = vpop.permute.xlu1 %1943  ;;  %5130 = vrot.lane.b32.xlu0 %v5129_v54, %s5351_s4  ;;  %v3538_v13 = vcombine.low %v7298_v36, %v7281_v16  ;;  %v7317_v31 = vrot.slane %v3842_v22, %v5457_v18  ;;  %v7320_v27 = vrot.slane %v2585_v41, %v5457_v18 }
 0x213   : > { %8491 = vst [vmem:[#allocation60_spill] sm:$0xff] %v7288_v34  ;;  %8492 = vst [vmem:[#allocation61_spill] sm:$0xff] %v7302_v57  ;;  %v3504_v48 = vcombine.high %v7288_v34, %v8394_v6  ;;  %v3470_v50 = vcombine.low %v7308_v42, %v7295_v63  ;;  %v3791_v22 = vcombine.high %v7161_v60, %v7143_v49 }
 0x214   : > { %v7305_v24 = vrot.slane %v3554_v1, %v5457_v18  ;;  %8494 = vst [vmem:[#allocation63_spill] sm:$0xff] %v7317_v31  ;;  %8495 = vst [vmem:[#allocation64_spill] sm:$0xff] %v7320_v27  ;;  %v2685_v41 = vcombine.high %v7302_v57, %v8394_v6  ;;  %v7336_v52 = vrot.slane %v3538_v13, %v5457_v18 }
 0x215   : > { %v7312_v3 = vpop.permute.xlu0 %1949  ;;  %v2617_v60 = vcombine.high %v7320_v27, %v8394_v6  ;;  %v7352_v13 = vrot.slane %v3470_v50, %v5457_v18  ;;  %v3805_v27 = vrot.slane %v3791_v22, %v5457_v18 }
 0x216   : > { %8493 = vst [vmem:[#allocation62_spill] sm:$0xff] %v7305_v24  ;;  %v7322_v54 = vpop.permute.xlu1 %1951  ;;  %v3572_v1 = vcombine.high %v7305_v24, %v8394_v6  ;;  %4015 = vrot.lane.b32.xlu0 %v3806_v58, %s5351_s4  ;;  %v3874_v24 = vcombine.high %v7317_v31, %v8394_v6  ;;  %v2114_v58 = vcombine.high %v6763_v10, %v7312_v3 }
 0x217   : > { %v2182_v34 = vcombine.high %v7255_v40, %v7322_v54  ;;  %v5139_v57 = vpack.i.bf16 %v2685_v41, %v2617_v60  ;;  %v3775_v41 = vcombine.high %v7177_v53, %v7164_v32  ;;  %v3843_v32 = vcombine.high %v7213_v14, %v7221_v37 }
 0x218   : > { %v5134_v11 = vpack.i.bf16 %v3572_v1, %v3504_v48  ;;  %v3859_v1 = vcombine.high %v7153_v2, %v7140_v61  ;;  %v2602_v61 = vcombine.high %v7182_v62, %v7167_v28  ;;  %v7381_v2 = vrot.slane %v2114_v58, %v5433_v9 }
 0x219   : > { %v7340_v51 = vpop.permute.xlu0 %1957  ;;  %v7365_v50 = vrot.slane %v2182_v34, %v5433_v9  ;;  %v3015_v34 = vcombine.high %v6571_v44, %v6610_v45  ;;  %v3555_v28 = vcombine.high %v7271_v5, %v7274_v12  ;;  %v3067_v58 = vcombine.high %v6574_v47, %v6629_v15 }
 0x21a   : > { %v7344_v8 = vpop.permute.xlu1 %1959  ;;  %v2130_v49 = vcombine.high %v7283_v33, %v7340_v51  ;;  %5135 = vrot.lane.b32.xlu1 %v5134_v11, %s5351_s4  ;;  %4039 = vrot.lane.b32.xlu0 %v3874_v24, %s5351_s4  ;;  %v2670_v11 = vcombine.high %v7170_v39, %v7148_v20  ;;  %v3570_v24 = vcombine.high %v7336_v52, %v8394_v6 }
 0x21b   : > { %v2198_v48 = vcombine.high %v7292_v43, %v7344_v8  ;;  %v2999_v20 = vcombine.high %v6546_v59, %v6579_v30  ;;  %v3502_v39 = vcombine.high %v7352_v13, %v8394_v6  ;;  %v3873_v62 = vrot.slane %v3859_v1, %v5457_v18 }
 0x21c   : > { %v7371_v29 = vrot.slane %v2130_v49, %v5433_v9  ;;  %v2684_v22 = vrot.slane %v2670_v11, %v5457_v18  ;;  %v2616_v5 = vrot.slane %v2602_v61, %v5457_v18  ;;  %v3487_v12 = vcombine.high %v7240_v38, %v7243_v55 }
 0x21d   : > { %v7368_v31 = vrot.slane %v2198_v48, %v5433_v9  ;;  %v5149_v60 = vpack.i.bf16 %v3570_v24, %v3502_v39  ;;  %v3083_v48 = vcombine.high %v6605_v25, %v6632_v26  ;;  %v7410_v53 = vrot.slane %v3555_v28, %v5457_v18 }
 0x21e   : > { %4031 = vrot.lane.b32.xlu1 %v3805_v27, %s5349_s29  ;;  %5140 = vrot.lane.b32.xlu0 %v5139_v57, %s5351_s4  ;;  %v2161_v57 = vcombine.low %v7381_v2, %v7371_v29  ;;  %v5144_v1 = vpack.i.bf16 %v2684_v22, %v2616_v5  ;;  %v7413_v11 = vrot.slane %v2999_v20, %v5433_v9 }
 0x21f   : > { %v2229_v49 = vcombine.low %v7365_v50, %v7368_v31  ;;  %v7422_v38 = vrot.slane %v3775_v41, %v5457_v18  ;;  %v7425_v55 = vrot.slane %v3015_v34, %v5433_v9  ;;  %v7428_v14 = vrot.slane %v3067_v58, %v5433_v9 }
 0x220   : > { %v7419_v61 = vrot.slane %v2161_v57, %v5457_v18  ;;  %v7431_v37 = vrot.slane %v3083_v48, %v5433_v9  ;;  %v7434_v20 = vrot.slane %v3487_v12, %v5457_v18  ;;  %v2181_v39 = vcombine.low %v7255_v40, %v7322_v54 }
 0x221   : > { %v7416_v24 = vrot.slane %v2229_v49, %v5457_v18  ;;  %v7444_v28 = vrot.slane %v3843_v32, %v5457_v18  ;;  %v2197_v41 = vcombine.low %v7292_v43, %v7344_v8  ;;  %v2129_v49 = vcombine.low %v7283_v33, %v7340_v51 }
 0x222   : > { %4055 = vrot.lane.b32.xlu1 %v3873_v62, %s5349_s29  ;;  %5150 = vrot.lane.b32.xlu0 %v5149_v60, %s5351_s4  ;;  %v5154_v34 = vpack.i.bf16 %v7410_v53, %v7434_v20  ;;  %v2179_v57 = vcombine.high %v7419_v61, %v8394_v6  ;;  %v3046_v40 = vcombine.low %v7413_v11, %v7425_v55 }
 0x223   : > { %v2247_v60 = vcombine.high %v7416_v24, %v8394_v6  ;;  %v3114_v54 = vcombine.low %v7428_v14, %v7431_v37  ;;  %v2113_v8 = vcombine.low %v6763_v10, %v7312_v3  ;;  %v2654_v51 = vcombine.high %v7253_v21, %v7234_v4 }
 0x224   : > { %v3539_v43 = vcombine.high %v7298_v36, %v7281_v16  ;;  %v3809_v33 = vcombine.high %v3805_v27, %v8394_v6  ;;  %v2688_v58 = vcombine.high %v2684_v22, %v8394_v6  ;;  %v7470_v48 = vrot.slane %v2181_v39, %v5433_v9 }
 0x225   : > { %v7473_v12 = vrot.slane %v2197_v41, %v5433_v9  ;;  %v7476_v10 = vrot.slane %v2129_v49, %v5433_v9  ;;  %v5159_v3 = vpack.i.bf16 %v2247_v60, %v2179_v57  ;;  %v2586_v4 = vcombine.high %v7266_v23, %v7250_v17 }
 0x226   : > { %5145 = vrot.lane.b32.xlu1 %v5144_v1, %s5349_s29  ;;  %4019 = vrot.lane.b32.xlu0 %v7422_v38, %s5349_s29  ;;  %v7482_v21 = vrot.slane %v3046_v40, %v5457_v18  ;;  %v7485_v16 = vrot.slane %v3114_v54, %v5457_v18  ;;  %v2998_v36 = vcombine.low %v6546_v59, %v6579_v30 }
 0x227   : > { %v3471_v27 = vcombine.high %v7308_v42, %v7295_v63  ;;  %v7492_v22 = vrot.slane %v2113_v8, %v5433_v9  ;;  %v2620_v17 = vcombine.high %v2616_v5, %v8394_v6  ;;  %v3014_v23 = vcombine.low %v6571_v44, %v6610_v45  ;;  %v7537_v8 = vpop.permute.xlu1 %3700 }
 0x228   : > { %v3066_v32 = vcombine.low %v6574_v47, %v6629_v15  ;;  %v2668_v1 = vrot.slane %v2654_v51, %v5457_v18  ;;  %v3877_v59 = vcombine.high %v3873_v62, %v8394_v6  ;;  %v7503_v30 = vrot.slane %v3539_v43, %v5457_v18  ;;  %v7512_v47 = vpop.permute.xlu0 %3698 }
 0x229   : > { %v2213_v63 = vcombine.low %v7470_v48, %v7473_v12  ;;  %v2145_v42 = vcombine.low %v7492_v22, %v7476_v10  ;;  %v5169_v5 = vpack.i.bf16 %v2688_v58, %v2620_v17  ;;  %v3082_v44 = vcombine.low %v6605_v25, %v6632_v26 }
 0x22a   : > { %5155 = vrot.lane.b32.xlu1 %v5154_v34, %s5349_s29  ;;  %4043 = vrot.lane.b32.xlu0 %v7444_v28, %s5349_s29  ;;  %v2600_v45 = vrot.slane %v2586_v4, %v5457_v18  ;;  %v3064_v15 = vcombine.high %v7482_v21, %v8394_v6  ;;  %v3132_v62 = vcombine.high %v7485_v16, %v8394_v6 }
 0x22b   : > { %v7520_v39 = vrot.slane %v3471_v27, %v5457_v18  ;;  %v3006_v25 = vrot.slane %v2998_v36, %v5433_v9  ;;  %v7525_v26 = vrot.slane %v2213_v63, %v5457_v18  ;;  %v7528_v41 = vrot.slane %v2145_v42, %v5457_v18  ;;  %v7561_v63 = vpop.permute.xlu1 %3708 }
 0x22c   : > { %v5164_v34 = vpack.i.bf16 %v2668_v1, %v2600_v45  ;;  %v3022_v57 = vrot.slane %v3014_v23, %v5433_v9  ;;  %v3074_v60 = vrot.slane %v3066_v32, %v5433_v9  ;;  %v3090_v40 = vrot.slane %v3082_v44, %v5433_v9  ;;  %v7539_v51 = vpop.permute.xlu0 %3706 }
 0x22d   : > { %v5179_v49 = vpack.i.bf16 %v7503_v30, %v7520_v39  ;;  %v5174_v54 = vpack.i.bf16 %v3132_v62, %v3064_v15  ;;  %v3573_v43 = vcombine.high %v7410_v53, %v8394_v6  ;;  %v2177_v58 = vcombine.high %v7528_v41, %v8394_v6 }
 0x22e   : > { %4035 = vrot.lane.b32.xlu1 %v3809_v33, %s5350_s30  ;;  %5160 = vrot.lane.b32.xlu0 %v5159_v3, %s5351_s4  ;;  %v3807_v33 = vcombine.high %v7422_v38, %v8394_v6  ;;  %v2245_v3 = vcombine.high %v7525_v26, %v8394_v6  ;;  %v3030_v4 = vcombine.low %v3006_v25, %v3022_v57 }
 0x22f   : > { %v3098_v36 = vcombine.low %v3074_v60, %v3090_v40  ;;  %v3505_v27 = vcombine.high %v7434_v20, %v8394_v6  ;;  %v3047_v53 = vcombine.high %v7413_v11, %v7425_v55  ;;  %v3115_v38 = vcombine.high %v7428_v14, %v7431_v37 }
 0x230   : > { %v2230_v17 = vcombine.high %v7365_v50, %v7368_v31  ;;  %v2162_v23 = vcombine.high %v7381_v2, %v7371_v29  ;;  %v2686_v20 = vcombine.high %v2668_v1, %v8394_v6  ;;  %v3715_v42 = vpop.permute.xlu0 %3714  ;;  %v7566_v11 = vrot.slane %v3030_v4, %v5457_v18 }
 0x231   : > { %v5184_v32 = vpack.i.bf16 %v3573_v43, %v3505_v27  ;;  %v7569_v55 = vrot.slane %v3098_v36, %v5457_v18  ;;  %v3875_v29 = vcombine.high %v7444_v28, %v8394_v6  ;;  %v2618_v31 = vcombine.high %v2600_v45, %v8394_v6 }
 0x232   : > { %4059 = vrot.lane.b32.xlu1 %v3877_v59, %s5350_s30  ;;  %5170 = vrot.lane.b32.xlu0 %v5169_v5, %s5350_s30  ;;  %v5189_v59 = vpack.i.bf16 %v2245_v3, %v2177_v58  ;;  %v3061_v50 = vrot.slane %v3047_v53, %v5457_v18  ;;  %v3129_v2 = vrot.slane %v3115_v38, %v5457_v18 }
 0x233   : > { %v2214_v14 = vcombine.high %v7470_v48, %v7473_v12  ;;  %v2244_v37 = vrot.slane %v2230_v17, %v5457_v18  ;;  %v2146_v1 = vcombine.high %v7492_v22, %v7476_v10  ;;  %v2176_v5 = vrot.slane %v2162_v23, %v5457_v18  ;;  %v3717_v48 = vpop.permute.xlu1 %3716 }
 0x234   : > { %v5199_v44 = vpack.i.bf16 %v2686_v20, %v2618_v31  ;;  %v3062_v28 = vcombine.high %v7566_v11, %v8394_v6  ;;  %v3130_v45 = vcombine.high %v7569_v55, %v8394_v6  ;;  %v3031_v15 = vcombine.high %v3006_v25, %v3022_v57  ;;  %v3723_v22 = vpop.permute.xlu0 %3722 }
 0x235   : > { %v3099_v62 = vcombine.high %v3074_v60, %v3090_v40  ;;  %v5209_v12 = vpack.i.bf16 %v3129_v2, %v3061_v50  ;;  %v2160_v10 = vrot.slane %v2146_v1, %v5457_v18  ;;  %v3895_v43 = vcombine.high %v7539_v51, %v3723_v22 }
 0x236   : > { %5165 = vrot.lane.b32.xlu1 %v5164_v34, %s5349_s29  ;;  %5180 = vrot.lane.b32.xlu0 %v5179_v49, %s5349_s29  ;;  %v2228_v34 = vrot.slane %v2214_v14, %v5457_v18  ;;  %v5194_v49 = vpack.i.bf16 %v2244_v37, %v2176_v5  ;;  %v3045_v25 = vrot.slane %v3031_v15, %v5457_v18 }
 0x237   : > { %v3113_v57 = vrot.slane %v3099_v62, %v5457_v18  ;;  %v3571_v60 = vcombine.high %v7503_v30, %v8394_v6  ;;  %v3503_v58 = vcombine.high %v7520_v39, %v8394_v6  ;;  %v3878_v3 = vcombine.low %v7512_v47, %v3715_v42  ;;  %v3725_v53 = vpop.permute.xlu1 %3724 }
 0x238   : > { %v5219_v40 = vpack.i.bf16 %v2228_v34, %v2160_v10  ;;  %v3894_v36 = vcombine.low %v7539_v51, %v3723_v22  ;;  %v7607_v27 = vrot.slane %v3895_v43, %v5433_v9  ;;  %v2180_v17 = vcombine.high %v2176_v5, %v8394_v6 }
 0x239   : > { %v5229_v38 = vpack.i.bf16 %v3113_v57, %v3045_v25  ;;  %v5214_v30 = vpack.i.bf16 %v3571_v60, %v3503_v58  ;;  %v2248_v39 = vcombine.high %v2244_v37, %v8394_v6  ;;  %v3946_v23 = vcombine.low %v7537_v8, %v3717_v48 }
 0x23a   : > { %5175 = vrot.lane.b32.xlu1 %v5174_v54, %s5351_s4  ;;  %4023 = vrot.lane.b32.xlu0 %v3807_v33, %s5350_s30  ;;  %v3879_v54 = vcombine.high %v7512_v47, %v3715_v42  ;;  %v5204_v33 = vpack.i.bf16 %v3130_v45, %v3062_v28  ;;  %v2178_v47 = vcombine.high %v2160_v10, %v8394_v6 }
 0x23b   : > { %v3947_v51 = vcombine.high %v7537_v8, %v3717_v48  ;;  %v3886_v20 = vrot.slane %v3878_v3, %v5433_v9  ;;  %v3902_v42 = vrot.slane %v3894_v36, %v5433_v9  ;;  %v3962_v31 = vcombine.low %v7561_v63, %v3725_v53 }
 0x23c   : > { %v7603_v4 = vrot.slane %v3879_v54, %v5433_v9  ;;  %v3065_v37 = vcombine.high %v3061_v50, %v8394_v6  ;;  %v3133_v8 = vcombine.high %v3129_v2, %v8394_v6  ;;  %v5224_v28 = vpack.i.bf16 %v2248_v39, %v2180_v17 }
 0x23d   : > { %v3961_v1 = vrot.slane %v3947_v51, %v5433_v9  ;;  %v3910_v15 = vcombine.low %v3886_v20, %v3902_v42  ;;  %v3954_v62 = vrot.slane %v3946_v23, %v5433_v9  ;;  %v3970_v50 = vrot.slane %v3962_v31, %v5433_v9 }
 0x23e   : > { %5185 = vrot.lane.b32.xlu1 %v5184_v32, %s5350_s30  ;;  %5190 = vrot.lane.b32.xlu0 %v5189_v59, %s5351_s4  ;;  %v3963_v32 = vcombine.high %v7561_v63, %v3725_v53  ;;  %v2246_v59 = vcombine.high %v2228_v34, %v8394_v6  ;;  %v5234_v2 = vpack.i.bf16 %v3133_v8, %v3065_v37 }
 0x23f   : > { %v3063_v48 = vcombine.high %v3045_v25, %v8394_v6  ;;  %v3978_v54 = vcombine.low %v3954_v62, %v3970_v50  ;;  %v3927_v58 = vcombine.high %v7603_v4, %v7607_v27  ;;  %v3979_v39 = vcombine.high %v3954_v62, %v3970_v50 }
 0x240   : > { %v7623_v14 = vpop.permute.xlu0 %5010  ;;  %v3977_v5 = vrot.slane %v3963_v32, %v5433_v9  ;;  %v5239_v45 = vpack.i.bf16 %v2246_v59, %v2178_v47 }
 0x241   : > { %v7659_v60 = vrot.slane %v3978_v54, %v5457_v18  ;;  %v5013_v32 = vunpack.i.h.bf16 %v7623_v14  ;;  %v5012_v59 = vunpack.i.l.bf16 %v7623_v14  ;;  %v5354_v54 = vmov 0  }
 0x242   : > { %4047 = vrot.lane.b32.xlu1 %v3875_v29, %s5350_s30  ;;  %5200 = vrot.lane.b32.xlu0 %v5199_v44, %s5350_s30  ;;  %v3926_v29 = vcombine.low %v7603_v4, %v7607_v27  ;;  %v3994_v10 = vcombine.low %v3961_v1, %v3977_v5  ;;  %v3941_v27 = vrot.slane %v3927_v58, %v5457_v18 }
 0x243   : > { %8496 = vst [vmem:[#allocation65_spill] sm:$0xff] %v7659_v60  ;;  %v4010_v17 = vcombine.high %v7659_v60, %v8394_v6  ;;  %5249 = vset.pattern.permute.xlu0 %v5354_v54 }
 0x244   : > { %v7634_v63 = vrot.slane %v3926_v29, %v5457_v18  ;;  %v5021_v34 = vpop.permute.xlu0 %5020 }
 0x245   : > { %v5022_v29 = vunpack.i.l.bf16 %v5021_v34 }
 0x246   : > { %5195 = vrot.lane.b32.xlu1 %v5194_v49, %s5349_s29  ;;  %5210 = vrot.lane.b32.xlu0 %v5209_v12, %s5349_s29  ;;  %v3131_v12 = vcombine.high %v3113_v57, %v8394_v6  ;;  %v7645_v49 = vrot.slane %v3910_v15, %v5457_v18  ;;  %v3944_v9 = vcombine.high %v7634_v63, %v8394_v6 }
 0x247   : > { %v2785_v62 = vsel %vm557_vm2, %v6815_v46, %v5022_v29 }
 0x248   : > { %v5244_v43 = vpack.i.bf16 %v3131_v12, %v3063_v48 }
 0x24a   : > { %5205 = vrot.lane.b32.xlu1 %v5204_v33, %s5351_s4  ;;  %5220 = vrot.lane.b32.xlu0 %v5219_v40, %s5349_s29  ;;  %v7652_v33 = vrot.slane %v3994_v10, %v5457_v18  ;;  %v3942_v40 = vcombine.high %v7645_v49, %v8394_v6 }
 0x24c   : > { %v4012_v53 = vcombine.high %v7652_v33, %v8394_v6 }
 0x24e   : > { %5215 = vrot.lane.b32.xlu1 %v5214_v30, %s5350_s30  ;;  %5230 = vrot.lane.b32.xlu0 %v5229_v38, %s5349_s29  ;;  %v3911_v38 = vcombine.high %v3886_v20, %v3902_v42  ;;  %v3995_v30 = vcombine.high %v3961_v1, %v3977_v5  ;;  %v5023_v20 = vunpack.i.h.bf16 %v5021_v34  ;;  %v3993_v42 = vrot.slane %v3979_v39, %v5457_v18 }
 0x24f   : > { %v3945_v5 = vcombine.high %v3941_v27, %v8394_v6 }
 0x250   : > { %v7631_v44 = vpop.permute.xlu1 %5015  ;;  %v7654_v25 = vpop.permute.xlu0 %5030  ;;  %v3925_v23 = vrot.slane %v3911_v38, %v5457_v18  ;;  %v4009_v51 = vrot.slane %v3995_v30, %v5457_v18  ;;  %v2788_v18 = vsel %vm557_vm2, %v6802_v7, %v5012_v59  ;;  %v2791_v15 = vsel %vm557_vm2, %v6809_v56, %v5023_v20  ;;  %v8498_v7 = vld [vmem:[#allocation43_spill] sm:$0xff]  ;;  %v8499_v30 = vld [vmem:[#allocation30_spill] sm:$0xff]  ;;  %v4264_v59 = vld [vmem:[%s8246_s2] sm:$0xff] }
 0x251   : > { %v5018_v31 = vunpack.i.h.bf16 %v7631_v44  ;;  %v5017_v37 = vunpack.i.l.bf16 %v7631_v44  ;;  %v4011_v44 = vcombine.high %v3993_v42, %v8394_v6  ;;  %v5033_v50 = vunpack.i.h.bf16 %v7654_v25 }
 0x252   : > { %5225 = vrot.lane.b32.xlu1 %v5224_v28, %s5350_s30  ;;  %5240 = vrot.lane.b32.xlu0 %v5239_v45, %s5350_s30  ;;  %v3943_v28 = vcombine.high %v3925_v23, %v8394_v6  ;;  %v4013_v14 = vcombine.high %v4009_v51, %v8394_v6  ;;  %v2794_v45 = vsel %vm557_vm2, %v6812_v35, %v5013_v32  ;;  %v8497_v35 = vld [vmem:[#allocation42_spill] sm:$0xff] }
 0x253   : > { %v3679_v48 = vsel %vm557_vm2, %v8497_v35, %v5018_v31  ;;  %v3673_v12 = vsel %vm557_vm2, %v8498_v7, %v5017_v37 }
 0x254   : > { %v7642_v22 = vpop.permute.xlu1 %5025 }
 0x255   : > { %v5028_v56 = vunpack.i.h.bf16 %v7642_v22  ;;  %v5027_v34 = vunpack.i.l.bf16 %v7642_v22 }
 0x256   : > { %5235 = vrot.lane.b32.xlu1 %v5234_v2, %s5350_s30  ;;  %4075 = vrot.lane.b32.xlu0 %v3944_v9, %s5351_s4  ;;  %v5032_v2 = vunpack.i.l.bf16 %v7654_v25 }
 0x258   : > { %v7656_v57 = vpop.permute.xlu1 %5035 }
 0x259   : > { %v5038_v46 = vunpack.i.h.bf16 %v7656_v57  ;;  %v5037_v9 = vunpack.i.l.bf16 %v7656_v57 }
 0x25a   : > { %5245 = vrot.lane.b32.xlu1 %v5244_v43, %s5350_s30  ;;  %4063 = vrot.lane.b32.xlu0 %v3942_v40, %s5351_s4 }
 0x25b   : > { %v3674_v20 = vsel %vm559_vm3, %v3673_v12, %v5037_v9 }
 0x25c   : > { %v7667_v3 = vpop.permute.xlu1 %5045  ;;  %v7669_v36 = vpop.permute.xlu0 %5040 }
 0x25d   : > { %v5048_v43 = vunpack.i.h.bf16 %v7667_v3  ;;  %v5047_v25 = vunpack.i.l.bf16 %v7667_v3  ;;  %v5043_v58 = vunpack.i.h.bf16 %v7669_v36  ;;  %v8500_v3 = vld [vmem:[#allocation37_spill] sm:$0xff] }
 0x25e   : > { %4099 = vrot.lane.b32.xlu1 %v4012_v53, %s5351_s4  ;;  %4087 = vrot.lane.b32.xlu0 %v4010_v17, %s5351_s4  ;;  %v5042_v53 = vunpack.i.l.bf16 %v7669_v36  ;;  %v3676_v17 = vsel %vm557_vm2, %v8499_v30, %v5033_v50  ;;  %v2789_v36 = vsel %vm559_vm3, %v2788_v18, %v5027_v34  ;;  %v8502_v18 = vld [vmem:[#allocation44_spill] sm:$0xff] }
 0x25f   : > { %v2786_v29 = vsel %vm559_vm3, %v2785_v62, %v5047_v25  ;;  %v2792_v31 = vsel %vm559_vm3, %v2791_v15, %v5048_v43 }
 0x260   : > { %v7677_v47 = vpop.permute.xlu1 %5055  ;;  %v7679_v4 = vpop.permute.xlu0 %5050 }
 0x261   : > { %v5053_v22 = vunpack.i.h.bf16 %v7679_v4  ;;  %v5052_v38 = vunpack.i.l.bf16 %v7679_v4  ;;  %v5058_v57 = vunpack.i.h.bf16 %v7677_v47  ;;  %v5057_v4 = vunpack.i.l.bf16 %v7677_v47 }
 0x262   : > { %4079 = vrot.lane.b32.xlu1 %v3941_v27, %s5349_s29  ;;  %4067 = vrot.lane.b32.xlu0 %v3925_v23, %s5349_s29  ;;  %v3670_v23 = vsel %vm557_vm2, %v8500_v3, %v5032_v2  ;;  %v8503_v2 = vld [vmem:[#allocation29_spill] sm:$0xff] }
 0x263   : > { %v3239_v62 = vsel %vm557_vm2, %v8502_v18, %v5058_v57  ;;  %v3233_v35 = vsel %vm557_vm2, %v8503_v2, %v5057_v4 }
 0x264   : > { %v5066_v8 = vpop.permute.xlu1 %5065  ;;  %v7691_v1 = vpop.permute.xlu0 %5060 }
 0x265   : > { %v5068_v39 = vunpack.i.h.bf16 %v5066_v8  ;;  %v5067_v27 = vunpack.i.l.bf16 %v5066_v8  ;;  %v2354_v8 = vsel %vm557_vm2, %v6981_v19, %v5043_v58  ;;  %v5062_v19 = vunpack.i.l.bf16 %v7691_v1 }
 0x266   : > { %4103 = vrot.lane.b32.xlu1 %v4009_v51, %s5349_s29  ;;  %4091 = vrot.lane.b32.xlu0 %v3993_v42, %s5349_s29  ;;  %v2795_v51 = vsel %vm559_vm3, %v2794_v45, %v5028_v56  ;;  %v3680_v42 = vsel %vm559_vm3, %v3679_v48, %v5038_v46  ;;  %v5063_v48 = vunpack.i.h.bf16 %v7691_v1  ;;  %s5355_s29 = smov [#allocation2]  }
 0x267   : > { %v7752_v45 = vsel %vm561_vm4, %v2795_v51, %v5053_v22  ;;  %v7758_v15 = vsel %vm561_vm4, %v3674_v20, %v5067_v27  ;;  %v7761_v50 = vsel %vm561_vm4, %v3680_v42, %v5068_v39  ;;  %v3671_v1 = vsel %vm559_vm3, %v3670_v23, %v5062_v19  ;;  %v8504_v20 = vld [vmem:[#allocation54_spill] sm:$0xff] }
 0x268   : > { %v7715_v10 = vpop.permute.xlu1 %5075  ;;  %v7721_v40 = vpop.permute.xlu0 %5070  ;;  %v4193_v34 = vrot.slane %v7752_v45, 4  ;;  %v4215_v43 = vrot.slane %v7758_v15, 4  ;;  %v4217_v25 = vrot.slane %v7761_v50, 4  ;;  %v3677_v57 = vsel %vm559_vm3, %v3676_v17, %v5063_v48 }
 0x269   : > { %v5077_v7 = vunpack.i.l.bf16 %v7715_v10  ;;  %v5078_v58 = vunpack.i.h.bf16 %v7715_v10  ;;  %v5072_v22 = vunpack.i.l.bf16 %v7721_v40 }
 0x26a   : > { %4083 = vrot.lane.b32.xlu1 %v3945_v5, %s5350_s30  ;;  %4071 = vrot.lane.b32.xlu0 %v3943_v28, %s5350_s30  ;;  %v8501_v5 = vld [vmem:[#allocation31_spill] sm:$0xff]  ;;  %v7749_v28 = vsel %vm561_vm4, %v2789_v36, %v5052_v38 }
 0x26b   : > { %v2348_v47 = vsel %vm557_vm2, %v8501_v5, %v5042_v53  ;;  %v4191_v56 = vrot.slane %v7749_v28, 4  ;;  %v5073_v53 = vunpack.i.h.bf16 %v7721_v40  ;;  %v2355_v23 = vsel %vm559_vm3, %v2354_v8, %v5078_v58  ;;  %v8506_v5 = vld [vmem:[#allocation52_spill] sm:$0xff] }
 0x26c   : > { %v5086_v32 = vpop.permute.xlu1 %5085  ;;  %v5081_v37 = vpop.permute.xlu0 %5080  ;;  %v2349_v39 = vsel %vm559_vm3, %v2348_v47, %v5077_v7  ;;  %v2345_v42 = vsel %vm557_vm2, %v8504_v20, %v5072_v22 }
 0x26d   : > { %v5088_v38 = vunpack.i.h.bf16 %v5086_v32  ;;  %v5087_v30 = vunpack.i.l.bf16 %v5086_v32  ;;  %v5083_v27 = vunpack.i.h.bf16 %v5081_v37  ;;  %v2351_v40 = vsel %vm557_vm2, %v7039_v0, %v5073_v53 }
 0x26e   : > { %4107 = vrot.lane.b32.xlu1 %v4013_v14, %s5350_s30  ;;  %4267 = vperm.xlu0 %5249, %v4264_v59   ;;  %v5082_v14 = vunpack.i.l.bf16 %v5081_v37  ;;  %v8505_v37 = vld [vmem:[#allocation53_spill] sm:$0xff] }
 0x26f   : > { %v3230_v47 = vsel %vm557_vm2, %v8506_v5, %v5087_v30  ;;  %v2793_v45 = vsel %vm561_vm4, %v2792_v31, %v5083_v27 }
 0x270   : > { %v5096_v12 = vpop.permute.xlu1 %5095  ;;  %v5091_v9 = vpop.permute.xlu0 %5090  ;;  %v2787_v3 = vsel %vm561_vm4, %v2786_v29, %v5082_v14  ;;  %v3236_v29 = vsel %vm557_vm2, %v8505_v37, %v5088_v38 }
 0x271   : > { %v5098_v54 = vunpack.i.h.bf16 %v5096_v12  ;;  %v5097_v46 = vunpack.i.l.bf16 %v5096_v12  ;;  %v5093_v32 = vunpack.i.h.bf16 %v5091_v9  ;;  %v5092_v17 = vunpack.i.l.bf16 %v5091_v9 }
 0x272   : > { %4095 = vrot.lane.b32.xlu1 %v4011_v44, %s5350_s30  ;;  %v4190_v18 = vrot.slane %v2787_v3, 4  ;;  %s5286_s30 = sshll.u32 %s5355_s29, 4  ;;  %s5287_s30 = int_to_ptr.vmem [resolvable:$false] %s5286_s30 }
 0x273   : > { %v3672_v10 = vsel %vm561_vm4, %v3671_v1, %v5097_v46  ;;  %v3678_v51 = vsel %vm561_vm4, %v3677_v57, %v5098_v54  ;;  %v3240_v14 = vsel %vm559_vm3, %v3239_v62, %v5093_v32  ;;  %v3234_v12 = vsel %vm559_vm3, %v3233_v35, %v5092_v17  ;;  %s5288_s4 = scalar_lea.vmem %s5287_s30, 2048  ;;  %p5289_p0 = scmp.lt.s32.totalorder %s8202_s24, %s5287_s30 }
 0x274   : > { %v5106_v36 = vpop.permute.xlu1 %5105  ;;  %v5101_v59 = vpop.permute.xlu0 %5100  ;;  %v4214_v15 = vrot.slane %v3672_v10, 4  ;;  %v4216_v8 = vrot.slane %v3678_v51, 4  ;;  %p5290_p1 = scmp.lt.s32.totalorder %s5288_s4, %s5282_s16 }
 0x275   : > { %v5108_v4 = vunpack.i.h.bf16 %v5106_v36  ;;  %v5107_v44 = vunpack.i.l.bf16 %v5106_v36  ;;  %v5102_v28 = vunpack.i.l.bf16 %v5101_v59  ;;  %v5103_v9 = vunpack.i.h.bf16 %v5101_v59 }
 0x276   : > { %p5291_p2 = por %p5290_p1, %p5289_p0 }
 0x277   : > { %v2350_v0 = vsel %vm561_vm4, %v2349_v39, %v5107_v44  ;;  %v2356_v19 = vsel %vm561_vm4, %v2355_v23, %v5108_v4  ;;  %v2346_v31 = vsel %vm559_vm3, %v2345_v42, %v5102_v28  ;;  %v4192_v44 = vrot.slane %v2793_v45, 4 }
 0x278   : > { %v5116_v50 = vpop.permute.xlu1 %5115  ;;  %v5111_v7 = vpop.permute.xlu0 %5110  ;;  %v4248_v22 = vsel %vm4230_vm5, %v2350_v0, %v4191_v56  ;;  %v4250_v30 = vsel %vm4230_vm5, %v2356_v19, %v4193_v34  ;;  %v2352_v56 = vsel %vm559_vm3, %v2351_v40, %v5103_v9  ;;  %v8508_v19 = vld [vmem:[#allocation25_spill] sm:$0xff]  ;;  %v8511_v9 = vld [vmem:[#allocation26_spill] sm:$0xff]  ;;  %p5292_p3 = pnand %p5291_p2, %p5285_p13 }
 0x279   : > { %v5118_v2 = vunpack.i.h.bf16 %v5116_v50  ;;  %v5117_v48 = vunpack.i.l.bf16 %v5116_v50  ;;  %v5113_v54 = vunpack.i.h.bf16 %v5111_v7  ;;  %v5112_v46 = vunpack.i.l.bf16 %v5111_v7  ;;  %v8509_v7 = vld [vmem:[#allocation17_spill] sm:$0xff] }
 0x27b   : > { %v3235_v58 = vsel %vm561_vm4, %v3234_v12, %v5117_v48  ;;  %v3241_v53 = vsel %vm561_vm4, %v3240_v14, %v5118_v2  ;;  %v3237_v36 = vsel %vm559_vm3, %v3236_v29, %v5113_v54  ;;  %v3231_v10 = vsel %vm559_vm3, %v3230_v47, %v5112_v46  ;;  %v8510_v54 = vld [vmem:[#allocation7_spill] sm:$0xff] }
 0x27c   : > { %v5126_v1 = vpop.permute.xlu1 %5125  ;;  %v4256_v38 = vsel %vm4230_vm5, %v3235_v58, %v4215_v43  ;;  %v4258_v62 = vsel %vm4230_vm5, %v3241_v53, %v4217_v25  ;;  %v5121_v39 = vpop.permute.xlu0 %5120  ;;  %v4823_v2 = vunpack.i.h.bf16 %v8508_v19  ;;  %v4822_v48 = vunpack.i.l.bf16 %v8508_v19  ;;  %v8512_v58 = vld [vmem:[#allocation10_spill] sm:$0xff] }
 0x27d   : > { %v5128_v57 = vunpack.i.h.bf16 %v5126_v1  ;;  %v5127_v35 = vunpack.i.l.bf16 %v5126_v1  ;;  %v4692_v27 = vpack.c.bf16 %v4256_v38, %v4248_v22  ;;  %v4700_v3 = vpack.c.bf16 %v4258_v62, %v4250_v30  ;;  %v8513_v22 = vld [vmem:[#allocation28_spill] sm:$0xff] }
 0x27e   : > { %v5123_v51 = vunpack.i.h.bf16 %v5121_v39  ;;  %v5122_v4 = vunpack.i.l.bf16 %v5121_v39  ;;  %v4783_v14 = vunpack.i.h.bf16 %v8509_v7  ;;  %v4782_v12 = vunpack.i.l.bf16 %v8509_v7  ;;  %v8522_v7 = vld [vmem:[#allocation39_spill] sm:$0xff] }
 0x27f   : > { %v3232_v43 = vsel %vm561_vm4, %v3231_v10, %v5127_v35  ;;  %v3238_v34 = vsel %vm561_vm4, %v3237_v36, %v5128_v57  ;;  %4693 = vmatprep.subr.bf16.mxu0 %v4692_v27  ;;  %4701 = vmatprep.subr.bf16.mxu1 %v4700_v3  ;;  %v4813_v1 = vunpack.i.h.bf16 %v8511_v9  ;;  %v4818_v38 = vunpack.i.h.bf16 %v8513_v22  ;;  %v8514_v57 = vld [vmem:[#allocation50_spill] sm:$0xff]  ;;  %v8515_v27 = vld [vmem:[#allocation49_spill] sm:$0xff] }
 0x280   : > { %v2347_v25 = vsel %vm561_vm4, %v2346_v31, %v5122_v4  ;;  %v2353_v59 = vsel %vm561_vm4, %v2352_v56, %v5123_v51  ;;  %v4255_v23 = vsel %vm4230_vm5, %v3232_v43, %v4214_v15  ;;  %v4257_v32 = vsel %vm4230_vm5, %v3238_v34, %v4216_v8  ;;  %v7812_v17 = vpop.permute.xlu0 %4027  ;;  %v7818_v5 = vpop.permute.xlu1 %4051  ;;  %v8507_v15 = vld [vmem:[#allocation24_spill] sm:$0xff] }
 0x281   : > { %v4247_v20 = vsel %vm4230_vm5, %v2347_v25, %v4190_v18  ;;  %v4249_v40 = vsel %vm4230_vm5, %v2353_v59, %v4192_v44  ;;  %v4807_v8 = vunpack.i.l.bf16 %v8507_v15  ;;  %v4808_v18 = vunpack.i.h.bf16 %v8507_v15  ;;  %v8516_v51 = vld [vmem:[#allocation16_spill] sm:$0xff]  ;;  %v8517_v44 = vld [vmem:[#allocation15_spill] sm:$0xff] }
 0x282   : > { %v4694_v42 = vpack.c.bf16 %v4255_v23, %v4247_v20  ;;  %v4702_v37 = vpack.c.bf16 %v4257_v32, %v4249_v40  ;;  %v4812_v31 = vunpack.i.l.bf16 %v8511_v9  ;;  %v4817_v30 = vunpack.i.l.bf16 %v8513_v22  ;;  %v8518_v25 = vld [vmem:[#allocation27_spill] sm:$0xff] }
 0x283   : > { %v572_v46 = vsel %vm557_vm2, %v8510_v54, %v4807_v8  ;;  %v575_v53 = vsel %vm557_vm2, %v8512_v58, %v4808_v18  ;;  %v4903_v35 = vunpack.i.h.bf16 %v8514_v57  ;;  %v4902_v39 = vunpack.i.l.bf16 %v8514_v57  ;;  %v8520_v18 = vld [vmem:[#allocation41_spill] sm:$0xff]  ;;  %v8524_v9 = vld [vmem:[#allocation51_spill] sm:$0xff] }
 0x284   : > { %4695 = vmatpush1.bf16.msra.mxu0 %v4694_v42  ;;  %4703 = vmatpush1.bf16.msra.mxu1 %v4702_v37  ;;  %v7816_v29 = vpop.permute.xlu0 %5130  ;;  %v4893_v3 = vunpack.i.h.bf16 %v8515_v27  ;;  %v4892_v36 = vunpack.i.l.bf16 %v8515_v27  ;;  %v581_v4 = vsel %vm557_vm2, %v8516_v51, %v4823_v2  ;;  %v578_v56 = vsel %vm557_vm2, %v8517_v44, %v4822_v48  ;;  %v8519_v42 = vld [vmem:[#allocation46_spill] sm:$0xff]  ;;  %v8521_v2 = vld [vmem:[#allocation40_spill] sm:$0xff]  ;;  %v8529_v44 = vld [vmem:[#allocation19_spill] sm:$0xff] }
 0x285   : > { %v573_v43 = vsel %vm559_vm3, %v572_v46, %v4782_v12  ;;  %v576_v32 = vsel %vm559_vm3, %v575_v53, %v4783_v14  ;;  %v7864_v20 = vsel %vm559_vm3, %v581_v4, %v4818_v38  ;;  %v7867_v40 = vsel %vm559_vm3, %v578_v56, %v4817_v30  ;;  %v8523_v12 = vld [vmem:[#allocation38_spill] sm:$0xff]  ;;  %v8526_v30 = vld [vmem:[#allocation45_spill] sm:$0xff] }
 0x286   : > { %v7858_v34 = vsel %vm561_vm4, %v573_v43, %v4812_v31  ;;  %v4842_v37 = vunpack.i.l.bf16 %v8519_v42  ;;  %v7873_v8 = vsel %vm561_vm4, %v576_v32, %v4813_v1  ;;  %v1037_v19 = vsel %vm557_vm2, %v8520_v18, %v4903_v35  ;;  %v8525_v53 = vld [vmem:[#allocation22_spill] sm:$0xff] }
 0x287   : > { %v1034_v48 = vsel %vm557_vm2, %v8521_v2, %v4902_v39  ;;  %v1031_v14 = vsel %vm557_vm2, %v8522_v7, %v4893_v3  ;;  %v1028_v54 = vsel %vm557_vm2, %v8523_v12, %v4892_v36  ;;  %v4908_v31 = vunpack.i.h.bf16 %v8524_v9  ;;  %v8527_v39 = vld [vmem:[#allocation47_spill] sm:$0xff]  ;;  %v8528_v3 = vld [vmem:[#allocation48_spill] sm:$0xff] }
 0x288   : > { %v7820_v47 = vpop.permute.xlu0 %4015  ;;  %v4907_v58 = vunpack.i.l.bf16 %v8524_v9  ;;  %v4898_v1 = vunpack.i.h.bf16 %v8525_v53  ;;  %v4897_v22 = vunpack.i.l.bf16 %v8525_v53  ;;  %v4843_v38 = vunpack.i.h.bf16 %v8519_v42  ;;  %v8531_v53 = vld [vmem:[#allocation14_spill] sm:$0xff] }
 0x289   : > { %v4848_v57 = vunpack.i.h.bf16 %v8526_v30  ;;  %v4847_v35 = vunpack.i.l.bf16 %v8526_v30  ;;  %v1029_v4 = vsel %vm559_vm3, %v1028_v54, %v4842_v37  ;;  %v4983_v56 = vunpack.i.h.bf16 %v8529_v44  ;;  %v8532_v30 = vld [vmem:[#allocation57_spill] sm:$0xff] }
 0x28a   : > { %v1032_v18 = vsel %vm559_vm3, %v1031_v14, %v4843_v38  ;;  %v4982_v2 = vunpack.i.l.bf16 %v8529_v44  ;;  %v7912_v37 = vsel %vm561_vm4, %v1029_v4, %v4897_v22  ;;  %v4998_v14 = vunpack.i.h.bf16 %v8531_v53  ;;  %v8534_v22 = vld [vmem:[#allocation8_spill] sm:$0xff] }
 0x28b   : > { %v1035_v32 = vsel %vm559_vm3, %v1034_v48, %v4847_v35  ;;  %v1038_v42 = vsel %vm559_vm3, %v1037_v19, %v4848_v57  ;;  %v7915_v54 = vsel %vm561_vm4, %v1032_v18, %v4898_v1  ;;  %v8530_v48 = vld [vmem:[#allocation20_spill] sm:$0xff]  ;;  %v4997_v38 = vunpack.i.l.bf16 %v8531_v53  ;;  %v8536_v18 = vld [vmem:[#allocation13_spill] sm:$0xff] }
 0x28c   : > { %v7822_v28 = vpop.permute.xlu1 %5135  ;;  %v7824_v45 = vpop.permute.xlu0 %4039  ;;  %v7906_v12 = vsel %vm561_vm4, %v1035_v32, %v4907_v58  ;;  %v7909_v9 = vsel %vm561_vm4, %v1038_v42, %v4908_v31  ;;  %v4988_v19 = vunpack.i.h.bf16 %v8530_v48  ;;  %v4113_v58 = vsel %vm557_vm2, %v8532_v30, %v7812_v17  ;;  %v8533_v31 = vld [vmem:[#allocation36_spill] sm:$0xff]  ;;  %v8535_v32 = vld [vmem:[#allocation21_spill] sm:$0xff] }
 0x28d   : > { %v4987_v57 = vunpack.i.l.bf16 %v8530_v48  ;;  %v1920_v35 = vsel %vm557_vm2, %v8533_v31, %v4983_v56  ;;  %v4993_v4 = vunpack.i.h.bf16 %v8534_v22  ;;  %v4933_v42 = vunpack.i.h.bf16 %v8535_v32  ;;  %v8537_v48 = vld [vmem:[#allocation5_spill] sm:$0xff]  ;;  %v8538_v31 = vld [vmem:[#allocation23_spill] sm:$0xff] }
 0x28e   : > { %v1917_v53 = vsel %vm557_vm2, %v8536_v18, %v4982_v2  ;;  %v4992_v59 = vunpack.i.l.bf16 %v8534_v22  ;;  %v4948_v23 = vunpack.i.h.bf16 %v8537_v48  ;;  %v4932_v56 = vunpack.i.l.bf16 %v8535_v32  ;;  %v8540_v2 = vld [vmem:[#allocation33_spill] sm:$0xff] }
 0x28f   : > { %v5003_v27 = vunpack.i.h.bf16 %v8538_v31  ;;  %v1923_v22 = vsel %vm557_vm2, %v8540_v2, %v4997_v38  ;;  %v4947_v32 = vunpack.i.l.bf16 %v8537_v48  ;;  %v1918_v36 = vsel %vm559_vm3, %v1917_v53, %v4987_v57  ;;  %v8544_v57 = vld [vmem:[#allocation6_spill] sm:$0xff] }
 0x290   : > { %v7828_v50 = vpop.permute.xlu1 %4031  ;;  %v7830_v0 = vpop.permute.xlu0 %5140  ;;  %v4938_v53 = vunpack.i.h.bf16 %v8544_v57 }
 0x291   : > { %v4114_v1 = vsel %vm559_vm3, %v4113_v58, %v7828_v50  ;;  %v5002_v50 = vunpack.i.l.bf16 %v8538_v31  ;;  %v8539_v58 = vld [vmem:[#allocation34_spill] sm:$0xff] }
 0x292   : > { %v1926_v51 = vsel %vm557_vm2, %v8539_v58, %v4998_v14  ;;  %v1919_v14 = vsel %vm561_vm4, %v1918_v36, %v4992_v59  ;;  %v8542_v58 = vld [vmem:[#allocation32_spill] sm:$0xff]  ;;  %v4862_v59 = vunpack.i.l.bf16 %v8528_v3  ;;  %v8545_v36 = vld [vmem:[#allocation9_spill] sm:$0xff] }
 0x293   : > { %v5008_v38 = vunpack.i.h.bf16 %v8542_v58 }
 0x294   : > { %v7844_v62 = vpop.permute.xlu1 %4055  ;;  %v7850_v10 = vpop.permute.xlu0 %5150 }
 0x298   : > { %v7870_v15 = vpop.permute.xlu1 %5145  ;;  %v7883_v46 = vpop.permute.xlu0 %4019 }
 0x29c   : > { %v7897_v43 = vpop.permute.xlu1 %5155  ;;  %v7903_v7 = vpop.permute.xlu0 %4043 }
 0x2a0   : > { %v4036_v44 = vpop.permute.xlu1 %4035  ;;  %v7934_v30 = vpop.permute.xlu0 %5160 }
 0x2a1   : > { %v4115_v17 = vsel %vm561_vm4, %v4114_v1, %v4036_v44  ;;  %v1921_v1 = vsel %vm559_vm3, %v1920_v35, %v4988_v19  ;;  %v8541_v44 = vld [vmem:[#allocation55_spill] sm:$0xff]  ;;  %v5007_v19 = vunpack.i.l.bf16 %v8542_v58  ;;  %v4170_v58 = vrot.slane %v1919_v14, 4 }
 0x2a2   : > { %4670 = vmatprep.subr.msk.mxu0 %vm4230_vm5, %v4115_v17  ;;  %v4119_v18 = vsel %vm557_vm2, %v8541_v44, %v7818_v5  ;;  %v1922_v31 = vsel %vm561_vm4, %v1921_v1, %v4993_v4  ;;  %v8543_v5 = vld [vmem:[#allocation11_spill] sm:$0xff]  ;;  %v1927_v4 = vsel %vm559_vm3, %v1926_v51, %v5003_v27  ;;  %v1468_v1 = vsel %vm557_vm2, %v8545_v36, %v4932_v56 }
 0x2a3   : > { %v4120_v17 = vsel %vm559_vm3, %v4119_v18, %v7844_v62  ;;  %v1471_v48 = vsel %vm557_vm2, %v8543_v5, %v4933_v42  ;;  %v1924_v62 = vsel %vm559_vm3, %v1923_v22, %v5002_v50  ;;  %v4171_v44 = vrot.slane %v1922_v31, 4  ;;  %v8548_v5 = vld [vmem:[#allocation35_spill] sm:$0xff] }
 0x2a4   : > { %v4060_v60 = vpop.permute.xlu1 %4059  ;;  %v7958_v2 = vpop.permute.xlu0 %5170  ;;  %v4148_v18 = vrot.slane %v7906_v12, 4  ;;  %v4146_v42 = vrot.slane %v7912_v37, 4  ;;  %v4149_v51 = vrot.slane %v7909_v9, 4  ;;  %v1925_v50 = vsel %vm561_vm4, %v1924_v62, %v5007_v19  ;;  %v8547_v12 = vld [vmem:[#allocation12_spill] sm:$0xff] }
 0x2a5   : > { %v4121_v35 = vsel %vm561_vm4, %v4120_v17, %v4060_v60  ;;  %v4937_v60 = vunpack.i.l.bf16 %v8544_v57  ;;  %v4147_v17 = vrot.slane %v7915_v54, 4  ;;  %v8546_v56 = vunpack.i.h.bf16 %v8528_v3  ;;  %v8549_v57 = vld [vmem:[#allocation18_spill] sm:$0xff] }
 0x2a6   : > { %4673 = vmatprep.subr.msk.mxu1 %vm4230_vm5, %v4121_v35  ;;  %v1928_v31 = vsel %vm561_vm4, %v1927_v4, %v5008_v38  ;;  %v1477_v37 = vsel %vm557_vm2, %v8547_v12, %v4948_v23  ;;  %v1474_v54 = vsel %vm557_vm2, %v8548_v5, %v4947_v32  ;;  %v1469_v14 = vsel %vm559_vm3, %v1468_v1, %v4862_v59  ;;  %v8550_v38 = vld [vmem:[#allocation59_spill] sm:$0xff] }
 0x2a7   : > { %v1472_v35 = vsel %vm559_vm3, %v1471_v48, %v8546_v56  ;;  %v4953_v19 = vunpack.i.h.bf16 %v8549_v57  ;;  %v4952_v62 = vunpack.i.l.bf16 %v8549_v57  ;;  %v1470_v3 = vsel %vm561_vm4, %v1469_v14, %v4937_v60  ;;  %v8006_v60 = vld [vmem:[%s8245_s1] sm:$0xff] }
 0x2a8   : > { %v7973_v27 = vpop.permute.xlu1 %5165  ;;  %v7977_v22 = vpop.permute.xlu0 %5180  ;;  %v1473_v9 = vsel %vm561_vm4, %v1472_v35, %v4938_v53  ;;  %v4172_v36 = vrot.slane %v1925_v50, 4  ;;  %v4110_v23 = vsel %vm557_vm2, %v8550_v38, %v7820_v47  ;;  %v4243_v32 = vsel %vm4230_vm5, %v1470_v3, %v4170_v58 }
 0x2a9   : > { %v4244_v48 = vsel %vm4230_vm5, %v1473_v9, %v4171_v44  ;;  %v4173_v59 = vrot.slane %v1928_v31, 4  ;;  %v4111_v53 = vsel %vm559_vm3, %v4110_v23, %v7883_v46  ;;  %v4236_v56 = vsel %vm4230_vm5, %v7873_v8, %v4147_v17 }
 0x2aa   : > { %v4235_v47 = vsel %vm4230_vm5, %v7858_v34, %v4146_v42  ;;  %v8551_v44 = vunpack.i.l.bf16 %v8527_v39  ;;  %v4704_v46 = vpack.c.bf16 %v4244_v48, %v4236_v56  ;;  %v8552_v35 = vunpack.i.h.bf16 %v8527_v39  ;;  %v8555_v48 = vld [vmem:[#allocation63_spill] sm:$0xff] }
 0x2ab   : > { %v4706_v31 = vpack.c.bf16 %v4243_v32, %v4235_v47  ;;  %v8553_v39 = vunpack.i.l.bf16 %v8518_v25  ;;  %v8554_v9 = vunpack.i.h.bf16 %v8518_v25  ;;  %v5137_v25 = vunpack.i.l.bf16 %v7822_v28  ;;  %v8557_v47 = vld [vmem:[#allocation58_spill] sm:$0xff] }
 0x2ac   : > { %v7996_v4 = vpop.permute.xlu1 %5175  ;;  %v4024_v1 = vpop.permute.xlu0 %4023  ;;  %v1475_v58 = vsel %vm559_vm3, %v1474_v54, %v8551_v44  ;;  %v1478_v8 = vsel %vm559_vm3, %v1477_v37, %v8552_v35  ;;  %v5133_v54 = vunpack.i.h.bf16 %v7816_v29  ;;  %v5142_v32 = vunpack.i.l.bf16 %v7830_v0  ;;  %v8558_v44 = vld [vmem:[#allocation62_spill] sm:$0xff] }
 0x2ad   : > { %v4112_v50 = vsel %vm561_vm4, %v4111_v53, %v4024_v1  ;;  %v1476_v17 = vsel %vm561_vm4, %v1475_v58, %v4952_v62  ;;  %v1479_v12 = vsel %vm561_vm4, %v1478_v8, %v4953_v19  ;;  %v580_v37 = vsel %vm561_vm4, %v7867_v40, %v8553_v39  ;;  %v8556_v53 = vld [vmem:[#allocation56_spill] sm:$0xff] }
 0x2ae   : > { %4671 = vmatpush1.msk.msra.mxu0 %vm4230_vm5, %v4112_v50  ;;  %v4246_v42 = vsel %vm4230_vm5, %v1479_v12, %v4173_v59  ;;  %v4245_v5 = vsel %vm4230_vm5, %v1476_v17, %v4172_v36  ;;  %v583_v57 = vsel %vm561_vm4, %v7864_v20, %v8554_v9  ;;  %v5132_v19 = vunpack.i.l.bf16 %v7816_v29  ;;  %v8559_v8 = vld [vmem:[#allocation60_spill] sm:$0xff] }
 0x2af   : > { %4705 = vmatprep.subr.bf16.mxu0 %v4704_v46  ;;  %4672 = vmatmul.mubr.msk.f32.vlgmr.msra.gmra.mrb[0].mxu0 %vm4270_vm6, %v8006_v60  ;;  %v5138_v62 = vunpack.i.h.bf16 %v7822_v28  ;;  %v4238_v3 = vsel %vm4230_vm5, %v583_v57, %v4149_v51  ;;  %v4237_v40 = vsel %vm4230_vm5, %v580_v37, %v4148_v18  ;;  %v4116_v36 = vsel %vm557_vm2, %v8555_v48, %v7824_v45  ;;  %v8561_v12 = vld [vmem:[#allocation64_spill] sm:$0xff] }
 0x2b0   : > { %v8020_v34 = vpop.permute.xlu1 %5185  ;;  %v8031_v14 = vpop.permute.xlu0 %5190  ;;  %4707 = vmatpush1.bf16.msra.mxu0 %v4706_v31  ;;  %4504 = vmatprep.mubr.f32.mxu0 %v8394_v6  ;;  %v4712_v38 = vpack.c.bf16 %v4246_v42, %v4238_v3  ;;  %v4714_v23 = vpack.c.bf16 %v4245_v5, %v4237_v40  ;;  %v5143_v20 = vunpack.i.h.bf16 %v7830_v0  ;;  %v4117_v29 = vsel %vm559_vm3, %v4116_v36, %v7903_v7  ;;  %v8560_v31 = vld [vmem:[#allocation61_spill] sm:$0xff] }
 0x2b1   : > { %v2806_v51 = vsel %vm557_vm2, %v8556_v53, %v5133_v54  ;;  %v5153_v18 = vunpack.i.h.bf16 %v7850_v10  ;;  %v5152_v1 = vunpack.i.l.bf16 %v7850_v10  ;;  %v2800_v28 = vsel %vm557_vm2, %v8557_v47, %v5132_v19 }
 0x2b2   : > { %v3691_v0 = vsel %vm557_vm2, %v8558_v44, %v5138_v62  ;;  %v5148_v58 = vunpack.i.h.bf16 %v7870_v15  ;;  %v5147_v7 = vunpack.i.l.bf16 %v7870_v15  ;;  %v5158_v50 = vunpack.i.h.bf16 %v7897_v43 }
 0x2b3   : > { %v5157_v46 = vunpack.i.l.bf16 %v7897_v43  ;;  %v5173_v10 = vunpack.i.h.bf16 %v7958_v2  ;;  %v5172_v35 = vunpack.i.l.bf16 %v7958_v2  ;;  %v3685_v17 = vsel %vm557_vm2, %v8559_v8, %v5137_v25 }
 0x2b4   : > { %v4048_v59 = vpop.permute.xlu1 %4047  ;;  %v5201_v56 = vpop.permute.xlu0 %5200  ;;  %v2803_v15 = vsel %vm557_vm2, %v8560_v31, %v5143_v20  ;;  %v2797_v42 = vsel %vm557_vm2, %v8561_v12, %v5142_v32  ;;  %v3688_v43 = vsel %vm557_vm2, %v7336_v52, %v5153_v18  ;;  %v3682_v2 = vsel %vm557_vm2, %v7352_v13, %v5152_v1 }
 0x2b5   : > { %v4118_v45 = vsel %vm561_vm4, %v4117_v29, %v4048_v59  ;;  %v5163_v39 = vunpack.i.h.bf16 %v7934_v30  ;;  %v5162_v37 = vunpack.i.l.bf16 %v7934_v30  ;;  %v2801_v9 = vsel %vm559_vm3, %v2800_v28, %v5147_v7 }
 0x2b6   : > { %4674 = vmatpush1.msk.msra.mxu1 %vm4230_vm5, %v4118_v45  ;;  %v2807_v57 = vsel %vm559_vm3, %v2806_v51, %v5148_v58  ;;  %v5188_v19 = vunpack.i.h.bf16 %v8020_v34  ;;  %v5187_v62 = vunpack.i.l.bf16 %v8020_v34  ;;  %v3692_v52 = vsel %vm559_vm3, %v3691_v0, %v5158_v50 }
 0x2b7   : > { %4713 = vmatprep.subr.bf16.mxu1 %v4712_v38  ;;  %4675 = vmatmul.mubr.msk.f32.vlgmr.msra.gmra.mrb[0].mxu1 %vm4270_vm6, %v8006_v60  ;;  %v8090_v3 = vsel %vm561_vm4, %v2801_v9, %v5172_v35  ;;  %v8093_v13 = vsel %vm561_vm4, %v2807_v57, %v5173_v10  ;;  %v5168_v30 = vunpack.i.h.bf16 %v7973_v27  ;;  %v5167_v40 = vunpack.i.l.bf16 %v7973_v27 }
 0x2b8   : > { %v8074_v5 = vpop.permute.xlu1 %5195  ;;  %4715 = vmatpush1.bf16.msra.mxu1 %v4714_v23  ;;  %4575 = vmatprep.mubr.f32.mxu1 %v8394_v6  ;;  %v5211_v54 = vpop.permute.xlu0 %5210  ;;  %v3686_v6 = vsel %vm559_vm3, %v3685_v17, %v5157_v46  ;;  %v5183_v48 = vunpack.i.h.bf16 %v7977_v22  ;;  %v5182_v36 = vunpack.i.l.bf16 %v7977_v22  ;;  %v2366_v34 = vsel %vm557_vm2, %v7416_v24, %v5163_v39 }
 0x2b9   : > { %v2360_v23 = vsel %vm557_vm2, %v7419_v61, %v5162_v37  ;;  %v5178_v25 = vunpack.i.h.bf16 %v7996_v4  ;;  %v5177_v20 = vunpack.i.l.bf16 %v7996_v4  ;;  %v8106_v29 = vsel %vm561_vm4, %v3686_v6, %v5187_v62 }
 0x2ba   : > { %v8109_v27 = vsel %vm561_vm4, %v3692_v52, %v5188_v19  ;;  %v5203_v59 = vunpack.i.h.bf16 %v5201_v56  ;;  %v5202_v22 = vunpack.i.l.bf16 %v5201_v56  ;;  %v4195_v53 = vrot.slane %v8090_v3, 4 }
 0x2bb   : > { %v4197_v24 = vrot.slane %v8093_v13, 4  ;;  %v5193_v51 = vunpack.i.h.bf16 %v8031_v14  ;;  %v5192_v61 = vunpack.i.l.bf16 %v8031_v14  ;;  %v2798_v18 = vsel %vm559_vm3, %v2797_v42, %v5167_v40 }
 0x2bc   : > { %v5206_v38 = vpop.permute.xlu1 %5205  ;;  %v5221_v32 = vpop.permute.xlu0 %5220  ;;  %v2804_v4 = vsel %vm559_vm3, %v2803_v15, %v5168_v30  ;;  %v3683_v1 = vsel %vm559_vm3, %v3682_v2, %v5182_v36  ;;  %v3689_v45 = vsel %vm559_vm3, %v3688_v43, %v5183_v48  ;;  %v3251_v56 = vsel %vm557_vm2, %v7485_v16, %v5178_v25 }
 0x2bd   : > { %v3245_v28 = vsel %vm557_vm2, %v7482_v21, %v5177_v20  ;;  %v4219_v44 = vrot.slane %v8106_v29, 4  ;;  %v4221_v0 = vrot.slane %v8109_v27, 4  ;;  %v8126_v58 = vsel %vm561_vm4, %v2798_v18, %v5202_v22 }
 0x2be   : > { %v8129_v7 = vsel %vm561_vm4, %v2804_v4, %v5203_v59  ;;  %v5198_v50 = vunpack.i.h.bf16 %v8074_v5  ;;  %v5197_v46 = vunpack.i.l.bf16 %v8074_v5  ;;  %v2363_v16 = vsel %vm557_vm2, %v7525_v26, %v5193_v51 }
 0x2bf   : > { %v2357_v21 = vsel %vm557_vm2, %v7528_v41, %v5192_v61  ;;  %v5213_v10 = vunpack.i.h.bf16 %v5211_v54  ;;  %v5212_v35 = vunpack.i.l.bf16 %v5211_v54  ;;  %v5208_v8 = vunpack.i.h.bf16 %v5206_v38 }
 0x2c0   : > { %v5216_v47 = vpop.permute.xlu1 %5215  ;;  %v5231_v14 = vpop.permute.xlu0 %5230  ;;  %v5207_v17 = vunpack.i.l.bf16 %v5206_v38  ;;  %v5223_v31 = vunpack.i.h.bf16 %v5221_v32  ;;  %v5222_v15 = vunpack.i.l.bf16 %v5221_v32  ;;  %v4194_v42 = vrot.slane %v8126_v58, 4 }
 0x2c1   : > { %v4196_v43 = vrot.slane %v8129_v7, 4  ;;  %v2361_v37 = vsel %vm559_vm3, %v2360_v23, %v5197_v46  ;;  %v2367_v26 = vsel %vm559_vm3, %v2366_v34, %v5198_v50  ;;  %v5218_v9 = vunpack.i.h.bf16 %v5216_v47 }
 0x2c2   : > { %v5217_v41 = vunpack.i.l.bf16 %v5216_v47  ;;  %v3252_v54 = vsel %vm559_vm3, %v3251_v56, %v5213_v10  ;;  %v3246_v57 = vsel %vm559_vm3, %v3245_v28, %v5212_v35  ;;  %v3248_v6 = vsel %vm557_vm2, %v7569_v55, %v5208_v8 }
 0x2c3   : > { %v3242_v52 = vsel %vm557_vm2, %v7566_v11, %v5207_v17  ;;  %v2358_v3 = vsel %vm559_vm3, %v2357_v21, %v5222_v15  ;;  %v2364_v13 = vsel %vm559_vm3, %v2363_v16, %v5223_v31  ;;  %v3690_v25 = vsel %vm561_vm4, %v3689_v45, %v5218_v9 }
 0x2c4   : > { %v5226_v12 = vpop.permute.xlu1 %5225  ;;  %v5241_v5 = vpop.permute.xlu0 %5240  ;;  %v3684_v23 = vsel %vm561_vm4, %v3683_v1, %v5217_v41  ;;  %v5233_v55 = vunpack.i.h.bf16 %v5231_v14  ;;  %v5232_v20 = vunpack.i.l.bf16 %v5231_v14  ;;  %v4220_v14 = vrot.slane %v3690_v25, 4 }
 0x2c5   : > { %v5228_v2 = vunpack.i.h.bf16 %v5226_v12  ;;  %v5227_v39 = vunpack.i.l.bf16 %v5226_v12  ;;  %v5243_v19 = vunpack.i.h.bf16 %v5241_v5  ;;  %v5242_v62 = vunpack.i.l.bf16 %v5241_v5 }
 0x2c6   : > { %v4218_v28 = vrot.slane %v3684_v23, 4  ;;  %v3249_v58 = vsel %vm559_vm3, %v3248_v6, %v5233_v55  ;;  %v3243_v7 = vsel %vm559_vm3, %v3242_v52, %v5232_v20 }
 0x2c7   : > { %v2362_v40 = vsel %vm561_vm4, %v2361_v37, %v5227_v39  ;;  %v2368_v48 = vsel %vm561_vm4, %v2367_v26, %v5228_v2  ;;  %v2359_v11 = vsel %vm561_vm4, %v2358_v3, %v5242_v62  ;;  %v2365_v32 = vsel %vm561_vm4, %v2364_v13, %v5243_v19 }
 0x2c8   : > { %v5236_v30 = vpop.permute.xlu1 %5235  ;;  %v4076_v34 = vpop.permute.xlu0 %4075  ;;  %v4252_v22 = vsel %vm4230_vm5, %v2362_v40, %v4195_v53  ;;  %v4254_v61 = vsel %vm4230_vm5, %v2368_v48, %v4197_v24  ;;  %v4253_v46 = vsel %vm4230_vm5, %v2365_v32, %v4196_v43 }
 0x2c9   : > { %v5238_v36 = vunpack.i.h.bf16 %v5236_v30  ;;  %v5237_v38 = vunpack.i.l.bf16 %v5236_v30  ;;  %v4125_v12 = vsel %vm557_vm2, %v7634_v63, %v4076_v34 }
 0x2cb   : > { %v3247_v29 = vsel %vm561_vm4, %v3246_v57, %v5237_v38  ;;  %v3253_v27 = vsel %vm561_vm4, %v3252_v54, %v5238_v36  ;;  %v8562_v54 = vld [vmem:[#allocation65_spill] sm:$0xff] }
 0x2cc   : > { %v5246_v59 = vpop.permute.xlu1 %5245  ;;  %v4260_v51 = vsel %vm4230_vm5, %v3247_v29, %v4219_v44  ;;  %v4262_v18 = vsel %vm4230_vm5, %v3253_v27, %v4221_v0  ;;  %v4064_v45 = vpop.permute.xlu0 %4063  ;;  %v4251_v44 = vsel %vm4230_vm5, %v2359_v11, %v4194_v42 }
 0x2cd   : > { %v5248_v4 = vunpack.i.h.bf16 %v5246_v59  ;;  %v5247_v1 = vunpack.i.l.bf16 %v5246_v59  ;;  %v4708_v47 = vpack.c.bf16 %v4260_v51, %v4252_v22  ;;  %v4716_v56 = vpack.c.bf16 %v4262_v18, %v4254_v61 }
 0x2ce   : > { %v4122_v42 = vsel %vm557_vm2, %v7645_v49, %v4064_v45 }
 0x2cf   : > { %v3244_v50 = vsel %vm561_vm4, %v3243_v7, %v5247_v1  ;;  %v3250_v53 = vsel %vm561_vm4, %v3249_v58, %v5248_v4  ;;  %4709 = vmatprep.subr.bf16.mxu0 %v4708_v47  ;;  %4717 = vmatprep.subr.bf16.mxu1 %v4716_v56 }
 0x2d0   : > { %v4100_v24 = vpop.permute.xlu1 %4099  ;;  %v4259_v0 = vsel %vm4230_vm5, %v3244_v50, %v4218_v28  ;;  %v4261_v16 = vsel %vm4230_vm5, %v3250_v53, %v4220_v14  ;;  %v4088_v21 = vpop.permute.xlu0 %4087 }
 0x2d1   : > { %v4710_v10 = vpack.c.bf16 %v4259_v0, %v4251_v44  ;;  %v4718_v35 = vpack.c.bf16 %v4261_v16, %v4253_v46  ;;  %v4131_v63 = vsel %vm557_vm2, %v7652_v33, %v4100_v24  ;;  %v4128_v57 = vsel %vm557_vm2, %v8562_v54, %v4088_v21 }
 0x2d3   : > { %4711 = vmatpush1.bf16.msra.mxu0 %v4710_v10  ;;  %4719 = vmatpush1.bf16.msra.mxu1 %v4718_v35 }
 0x2d4   : > { %v4080_v8 = vpop.permute.xlu1 %4079  ;;  %v4068_v17 = vpop.permute.xlu0 %4067 }
 0x2d5   : > { %v4126_v2 = vsel %vm559_vm3, %v4125_v12, %v4080_v8  ;;  %v4123_v39 = vsel %vm559_vm3, %v4122_v42, %v4068_v17 }
 0x2d8   : > { %v4104_v31 = vpop.permute.xlu1 %4103  ;;  %v4092_v15 = vpop.permute.xlu0 %4091 }
 0x2d9   : > { %v4132_v49 = vsel %vm559_vm3, %v4131_v63, %v4104_v31  ;;  %v4129_v19 = vsel %vm559_vm3, %v4128_v57, %v4092_v15 }
 0x2dc   : > { %v4084_v43 = vpop.permute.xlu1 %4083  ;;  %v4072_v37 = vpop.permute.xlu0 %4071 }
 0x2dd   : > { %v4127_v5 = vsel %vm561_vm4, %v4126_v2, %v4084_v43  ;;  %v4124_v26 = vsel %vm561_vm4, %v4123_v39, %v4072_v37 }
 0x2de   : > { %4676 = vmatprep.subr.msk.mxu0 %vm4230_vm5, %v4127_v5 }
 0x2df   : > { %4677 = vmatpush1.msk.msra.mxu0 %vm4230_vm5, %v4124_v26 }
 0x2e0   : > { %v4108_v9 = vpop.permute.xlu1 %4107  ;;  %4678 = vmatmul.mubr.msk.f32.vlgmr.msra.gmra.mrb[2].mxu0 %vm4270_vm6, %v8006_v60 }
 0x2e1   : > { %v4133_v41 = vsel %vm561_vm4, %v4132_v49, %v4108_v9 }
 0x2e2   : > { %4679 = vmatprep.subr.msk.mxu1 %vm4230_vm5, %v4133_v41 }
 0x2e4   : > { %v4096_v62 = vpop.permute.xlu1 %4095 }
 0x2e5   : > { %v4130_v33 = vsel %vm561_vm4, %v4129_v19, %v4096_v62 }
 0x2e6   : > { %4680 = vmatpush1.msk.msra.mxu1 %vm4230_vm5, %v4130_v33 }
 0x2e7   : > { %4681 = vmatmul.mubr.msk.f32.vlgmr.msra.gmra.mrb[2].mxu1 %vm4270_vm6, %v8006_v60 }
 0x2ed   : > { %v4268_v6 = vpop.permute.xlu0 %4267 }
 0x382   : > { %v4364_v52 = vpop.f32.mrb[0].mxu0 }
 0x383   : > { %v4365_v3 = vadd.f32 %v4364_v52, %v4268_v6  ;;  %v4366_v13 = vpop.f32.mrb[1].mxu0 }
 0x384   : > { %v4367_v30 = vadd.f32 %v4366_v13, %v4268_v6 }
 0x385   : > { %4582 = vst [vmem:[%s163_s19] sm:$0xff] %v4365_v3 }
 0x386   : > { %4583 = vst [vmem:[%s163_s19 + $0x8] sm:$0xff] %v4367_v30 }
 0x38a   : > { %v4435_v40 = vpop.f32.mrb[0].mxu1 }
 0x38b   : > { %v4436_v48 = vadd.f32 %v4435_v40, %v4268_v6  ;;  %v4437_v36 = vpop.f32.mrb[1].mxu1 }
 0x38c   : > { %v4438_v38 = vadd.f32 %v4437_v36, %v4268_v6 }
 0x38d   : > { %4584 = vst [vmem:[%s163_s19 + $0x10] sm:$0xff] %v4436_v48 }
 0x38e   : > { %4585 = vst [vmem:[%s163_s19 + $0x18] sm:$0xff] %v4438_v38 }
 0x3b3   : > { %v4506_v34 = vpop.f32.mrb[2].mxu0 }
 0x3b4   : > { %v4507_v60 = vadd.f32 %v4506_v34, %v4268_v6  ;;  %v4508_v23 = vpop.f32.mrb[3].mxu0 }
 0x3b5   : > { %v4509_v25 = vadd.f32 %v4508_v23, %v4268_v6 }
 0x3b6   : > { %4586 = vst [vmem:[%s163_s19 + $0x20] sm:$0xff] %v4507_v60 }
 0x3b7   : > { %4587 = vst [vmem:[%s163_s19 + $0x28] sm:$0xff] %v4509_v25 }
 0x3ba   : > { %v4577_v55 = vpop.f32.mrb[2].mxu1 }
 0x3bb   : > { %v4578_v20 = vadd.f32 %v4577_v55, %v4268_v6  ;;  %v4579_v11 = vpop.f32.mrb[3].mxu1 }
 0x3bc   : > { %v4580_v32 = vadd.f32 %v4579_v11, %v4268_v6 }
 0x3bd   : > { %4588 = vst [vmem:[%s163_s19 + $0x30] sm:$0xff] %v4578_v20 }
 0x3be   : > { %4589 = vst [vmem:[%s163_s19 + $0x38] sm:$0xff] %v4580_v32 }
 0x3bf   : > { %5295 = shalt.err (!%p5292_p3)
}
 0x3c0   : > { %s5296_s5 = scalar_lea.hbm %s8200_s27, 1024  ;;  %s5300_s8 = scalar_lea.hbm %s8247_s3, 2048 }
 0x3c1   : > { %p5297_p4 = scmp.ne.s32.totalorder %s8200_s27, %s5296_s5  ;;  %p5301_p9 = scmp.lt.u32.totalorder %s8200_s27, %s8247_s3 }
 0x3c2   : > { %p5302_p10 = scmp.lt.u32.totalorder %s5300_s8, %s5296_s5  ;;  %p5304_p12 = scmp.lt.u32.totalorder %s5296_s5, %s8200_s27 }
 0x3c3   : > { %p5298_p7 = pnand %p5297_p4, %p5414_p5 }
 0x3c4   : > { %p5303_p11 = por %p5302_p10, %p5301_p9 }
 0x3c5   : > { %p5299_p8 = pneg %p5298_p7 }
 0x3c6   : > { %p5305_p13 = por %p5304_p12, %p5303_p11 }
 0x3c8   : > { %p5306_p0 = pnand %p5305_p13, %p5299_p8 }
 0x3ca   : > { %5309 = shalt.err (!%p5306_p0)
}
 0x3cb   : > { %4721 = dma.vmem_to_hbm [thread:$0]  (%p5414_p5), %s8202_s24, 1024, %s8200_s27, %s4591_s28  }
 0x3cc PF: > { %p4727_p1 = scmp.ge.s32.totalorder %s5344_s15, 2  ;;  %s4617_s11 = sand.u32 1, %s5332_s12  }
 0x3cd   : > { %s4618_s17 = scalar_lea.sflag [#allocation3], %s4617_s11 }
 0x3ce   : > { %p4724_p2 = pnand %p4727_p1, %p5418_p6 }
 0x3d0   : > { %5327 = dma.done.wait (!%p4724_p2), %s4618_s17, 1024  }
 0x3d1   : > { %5329 = vsyncadd (!%p4724_p2), %s4618_s17, 4294966272  ;;  %p13_p3 = scmp.ge.s32.totalorder %s5401_s18, 4   ;;  %s8563_s12 = smov %s5336_s13 }
 0x3d2   : > { %s8564_s13 = smov %s5340_s14  ;;  %s8565_s14 = smov %s5412_s21 }
 0x3d3   : > { %s8566_s15 = smov %s5401_s18  ;;  %15 = sbr.rel (!%p13_p3) target bundleno = 3 (0x3), region = 67 }
 0x3da   :  { %4623 = vsyncpa [#allocation3], 1 }
 0x3db   :  { %4625 = vsyncpa [#allocation3 + $0x1], 1 }

</bundles_post_ra>
